<compile_context>
chip_gen: v5e
topology: v5e:2x2
jax: 0.10.0
libtpu: 0.0.40
codegen_flags: <defaults>
</compile_context>

<pallas_src>
import functools

import jax
import jax.numpy as jnp
from jax import lax
from jax.experimental import pallas as pl
from jax.experimental.pallas import tpu as pltpu


def _fused_finetune_kernel(xs_ref, xq_ref, y_ref, w0_ref, b0_ref, scores_ref,
                           *, n_steps, lr, alpha, n_ways, spatial_size,
                           unroll):
    ns, cs = xs_ref.shape
    cp, kp = w0_ref.shape
    inv_ns = 1.0 / ns
    decay = 1.0 - lr * alpha            # weight decay from the L2 penalty
    decay_t = decay ** n_steps          # static python float

    # --- mean-pool + lane-pad projection, built in VMEM (no HBM traffic) ---
    # pm[i, j] = 1/S  iff  j*S <= i < (j+1)*S  (j < C), else 0.
    row = lax.broadcasted_iota(jnp.int32, (cs, cp), 0)
    col = lax.broadcasted_iota(jnp.int32, (cs, cp), 1)
    pm = ((row >= col * spatial_size) &
          (row < (col + 1) * spatial_size)).astype(jnp.float32)
    pm = pm * (1.0 / spatial_size)                        # (C*S, Cp)

    def pool_normalize(x):
        # mean-pool over spatial + zero-pad feature dim, as one MXU matmul
        feat = jnp.dot(x, pm, preferred_element_type=jnp.float32)   # (N, Cp)
        nrm = jnp.sqrt(jnp.sum(feat * feat, axis=1, keepdims=True))
        return feat / jnp.maximum(nrm, 1e-12)             # F.normalize eps

    zs = pool_normalize(xs_ref[...])                      # (Ns, Cp)
    zq = pool_normalize(xq_ref[...])                      # (Nq, Cp)

    # --- one-time Gram-space setup (feature dim never enters the loop) ---
    gram = lax.dot_general(zs, zs, (((1,), (1,)), ((), ())),
                           preferred_element_type=jnp.float32)   # (Ns, Ns)
    cross = lax.dot_general(zq, zs, (((1,), (1,)), ((), ())),
                            preferred_element_type=jnp.float32)  # (Nq, Ns)
    w0 = w0_ref[...]                                      # (Cp, Kp)
    l0 = jnp.dot(zs, w0, preferred_element_type=jnp.float32)     # (Ns, Kp)
    q0 = jnp.dot(zq, w0, preferred_element_type=jnp.float32)     # (Nq, Kp)

    # one-hot labels; padded classes stay zero
    yoh = (lax.broadcasted_iota(jnp.int32, (ns, kp), 1) ==
           y_ref[...]).astype(jnp.float32)                # (Ns, Kp)

    # mask padded classes out of every softmax
    cls_mask = jnp.where(
        lax.broadcasted_iota(jnp.int32, (1, kp), 1) < n_ways,
        0.0, -1e30).astype(jnp.float32)                   # (1, Kp)

    # dual-space GD step (exact reformulation of full-batch GD on
    # CE(zs W + b, y) + alpha * 0.5 * (|W|^2 + |b|^2)):
    #   W_t = decay^t W_0 - lr zs^T A_t ,  A_{t+1} = decay A_t + g_t
    #   l_t = zs W_t ,  l_{t+1} = decay l_t - lr G g_t
    #   b_{t+1} = decay b_t - lr sum(g_t)
    def gd_step(carry):
        l, b, a = carry                                   # (Ns,Kp),(1,Kp),(Ns,Kp)
        logit = l + b + cls_mask
        m = jnp.max(logit, axis=1, keepdims=True)
        e = jnp.exp(logit - m)
        p = e / jnp.sum(e, axis=1, keepdims=True)         # exact softmax
        g = (p - yoh) * inv_ns                            # dCE/dlogits (mean)
        l_new = decay * l - lr * jnp.dot(gram, g,
                                         preferred_element_type=jnp.float32)
        b_new = decay * b - lr * jnp.sum(g, axis=0, keepdims=True)
        a_new = decay * a + g
        return (l_new, b_new, a_new)

    def gd_block(_, carry):
        for _ in range(unroll):                           # static unroll
            carry = gd_step(carry)
        return carry

    carry = (l0, b0_ref[...], jnp.zeros((ns, kp), jnp.float32))
    n_blocks = n_steps // unroll
    if n_blocks > 0:
        carry = lax.fori_loop(0, n_blocks, gd_block, carry)
    for _ in range(n_steps % unroll):                     # remainder steps
        carry = gd_step(carry)
    _, b_fin, a_fin = carry

    # query logits: zq W_T + b_T = decay^T q0 - lr Q A_T + b_T
    lq = (decay_t * q0
          - lr * jnp.dot(cross, a_fin, preferred_element_type=jnp.float32)
          + b_fin + cls_mask)
    mq = jnp.max(lq, axis=1, keepdims=True)
    eq = jnp.exp(lq - mq)
    scores_ref[...] = eq / jnp.sum(eq, axis=1, keepdims=True)


def baseline_finetune_forward(z_support, y_support, z_query, w0, b0,
                              n_ways=5, n_steps=100, unroll=10):
    alpha = 0.05 if n_ways == 1 else 0.01
    lr = 0.5 if n_ways == 1 else 1.0

    single = (z_support.ndim == 4)
    if single:                                   # add an episode axis
        z_support = z_support[None]
        z_query = z_query[None]
    e, ns, c, h, w = z_support.shape
    nq = z_query.shape[1]
    s = h * w
    cs = c * s
    cp = max(128, ((c + 127) // 128) * 128)      # pad feature dim to 128 lanes
    kp = max(8, ((n_ways + 7) // 8) * 8)         # pad class dim to 8 sublanes

    xs_flat = z_support.reshape(e, ns, cs).astype(jnp.float32)
    xq_flat = z_query.reshape(e, nq, cs).astype(jnp.float32)
    y_col = jnp.asarray(y_support, jnp.int32).reshape(e, ns, 1)

    # classifier init in (Cp, Kp) layout, zero-padded (shared by all episodes,
    # matching torch.manual_seed(0) re-init inside every forward)
    w0_pad = jnp.zeros((cp, kp), jnp.float32).at[:c, :n_ways].set(
        jnp.asarray(w0, jnp.float32).T)
    b0_pad = jnp.zeros((1, kp), jnp.float32).at[:, :n_ways].set(
        jnp.asarray(b0, jnp.float32).reshape(1, n_ways))

    kern = functools.partial(_fused_finetune_kernel, n_steps=n_steps, lr=lr,
                             alpha=alpha, n_ways=n_ways, spatial_size=s,
                             unroll=unroll)

    scores_pad = pl.pallas_call(
        kern,
        out_shape=jax.ShapeDtypeStruct((e, nq, kp), jnp.float32),
        grid=(e,),
        in_specs=[pl.BlockSpec((None, ns, cs), lambda i: (i, 0, 0)),
                  pl.BlockSpec((None, nq, cs), lambda i: (i, 0, 0)),
                  pl.BlockSpec((None, ns, 1), lambda i: (i, 0, 0)),
                  pl.BlockSpec((cp, kp), lambda i: (0, 0)),
                  pl.BlockSpec((1, kp), lambda i: (0, 0))],
        out_specs=pl.BlockSpec((None, nq, kp), lambda i: (i, 0, 0)),
        compiler_params=pltpu.CompilerParams(
            dimension_semantics=("parallel",)),
    )(xs_flat, xq_flat, y_col, w0_pad, b0_pad)

    scores = scores_pad[..., :n_ways]
    return scores[0] if single else scores


def _reference_forward(z_support, y_support, z_query, w0, b0, n_ways, n_steps):
    """Plain-JAX primal-space GD reference (same objective)."""
    alpha = 0.05 if n_ways == 1 else 0.01
    lr = 0.5 if n_ways == 1 else 1.0
    zs = z_support.reshape(z_support.shape[0], z_support.shape[1], -1).mean(-1)
    zq = z_query.reshape(z_query.shape[0], z_query.shape[1], -1).mean(-1)
    zs = zs / jnp.maximum(jnp.sqrt(jnp.sum(zs * zs, 1, keepdims=True)), 1e-12)
    zq = zq / jnp.maximum(jnp.sqrt(jnp.sum(zq * zq, 1, keepdims=True)), 1e-12)
    wmat = jnp.asarray(w0, jnp.float32)
    bvec = jnp.asarray(b0, jnp.float32).reshape(n_ways)
    y = jnp.asarray(y_support, jnp.int32).reshape(-1)
    yoh = jax.nn.one_hot(y, n_ways, dtype=jnp.float32)
    n = zs.shape[0]
    for _ in range(n_steps):
        p = jax.nn.softmax(zs @ wmat.T + bvec, axis=1)
        g = (p - yoh) / n
        wmat = wmat - lr * (g.T @ zs + alpha * wmat)
        bvec = bvec - lr * (g.sum(0) + alpha * bvec)
    return jax.nn.softmax(zq @ wmat.T + bvec, axis=1)


if __name__ == "__main__":
    n_way, n_aug_support, n_query, feat_dim, h, w = 5, 5, 15, 32, 4, 4
    ns_total = n_way * n_aug_support

    key = jax.random.PRNGKey(0)
    k1, k2, k3, k4 = jax.random.split(key, 4)

    z_support = jax.random.normal(k1, (ns_total, feat_dim, h, w), jnp.float32)
    z_query = jax.random.normal(k2, (n_query, feat_dim, h, w), jnp.float32)
    y_support = jnp.repeat(jnp.arange(n_way, dtype=jnp.int32), n_aug_support)

    # Deterministic init for nn.Linear(feat_dim, n_way): U(-1/sqrt(fan_in), +)
    bound = float(1.0 / (feat_dim ** 0.5))
    w0 = jax.random.uniform(k3, (n_way, feat_dim), jnp.float32, -bound, bound)
    b0 = jax.random.uniform(k4, (1, n_way), jnp.float32, -bound, bound)

    # single-episode call (module-equivalent API)
    scores = baseline_finetune_forward(z_support, y_support, z_query, w0, b0,
                                       n_ways=n_way, n_steps=100)
    jax.block_until_ready(scores)
    assert scores.shape == (n_query, n_way)
    assert bool(jnp.all(jnp.isfinite(scores)))
    assert bool(jnp.allclose(jnp.sum(scores, axis=1), 1.0, atol=1e-4))

    # dual-space kernel vs primal-space plain-JAX reference (loose f32 tol)
    ref = _reference_forward(z_support, y_support, z_query, w0, b0,
                             n_way, 100)
    assert bool(jnp.allclose(scores, ref, atol=3e-2))

    # batched-episode call exercising the parallel episode grid axis
    zs_b = jnp.stack([z_support, z_support * 0.5])   # 0.5x is removed by L2 norm
    zq_b = jnp.stack([z_query, z_query * 0.5])
    y_b = jnp.stack([y_support, y_support])
    scores_b = baseline_finetune_forward(zs_b, y_b, zq_b, w0, b0,
                                         n_ways=n_way, n_steps=100)
    jax.block_until_ready(scores_b)
    assert scores_b.shape == (2, n_query, n_way)
    assert bool(jnp.all(jnp.isfinite(scores_b)))
    assert bool(jnp.allclose(scores_b[0], scores, atol=1e-5))

    print("KERNEL_OK")
</pallas_src>

<mosaic_0001>
module attributes {stable_mosaic.version = 11 : i64} {
  func.func @_fused_finetune_kernel(%arg0: i32, %arg1: memref<1x25x512xf32, #tpu.memory_space<vmem>>, %arg2: memref<1x15x512xf32, #tpu.memory_space<vmem>>, %arg3: memref<1x25x1xi32, #tpu.memory_space<vmem>>, %arg4: memref<128x8xf32, #tpu.memory_space<vmem>>, %arg5: memref<1x8xf32, #tpu.memory_space<vmem>>, %arg6: memref<1x15x8xf32, #tpu.memory_space<vmem>>) attributes {dimension_semantics = [#tpu.dimension_semantics<parallel>], iteration_bounds = array<i64: 1>, scalar_prefetch = 0 : i64, scratch_operands = 0 : i64, tpu.core_type = #tpu.core_type<tc>, window_params = [{transform_indices = @transform_0, window_bounds = array<i64: 1, 25, 512>}, {transform_indices = @transform_1, window_bounds = array<i64: 1, 15, 512>}, {transform_indices = @transform_2, window_bounds = array<i64: 1, 25, 1>}, {pipeline_mode = #tpu.pipeline_mode<synchronous>, transform_indices = @transform_3, window_bounds = array<i64: 128, 8>}, {pipeline_mode = #tpu.pipeline_mode<synchronous>, transform_indices = @transform_4, window_bounds = array<i64: 1, 8>}, {transform_indices = @transform_5, window_bounds = array<i64: 1, 15, 8>}]} {
    %0 = tpu.iota {dimensions = array<i32: 0>} : vector<512x128xi32>
    %1 = tpu.iota {dimensions = array<i32: 1>} : vector<512x128xi32>
    %c16_i32 = arith.constant 16 : i32
    %2 = vector.broadcast %c16_i32 : i32 to vector<512x128xi32>
    %3 = arith.muli %1, %2 : vector<512x128xi32>
    %4 = arith.cmpi sge, %0, %3 : vector<512x128xi32>
    %c1_i32 = arith.constant 1 : i32
    %5 = vector.broadcast %c1_i32 : i32 to vector<512x128xi32>
    %6 = arith.addi %1, %5 : vector<512x128xi32>
    %c16_i32_0 = arith.constant 16 : i32
    %7 = vector.broadcast %c16_i32_0 : i32 to vector<512x128xi32>
    %8 = arith.muli %6, %7 : vector<512x128xi32>
    %9 = arith.cmpi slt, %0, %8 : vector<512x128xi32>
    %10 = arith.andi %4, %9 : vector<512x128xi1>
    %11 = arith.extui %10 : vector<512x128xi1> to vector<512x128xi32>
    %12 = arith.sitofp %11 : vector<512x128xi32> to vector<512x128xf32>
    %cst = arith.constant 6.250000e-02 : f32
    %13 = vector.broadcast %cst : f32 to vector<512x128xf32>
    %14 = arith.mulf %12, %13 : vector<512x128xf32>
    %c0 = arith.constant 0 : index
    %c0_1 = arith.constant 0 : index
    %c0_2 = arith.constant 0 : index
    %15 = vector.load %arg1[%c0, %c0_1, %c0_2] : memref<1x25x512xf32, #tpu.memory_space<vmem>>, vector<1x25x512xf32>
    %16 = vector.shape_cast %15 : vector<1x25x512xf32> to vector<25x512xf32>
    %cst_3 = arith.constant dense<0.000000e+00> : vector<25x128xf32>
    %17 = tpu.matmul %16, %14, %cst_3 {dimension_numbers = #tpu.dot_dimension_numbers<[1], [0], [0], [1], [0, 0, 1, 1], [], []>} : vector<25x512xf32>, vector<512x128xf32>, vector<25x128xf32> -> vector<25x128xf32>
    %18 = arith.mulf %17, %17 : vector<25x128xf32>
    %cst_4 = arith.constant dense<0.000000e+00> : vector<25xf32>
    %19 = vector.multi_reduction <add>, %18, %cst_4 [1] : vector<25x128xf32> to vector<25xf32>
    %20 = vector.shape_cast %19 : vector<25xf32> to vector<25x1xf32>
    %21 = math.sqrt %20 : vector<25x1xf32>
    %cst_5 = arith.constant 9.99999996E-13 : f32
    %22 = vector.broadcast %cst_5 : f32 to vector<25x1xf32>
    %23 = arith.maximumf %21, %22 : vector<25x1xf32>
    %24 = vector.broadcast %23 : vector<25x1xf32> to vector<25x128xf32>
    %25 = arith.divf %17, %24 : vector<25x128xf32>
    %c0_6 = arith.constant 0 : index
    %c0_7 = arith.constant 0 : index
    %c0_8 = arith.constant 0 : index
    %26 = vector.load %arg2[%c0_6, %c0_7, %c0_8] : memref<1x15x512xf32, #tpu.memory_space<vmem>>, vector<1x15x512xf32>
    %27 = vector.shape_cast %26 : vector<1x15x512xf32> to vector<15x512xf32>
    %cst_9 = arith.constant dense<0.000000e+00> : vector<15x128xf32>
    %28 = tpu.matmul %27, %14, %cst_9 {dimension_numbers = #tpu.dot_dimension_numbers<[1], [0], [0], [1], [0, 0, 1, 1], [], []>} : vector<15x512xf32>, vector<512x128xf32>, vector<15x128xf32> -> vector<15x128xf32>
    %29 = arith.mulf %28, %28 : vector<15x128xf32>
    %cst_10 = arith.constant dense<0.000000e+00> : vector<15xf32>
    %30 = vector.multi_reduction <add>, %29, %cst_10 [1] : vector<15x128xf32> to vector<15xf32>
    %31 = vector.shape_cast %30 : vector<15xf32> to vector<15x1xf32>
    %32 = math.sqrt %31 : vector<15x1xf32>
    %cst_11 = arith.constant 9.99999996E-13 : f32
    %33 = vector.broadcast %cst_11 : f32 to vector<15x1xf32>
    %34 = arith.maximumf %32, %33 : vector<15x1xf32>
    %35 = vector.broadcast %34 : vector<15x1xf32> to vector<15x128xf32>
    %36 = arith.divf %28, %35 : vector<15x128xf32>
    %cst_12 = arith.constant dense<0.000000e+00> : vector<25x25xf32>
    %37 = tpu.matmul %25, %25, %cst_12 {dimension_numbers = #tpu.dot_dimension_numbers<[1], [1], [0], [0], [0, 0, 1, 0], [], []>} : vector<25x128xf32>, vector<25x128xf32>, vector<25x25xf32> -> vector<25x25xf32>
    %cst_13 = arith.constant dense<0.000000e+00> : vector<15x25xf32>
    %38 = tpu.matmul %36, %25, %cst_13 {dimension_numbers = #tpu.dot_dimension_numbers<[1], [1], [0], [0], [0, 0, 1, 0], [], []>} : vector<15x128xf32>, vector<25x128xf32>, vector<15x25xf32> -> vector<15x25xf32>
    %c0_14 = arith.constant 0 : index
    %c0_15 = arith.constant 0 : index
    %39 = vector.load %arg4[%c0_14, %c0_15] : memref<128x8xf32, #tpu.memory_space<vmem>>, vector<128x8xf32>
    %cst_16 = arith.constant dense<0.000000e+00> : vector<25x8xf32>
    %40 = tpu.matmul %25, %39, %cst_16 {dimension_numbers = #tpu.dot_dimension_numbers<[1], [0], [0], [1], [0, 0, 1, 1], [], []>} : vector<25x128xf32>, vector<128x8xf32>, vector<25x8xf32> -> vector<25x8xf32>
    %cst_17 = arith.constant dense<0.000000e+00> : vector<15x8xf32>
    %41 = tpu.matmul %36, %39, %cst_17 {dimension_numbers = #tpu.dot_dimension_numbers<[1], [0], [0], [1], [0, 0, 1, 1], [], []>} : vector<15x128xf32>, vector<128x8xf32>, vector<15x8xf32> -> vector<15x8xf32>
    %42 = tpu.iota {dimensions = array<i32: 1>} : vector<25x8xi32>
    %c0_18 = arith.constant 0 : index
    %c0_19 = arith.constant 0 : index
    %c0_20 = arith.constant 0 : index
    %43 = vector.load %arg3[%c0_18, %c0_19, %c0_20] : memref<1x25x1xi32, #tpu.memory_space<vmem>>, vector<1x25x1xi32>
    %44 = vector.shape_cast %43 : vector<1x25x1xi32> to vector<25x1xi32>
    %45 = vector.broadcast %44 : vector<25x1xi32> to vector<25x8xi32>
    %46 = arith.cmpi eq, %42, %45 : vector<25x8xi32>
    %47 = arith.extui %46 : vector<25x8xi1> to vector<25x8xi32>
    %48 = arith.sitofp %47 : vector<25x8xi32> to vector<25x8xf32>
    %49 = tpu.iota {dimensions = array<i32: 1>} : vector<1x8xi32>
    %c5_i32 = arith.constant 5 : i32
    %50 = vector.broadcast %c5_i32 : i32 to vector<1x8xi32>
    %51 = arith.cmpi slt, %49, %50 : vector<1x8xi32>
    %cst_21 = arith.constant 0.000000e+00 : f32
    %cst_22 = arith.constant -1.000000e+30 : f32
    %52 = vector.broadcast %cst_21 : f32 to vector<1x8xf32>
    %53 = vector.broadcast %cst_22 : f32 to vector<1x8xf32>
    %54 = arith.select %51, %52, %53 : vector<1x8xi1>, vector<1x8xf32>
    %c0_23 = arith.constant 0 : index
    %c0_24 = arith.constant 0 : index
    %55 = vector.load %arg5[%c0_23, %c0_24] : memref<1x8xf32, #tpu.memory_space<vmem>>, vector<1x8xf32>
    %cst_25 = arith.constant 0.000000e+00 : f32
    %56 = vector.broadcast %cst_25 : f32 to vector<25x8xf32>
    %c0_i32 = arith.constant 0 : i32
    %c10_i32 = arith.constant 10 : i32
    %57 = arith.addi %c0_i32, %c10_i32 : i32
    %c1_i32_26 = arith.constant 1 : i32
    %58:3 = scf.for %arg7 = %c0_i32 to %57 step %c1_i32_26 iter_args(%arg8 = %40, %arg9 = %55, %arg10 = %56) -> (vector<25x8xf32>, vector<1x8xf32>, vector<25x8xf32>)  : i32 {
      %81 = vector.broadcast %arg9 : vector<1x8xf32> to vector<25x8xf32>
      %82 = arith.addf %arg8, %81 : vector<25x8xf32>
      %83 = vector.broadcast %54 : vector<1x8xf32> to vector<25x8xf32>
      %84 = arith.addf %82, %83 : vector<25x8xf32>
      %cst_35 = arith.constant dense<0xFF800000> : vector<25xf32>
      %85 = vector.multi_reduction <maximumf>, %84, %cst_35 [1] : vector<25x8xf32> to vector<25xf32>
      %86 = vector.shape_cast %85 : vector<25xf32> to vector<25x1xf32>
      %87 = vector.broadcast %86 : vector<25x1xf32> to vector<25x8xf32>
      %88 = arith.subf %84, %87 : vector<25x8xf32>
      %89 = math.exp %88 : vector<25x8xf32>
      %cst_36 = arith.constant dense<0.000000e+00> : vector<25xf32>
      %90 = vector.multi_reduction <add>, %89, %cst_36 [1] : vector<25x8xf32> to vector<25xf32>
      %91 = vector.shape_cast %90 : vector<25xf32> to vector<25x1xf32>
      %92 = vector.broadcast %91 : vector<25x1xf32> to vector<25x8xf32>
      %93 = arith.divf %89, %92 : vector<25x8xf32>
      %94 = arith.subf %93, %48 : vector<25x8xf32>
      %cst_37 = arith.constant 4.000000e-02 : f32
      %95 = vector.broadcast %cst_37 : f32 to vector<25x8xf32>
      %96 = arith.mulf %94, %95 : vector<25x8xf32>
      %cst_38 = arith.constant 9.900000e-01 : f32
      %97 = vector.broadcast %cst_38 : f32 to vector<25x8xf32>
      %98 = arith.mulf %97, %arg8 : vector<25x8xf32>
      %cst_39 = arith.constant dense<0.000000e+00> : vector<25x8xf32>
      %99 = tpu.matmul %37, %96, %cst_39 {dimension_numbers = #tpu.dot_dimension_numbers<[1], [0], [0], [1], [0, 0, 1, 1], [], []>} : vector<25x25xf32>, vector<25x8xf32>, vector<25x8xf32> -> vector<25x8xf32>
      %cst_40 = arith.constant 1.000000e+00 : f32
      %100 = vector.broadcast %cst_40 : f32 to vector<25x8xf32>
      %101 = arith.mulf %100, %99 : vector<25x8xf32>
      %102 = arith.subf %98, %101 : vector<25x8xf32>
      %cst_41 = arith.constant 9.900000e-01 : f32
      %103 = vector.broadcast %cst_41 : f32 to vector<1x8xf32>
      %104 = arith.mulf %103, %arg9 : vector<1x8xf32>
      %cst_42 = arith.constant dense<0.000000e+00> : vector<8xf32>
      %105 = vector.multi_reduction <add>, %96, %cst_42 [0] : vector<25x8xf32> to vector<8xf32>
      %106 = vector.shape_cast %105 : vector<8xf32> to vector<1x8xf32>
      %cst_43 = arith.constant 1.000000e+00 : f32
      %107 = vector.broadcast %cst_43 : f32 to vector<1x8xf32>
      %108 = arith.mulf %107, %106 : vector<1x8xf32>
      %109 = arith.subf %104, %108 : vector<1x8xf32>
      %cst_44 = arith.constant 9.900000e-01 : f32
      %110 = vector.broadcast %cst_44 : f32 to vector<25x8xf32>
      %111 = arith.mulf %110, %arg10 : vector<25x8xf32>
      %112 = arith.addf %111, %96 : vector<25x8xf32>
      %113 = vector.broadcast %109 : vector<1x8xf32> to vector<25x8xf32>
      %114 = arith.addf %102, %113 : vector<25x8xf32>
      %115 = vector.broadcast %54 : vector<1x8xf32> to vector<25x8xf32>
      %116 = arith.addf %114, %115 : vector<25x8xf32>
      %cst_45 = arith.constant dense<0xFF800000> : vector<25xf32>
      %117 = vector.multi_reduction <maximumf>, %116, %cst_45 [1] : vector<25x8xf32> to vector<25xf32>
      %118 = vector.shape_cast %117 : vector<25xf32> to vector<25x1xf32>
      %119 = vector.broadcast %118 : vector<25x1xf32> to vector<25x8xf32>
      %120 = arith.subf %116, %119 : vector<25x8xf32>
      %121 = math.exp %120 : vector<25x8xf32>
      %cst_46 = arith.constant dense<0.000000e+00> : vector<25xf32>
      %122 = vector.multi_reduction <add>, %121, %cst_46 [1] : vector<25x8xf32> to vector<25xf32>
      %123 = vector.shape_cast %122 : vector<25xf32> to vector<25x1xf32>
      %124 = vector.broadcast %123 : vector<25x1xf32> to vector<25x8xf32>
      %125 = arith.divf %121, %124 : vector<25x8xf32>
      %126 = arith.subf %125, %48 : vector<25x8xf32>
      %cst_47 = arith.constant 4.000000e-02 : f32
      %127 = vector.broadcast %cst_47 : f32 to vector<25x8xf32>
      %128 = arith.mulf %126, %127 : vector<25x8xf32>
      %cst_48 = arith.constant 9.900000e-01 : f32
      %129 = vector.broadcast %cst_48 : f32 to vector<25x8xf32>
      %130 = arith.mulf %129, %102 : vector<25x8xf32>
      %cst_49 = arith.constant dense<0.000000e+00> : vector<25x8xf32>
      %131 = tpu.matmul %37, %128, %cst_49 {dimension_numbers = #tpu.dot_dimension_numbers<[1], [0], [0], [1], [0, 0, 1, 1], [], []>} : vector<25x25xf32>, vector<25x8xf32>, vector<25x8xf32> -> vector<25x8xf32>
      %cst_50 = arith.constant 1.000000e+00 : f32
      %132 = vector.broadcast %cst_50 : f32 to vector<25x8xf32>
      %133 = arith.mulf %132, %131 : vector<25x8xf32>
      %134 = arith.subf %130, %133 : vector<25x8xf32>
      %cst_51 = arith.constant 9.900000e-01 : f32
      %135 = vector.broadcast %cst_51 : f32 to vector<1x8xf32>
      %136 = arith.mulf %135, %109 : vector<1x8xf32>
      %cst_52 = arith.constant dense<0.000000e+00> : vector<8xf32>
      %137 = vector.multi_reduction <add>, %128, %cst_52 [0] : vector<25x8xf32> to vector<8xf32>
      %138 = vector.shape_cast %137 : vector<8xf32> to vector<1x8xf32>
      %cst_53 = arith.constant 1.000000e+00 : f32
      %139 = vector.broadcast %cst_53 : f32 to vector<1x8xf32>
      %140 = arith.mulf %139, %138 : vector<1x8xf32>
      %141 = arith.subf %136, %140 : vector<1x8xf32>
      %cst_54 = arith.constant 9.900000e-01 : f32
      %142 = vector.broadcast %cst_54 : f32 to vector<25x8xf32>
      %143 = arith.mulf %142, %112 : vector<25x8xf32>
      %144 = arith.addf %143, %128 : vector<25x8xf32>
      %145 = vector.broadcast %141 : vector<1x8xf32> to vector<25x8xf32>
      %146 = arith.addf %134, %145 : vector<25x8xf32>
      %147 = vector.broadcast %54 : vector<1x8xf32> to vector<25x8xf32>
      %148 = arith.addf %146, %147 : vector<25x8xf32>
      %cst_55 = arith.constant dense<0xFF800000> : vector<25xf32>
      %149 = vector.multi_reduction <maximumf>, %148, %cst_55 [1] : vector<25x8xf32> to vector<25xf32>
      %150 = vector.shape_cast %149 : vector<25xf32> to vector<25x1xf32>
      %151 = vector.broadcast %150 : vector<25x1xf32> to vector<25x8xf32>
      %152 = arith.subf %148, %151 : vector<25x8xf32>
      %153 = math.exp %152 : vector<25x8xf32>
      %cst_56 = arith.constant dense<0.000000e+00> : vector<25xf32>
      %154 = vector.multi_reduction <add>, %153, %cst_56 [1] : vector<25x8xf32> to vector<25xf32>
      %155 = vector.shape_cast %154 : vector<25xf32> to vector<25x1xf32>
      %156 = vector.broadcast %155 : vector<25x1xf32> to vector<25x8xf32>
      %157 = arith.divf %153, %156 : vector<25x8xf32>
      %158 = arith.subf %157, %48 : vector<25x8xf32>
      %cst_57 = arith.constant 4.000000e-02 : f32
      %159 = vector.broadcast %cst_57 : f32 to vector<25x8xf32>
      %160 = arith.mulf %158, %159 : vector<25x8xf32>
      %cst_58 = arith.constant 9.900000e-01 : f32
      %161 = vector.broadcast %cst_58 : f32 to vector<25x8xf32>
      %162 = arith.mulf %161, %134 : vector<25x8xf32>
      %cst_59 = arith.constant dense<0.000000e+00> : vector<25x8xf32>
      %163 = tpu.matmul %37, %160, %cst_59 {dimension_numbers = #tpu.dot_dimension_numbers<[1], [0], [0], [1], [0, 0, 1, 1], [], []>} : vector<25x25xf32>, vector<25x8xf32>, vector<25x8xf32> -> vector<25x8xf32>
      %cst_60 = arith.constant 1.000000e+00 : f32
      %164 = vector.broadcast %cst_60 : f32 to vector<25x8xf32>
      %165 = arith.mulf %164, %163 : vector<25x8xf32>
      %166 = arith.subf %162, %165 : vector<25x8xf32>
      %cst_61 = arith.constant 9.900000e-01 : f32
      %167 = vector.broadcast %cst_61 : f32 to vector<1x8xf32>
      %168 = arith.mulf %167, %141 : vector<1x8xf32>
      %cst_62 = arith.constant dense<0.000000e+00> : vector<8xf32>
      %169 = vector.multi_reduction <add>, %160, %cst_62 [0] : vector<25x8xf32> to vector<8xf32>
      %170 = vector.shape_cast %169 : vector<8xf32> to vector<1x8xf32>
      %cst_63 = arith.constant 1.000000e+00 : f32
      %171 = vector.broadcast %cst_63 : f32 to vector<1x8xf32>
      %172 = arith.mulf %171, %170 : vector<1x8xf32>
      %173 = arith.subf %168, %172 : vector<1x8xf32>
      %cst_64 = arith.constant 9.900000e-01 : f32
      %174 = vector.broadcast %cst_64 : f32 to vector<25x8xf32>
      %175 = arith.mulf %174, %144 : vector<25x8xf32>
      %176 = arith.addf %175, %160 : vector<25x8xf32>
      %177 = vector.broadcast %173 : vector<1x8xf32> to vector<25x8xf32>
      %178 = arith.addf %166, %177 : vector<25x8xf32>
      %179 = vector.broadcast %54 : vector<1x8xf32> to vector<25x8xf32>
      %180 = arith.addf %178, %179 : vector<25x8xf32>
      %cst_65 = arith.constant dense<0xFF800000> : vector<25xf32>
      %181 = vector.multi_reduction <maximumf>, %180, %cst_65 [1] : vector<25x8xf32> to vector<25xf32>
      %182 = vector.shape_cast %181 : vector<25xf32> to vector<25x1xf32>
      %183 = vector.broadcast %182 : vector<25x1xf32> to vector<25x8xf32>
      %184 = arith.subf %180, %183 : vector<25x8xf32>
      %185 = math.exp %184 : vector<25x8xf32>
      %cst_66 = arith.constant dense<0.000000e+00> : vector<25xf32>
      %186 = vector.multi_reduction <add>, %185, %cst_66 [1] : vector<25x8xf32> to vector<25xf32>
      %187 = vector.shape_cast %186 : vector<25xf32> to vector<25x1xf32>
      %188 = vector.broadcast %187 : vector<25x1xf32> to vector<25x8xf32>
      %189 = arith.divf %185, %188 : vector<25x8xf32>
      %190 = arith.subf %189, %48 : vector<25x8xf32>
      %cst_67 = arith.constant 4.000000e-02 : f32
      %191 = vector.broadcast %cst_67 : f32 to vector<25x8xf32>
      %192 = arith.mulf %190, %191 : vector<25x8xf32>
      %cst_68 = arith.constant 9.900000e-01 : f32
      %193 = vector.broadcast %cst_68 : f32 to vector<25x8xf32>
      %194 = arith.mulf %193, %166 : vector<25x8xf32>
      %cst_69 = arith.constant dense<0.000000e+00> : vector<25x8xf32>
      %195 = tpu.matmul %37, %192, %cst_69 {dimension_numbers = #tpu.dot_dimension_numbers<[1], [0], [0], [1], [0, 0, 1, 1], [], []>} : vector<25x25xf32>, vector<25x8xf32>, vector<25x8xf32> -> vector<25x8xf32>
      %cst_70 = arith.constant 1.000000e+00 : f32
      %196 = vector.broadcast %cst_70 : f32 to vector<25x8xf32>
      %197 = arith.mulf %196, %195 : vector<25x8xf32>
      %198 = arith.subf %194, %197 : vector<25x8xf32>
      %cst_71 = arith.constant 9.900000e-01 : f32
      %199 = vector.broadcast %cst_71 : f32 to vector<1x8xf32>
      %200 = arith.mulf %199, %173 : vector<1x8xf32>
      %cst_72 = arith.constant dense<0.000000e+00> : vector<8xf32>
      %201 = vector.multi_reduction <add>, %192, %cst_72 [0] : vector<25x8xf32> to vector<8xf32>
      %202 = vector.shape_cast %201 : vector<8xf32> to vector<1x8xf32>
      %cst_73 = arith.constant 1.000000e+00 : f32
      %203 = vector.broadcast %cst_73 : f32 to vector<1x8xf32>
      %204 = arith.mulf %203, %202 : vector<1x8xf32>
      %205 = arith.subf %200, %204 : vector<1x8xf32>
      %cst_74 = arith.constant 9.900000e-01 : f32
      %206 = vector.broadcast %cst_74 : f32 to vector<25x8xf32>
      %207 = arith.mulf %206, %176 : vector<25x8xf32>
      %208 = arith.addf %207, %192 : vector<25x8xf32>
      %209 = vector.broadcast %205 : vector<1x8xf32> to vector<25x8xf32>
      %210 = arith.addf %198, %209 : vector<25x8xf32>
      %211 = vector.broadcast %54 : vector<1x8xf32> to vector<25x8xf32>
      %212 = arith.addf %210, %211 : vector<25x8xf32>
      %cst_75 = arith.constant dense<0xFF800000> : vector<25xf32>
      %213 = vector.multi_reduction <maximumf>, %212, %cst_75 [1] : vector<25x8xf32> to vector<25xf32>
      %214 = vector.shape_cast %213 : vector<25xf32> to vector<25x1xf32>
      %215 = vector.broadcast %214 : vector<25x1xf32> to vector<25x8xf32>
      %216 = arith.subf %212, %215 : vector<25x8xf32>
      %217 = math.exp %216 : vector<25x8xf32>
      %cst_76 = arith.constant dense<0.000000e+00> : vector<25xf32>
      %218 = vector.multi_reduction <add>, %217, %cst_76 [1] : vector<25x8xf32> to vector<25xf32>
      %219 = vector.shape_cast %218 : vector<25xf32> to vector<25x1xf32>
      %220 = vector.broadcast %219 : vector<25x1xf32> to vector<25x8xf32>
      %221 = arith.divf %217, %220 : vector<25x8xf32>
      %222 = arith.subf %221, %48 : vector<25x8xf32>
      %cst_77 = arith.constant 4.000000e-02 : f32
      %223 = vector.broadcast %cst_77 : f32 to vector<25x8xf32>
      %224 = arith.mulf %222, %223 : vector<25x8xf32>
      %cst_78 = arith.constant 9.900000e-01 : f32
      %225 = vector.broadcast %cst_78 : f32 to vector<25x8xf32>
      %226 = arith.mulf %225, %198 : vector<25x8xf32>
      %cst_79 = arith.constant dense<0.000000e+00> : vector<25x8xf32>
      %227 = tpu.matmul %37, %224, %cst_79 {dimension_numbers = #tpu.dot_dimension_numbers<[1], [0], [0], [1], [0, 0, 1, 1], [], []>} : vector<25x25xf32>, vector<25x8xf32>, vector<25x8xf32> -> vector<25x8xf32>
      %cst_80 = arith.constant 1.000000e+00 : f32
      %228 = vector.broadcast %cst_80 : f32 to vector<25x8xf32>
      %229 = arith.mulf %228, %227 : vector<25x8xf32>
      %230 = arith.subf %226, %229 : vector<25x8xf32>
      %cst_81 = arith.constant 9.900000e-01 : f32
      %231 = vector.broadcast %cst_81 : f32 to vector<1x8xf32>
      %232 = arith.mulf %231, %205 : vector<1x8xf32>
      %cst_82 = arith.constant dense<0.000000e+00> : vector<8xf32>
      %233 = vector.multi_reduction <add>, %224, %cst_82 [0] : vector<25x8xf32> to vector<8xf32>
      %234 = vector.shape_cast %233 : vector<8xf32> to vector<1x8xf32>
      %cst_83 = arith.constant 1.000000e+00 : f32
      %235 = vector.broadcast %cst_83 : f32 to vector<1x8xf32>
      %236 = arith.mulf %235, %234 : vector<1x8xf32>
      %237 = arith.subf %232, %236 : vector<1x8xf32>
      %cst_84 = arith.constant 9.900000e-01 : f32
      %238 = vector.broadcast %cst_84 : f32 to vector<25x8xf32>
      %239 = arith.mulf %238, %208 : vector<25x8xf32>
      %240 = arith.addf %239, %224 : vector<25x8xf32>
      %241 = vector.broadcast %237 : vector<1x8xf32> to vector<25x8xf32>
      %242 = arith.addf %230, %241 : vector<25x8xf32>
      %243 = vector.broadcast %54 : vector<1x8xf32> to vector<25x8xf32>
      %244 = arith.addf %242, %243 : vector<25x8xf32>
      %cst_85 = arith.constant dense<0xFF800000> : vector<25xf32>
      %245 = vector.multi_reduction <maximumf>, %244, %cst_85 [1] : vector<25x8xf32> to vector<25xf32>
      %246 = vector.shape_cast %245 : vector<25xf32> to vector<25x1xf32>
      %247 = vector.broadcast %246 : vector<25x1xf32> to vector<25x8xf32>
      %248 = arith.subf %244, %247 : vector<25x8xf32>
      %249 = math.exp %248 : vector<25x8xf32>
      %cst_86 = arith.constant dense<0.000000e+00> : vector<25xf32>
      %250 = vector.multi_reduction <add>, %249, %cst_86 [1] : vector<25x8xf32> to vector<25xf32>
      %251 = vector.shape_cast %250 : vector<25xf32> to vector<25x1xf32>
      %252 = vector.broadcast %251 : vector<25x1xf32> to vector<25x8xf32>
      %253 = arith.divf %249, %252 : vector<25x8xf32>
      %254 = arith.subf %253, %48 : vector<25x8xf32>
      %cst_87 = arith.constant 4.000000e-02 : f32
      %255 = vector.broadcast %cst_87 : f32 to vector<25x8xf32>
      %256 = arith.mulf %254, %255 : vector<25x8xf32>
      %cst_88 = arith.constant 9.900000e-01 : f32
      %257 = vector.broadcast %cst_88 : f32 to vector<25x8xf32>
      %258 = arith.mulf %257, %230 : vector<25x8xf32>
      %cst_89 = arith.constant dense<0.000000e+00> : vector<25x8xf32>
      %259 = tpu.matmul %37, %256, %cst_89 {dimension_numbers = #tpu.dot_dimension_numbers<[1], [0], [0], [1], [0, 0, 1, 1], [], []>} : vector<25x25xf32>, vector<25x8xf32>, vector<25x8xf32> -> vector<25x8xf32>
      %cst_90 = arith.constant 1.000000e+00 : f32
      %260 = vector.broadcast %cst_90 : f32 to vector<25x8xf32>
      %261 = arith.mulf %260, %259 : vector<25x8xf32>
      %262 = arith.subf %258, %261 : vector<25x8xf32>
      %cst_91 = arith.constant 9.900000e-01 : f32
      %263 = vector.broadcast %cst_91 : f32 to vector<1x8xf32>
      %264 = arith.mulf %263, %237 : vector<1x8xf32>
      %cst_92 = arith.constant dense<0.000000e+00> : vector<8xf32>
      %265 = vector.multi_reduction <add>, %256, %cst_92 [0] : vector<25x8xf32> to vector<8xf32>
      %266 = vector.shape_cast %265 : vector<8xf32> to vector<1x8xf32>
      %cst_93 = arith.constant 1.000000e+00 : f32
      %267 = vector.broadcast %cst_93 : f32 to vector<1x8xf32>
      %268 = arith.mulf %267, %266 : vector<1x8xf32>
      %269 = arith.subf %264, %268 : vector<1x8xf32>
      %cst_94 = arith.constant 9.900000e-01 : f32
      %270 = vector.broadcast %cst_94 : f32 to vector<25x8xf32>
      %271 = arith.mulf %270, %240 : vector<25x8xf32>
      %272 = arith.addf %271, %256 : vector<25x8xf32>
      %273 = vector.broadcast %269 : vector<1x8xf32> to vector<25x8xf32>
      %274 = arith.addf %262, %273 : vector<25x8xf32>
      %275 = vector.broadcast %54 : vector<1x8xf32> to vector<25x8xf32>
      %276 = arith.addf %274, %275 : vector<25x8xf32>
      %cst_95 = arith.constant dense<0xFF800000> : vector<25xf32>
      %277 = vector.multi_reduction <maximumf>, %276, %cst_95 [1] : vector<25x8xf32> to vector<25xf32>
      %278 = vector.shape_cast %277 : vector<25xf32> to vector<25x1xf32>
      %279 = vector.broadcast %278 : vector<25x1xf32> to vector<25x8xf32>
      %280 = arith.subf %276, %279 : vector<25x8xf32>
      %281 = math.exp %280 : vector<25x8xf32>
      %cst_96 = arith.constant dense<0.000000e+00> : vector<25xf32>
      %282 = vector.multi_reduction <add>, %281, %cst_96 [1] : vector<25x8xf32> to vector<25xf32>
      %283 = vector.shape_cast %282 : vector<25xf32> to vector<25x1xf32>
      %284 = vector.broadcast %283 : vector<25x1xf32> to vector<25x8xf32>
      %285 = arith.divf %281, %284 : vector<25x8xf32>
      %286 = arith.subf %285, %48 : vector<25x8xf32>
      %cst_97 = arith.constant 4.000000e-02 : f32
      %287 = vector.broadcast %cst_97 : f32 to vector<25x8xf32>
      %288 = arith.mulf %286, %287 : vector<25x8xf32>
      %cst_98 = arith.constant 9.900000e-01 : f32
      %289 = vector.broadcast %cst_98 : f32 to vector<25x8xf32>
      %290 = arith.mulf %289, %262 : vector<25x8xf32>
      %cst_99 = arith.constant dense<0.000000e+00> : vector<25x8xf32>
      %291 = tpu.matmul %37, %288, %cst_99 {dimension_numbers = #tpu.dot_dimension_numbers<[1], [0], [0], [1], [0, 0, 1, 1], [], []>} : vector<25x25xf32>, vector<25x8xf32>, vector<25x8xf32> -> vector<25x8xf32>
      %cst_100 = arith.constant 1.000000e+00 : f32
      %292 = vector.broadcast %cst_100 : f32 to vector<25x8xf32>
      %293 = arith.mulf %292, %291 : vector<25x8xf32>
      %294 = arith.subf %290, %293 : vector<25x8xf32>
      %cst_101 = arith.constant 9.900000e-01 : f32
      %295 = vector.broadcast %cst_101 : f32 to vector<1x8xf32>
      %296 = arith.mulf %295, %269 : vector<1x8xf32>
      %cst_102 = arith.constant dense<0.000000e+00> : vector<8xf32>
      %297 = vector.multi_reduction <add>, %288, %cst_102 [0] : vector<25x8xf32> to vector<8xf32>
      %298 = vector.shape_cast %297 : vector<8xf32> to vector<1x8xf32>
      %cst_103 = arith.constant 1.000000e+00 : f32
      %299 = vector.broadcast %cst_103 : f32 to vector<1x8xf32>
      %300 = arith.mulf %299, %298 : vector<1x8xf32>
      %301 = arith.subf %296, %300 : vector<1x8xf32>
      %cst_104 = arith.constant 9.900000e-01 : f32
      %302 = vector.broadcast %cst_104 : f32 to vector<25x8xf32>
      %303 = arith.mulf %302, %272 : vector<25x8xf32>
      %304 = arith.addf %303, %288 : vector<25x8xf32>
      %305 = vector.broadcast %301 : vector<1x8xf32> to vector<25x8xf32>
      %306 = arith.addf %294, %305 : vector<25x8xf32>
      %307 = vector.broadcast %54 : vector<1x8xf32> to vector<25x8xf32>
      %308 = arith.addf %306, %307 : vector<25x8xf32>
      %cst_105 = arith.constant dense<0xFF800000> : vector<25xf32>
      %309 = vector.multi_reduction <maximumf>, %308, %cst_105 [1] : vector<25x8xf32> to vector<25xf32>
      %310 = vector.shape_cast %309 : vector<25xf32> to vector<25x1xf32>
      %311 = vector.broadcast %310 : vector<25x1xf32> to vector<25x8xf32>
      %312 = arith.subf %308, %311 : vector<25x8xf32>
      %313 = math.exp %312 : vector<25x8xf32>
      %cst_106 = arith.constant dense<0.000000e+00> : vector<25xf32>
      %314 = vector.multi_reduction <add>, %313, %cst_106 [1] : vector<25x8xf32> to vector<25xf32>
      %315 = vector.shape_cast %314 : vector<25xf32> to vector<25x1xf32>
      %316 = vector.broadcast %315 : vector<25x1xf32> to vector<25x8xf32>
      %317 = arith.divf %313, %316 : vector<25x8xf32>
      %318 = arith.subf %317, %48 : vector<25x8xf32>
      %cst_107 = arith.constant 4.000000e-02 : f32
      %319 = vector.broadcast %cst_107 : f32 to vector<25x8xf32>
      %320 = arith.mulf %318, %319 : vector<25x8xf32>
      %cst_108 = arith.constant 9.900000e-01 : f32
      %321 = vector.broadcast %cst_108 : f32 to vector<25x8xf32>
      %322 = arith.mulf %321, %294 : vector<25x8xf32>
      %cst_109 = arith.constant dense<0.000000e+00> : vector<25x8xf32>
      %323 = tpu.matmul %37, %320, %cst_109 {dimension_numbers = #tpu.dot_dimension_numbers<[1], [0], [0], [1], [0, 0, 1, 1], [], []>} : vector<25x25xf32>, vector<25x8xf32>, vector<25x8xf32> -> vector<25x8xf32>
      %cst_110 = arith.constant 1.000000e+00 : f32
      %324 = vector.broadcast %cst_110 : f32 to vector<25x8xf32>
      %325 = arith.mulf %324, %323 : vector<25x8xf32>
      %326 = arith.subf %322, %325 : vector<25x8xf32>
      %cst_111 = arith.constant 9.900000e-01 : f32
      %327 = vector.broadcast %cst_111 : f32 to vector<1x8xf32>
      %328 = arith.mulf %327, %301 : vector<1x8xf32>
      %cst_112 = arith.constant dense<0.000000e+00> : vector<8xf32>
      %329 = vector.multi_reduction <add>, %320, %cst_112 [0] : vector<25x8xf32> to vector<8xf32>
      %330 = vector.shape_cast %329 : vector<8xf32> to vector<1x8xf32>
      %cst_113 = arith.constant 1.000000e+00 : f32
      %331 = vector.broadcast %cst_113 : f32 to vector<1x8xf32>
      %332 = arith.mulf %331, %330 : vector<1x8xf32>
      %333 = arith.subf %328, %332 : vector<1x8xf32>
      %cst_114 = arith.constant 9.900000e-01 : f32
      %334 = vector.broadcast %cst_114 : f32 to vector<25x8xf32>
      %335 = arith.mulf %334, %304 : vector<25x8xf32>
      %336 = arith.addf %335, %320 : vector<25x8xf32>
      %337 = vector.broadcast %333 : vector<1x8xf32> to vector<25x8xf32>
      %338 = arith.addf %326, %337 : vector<25x8xf32>
      %339 = vector.broadcast %54 : vector<1x8xf32> to vector<25x8xf32>
      %340 = arith.addf %338, %339 : vector<25x8xf32>
      %cst_115 = arith.constant dense<0xFF800000> : vector<25xf32>
      %341 = vector.multi_reduction <maximumf>, %340, %cst_115 [1] : vector<25x8xf32> to vector<25xf32>
      %342 = vector.shape_cast %341 : vector<25xf32> to vector<25x1xf32>
      %343 = vector.broadcast %342 : vector<25x1xf32> to vector<25x8xf32>
      %344 = arith.subf %340, %343 : vector<25x8xf32>
      %345 = math.exp %344 : vector<25x8xf32>
      %cst_116 = arith.constant dense<0.000000e+00> : vector<25xf32>
      %346 = vector.multi_reduction <add>, %345, %cst_116 [1] : vector<25x8xf32> to vector<25xf32>
      %347 = vector.shape_cast %346 : vector<25xf32> to vector<25x1xf32>
      %348 = vector.broadcast %347 : vector<25x1xf32> to vector<25x8xf32>
      %349 = arith.divf %345, %348 : vector<25x8xf32>
      %350 = arith.subf %349, %48 : vector<25x8xf32>
      %cst_117 = arith.constant 4.000000e-02 : f32
      %351 = vector.broadcast %cst_117 : f32 to vector<25x8xf32>
      %352 = arith.mulf %350, %351 : vector<25x8xf32>
      %cst_118 = arith.constant 9.900000e-01 : f32
      %353 = vector.broadcast %cst_118 : f32 to vector<25x8xf32>
      %354 = arith.mulf %353, %326 : vector<25x8xf32>
      %cst_119 = arith.constant dense<0.000000e+00> : vector<25x8xf32>
      %355 = tpu.matmul %37, %352, %cst_119 {dimension_numbers = #tpu.dot_dimension_numbers<[1], [0], [0], [1], [0, 0, 1, 1], [], []>} : vector<25x25xf32>, vector<25x8xf32>, vector<25x8xf32> -> vector<25x8xf32>
      %cst_120 = arith.constant 1.000000e+00 : f32
      %356 = vector.broadcast %cst_120 : f32 to vector<25x8xf32>
      %357 = arith.mulf %356, %355 : vector<25x8xf32>
      %358 = arith.subf %354, %357 : vector<25x8xf32>
      %cst_121 = arith.constant 9.900000e-01 : f32
      %359 = vector.broadcast %cst_121 : f32 to vector<1x8xf32>
      %360 = arith.mulf %359, %333 : vector<1x8xf32>
      %cst_122 = arith.constant dense<0.000000e+00> : vector<8xf32>
      %361 = vector.multi_reduction <add>, %352, %cst_122 [0] : vector<25x8xf32> to vector<8xf32>
      %362 = vector.shape_cast %361 : vector<8xf32> to vector<1x8xf32>
      %cst_123 = arith.constant 1.000000e+00 : f32
      %363 = vector.broadcast %cst_123 : f32 to vector<1x8xf32>
      %364 = arith.mulf %363, %362 : vector<1x8xf32>
      %365 = arith.subf %360, %364 : vector<1x8xf32>
      %cst_124 = arith.constant 9.900000e-01 : f32
      %366 = vector.broadcast %cst_124 : f32 to vector<25x8xf32>
      %367 = arith.mulf %366, %336 : vector<25x8xf32>
      %368 = arith.addf %367, %352 : vector<25x8xf32>
      %369 = vector.broadcast %365 : vector<1x8xf32> to vector<25x8xf32>
      %370 = arith.addf %358, %369 : vector<25x8xf32>
      %371 = vector.broadcast %54 : vector<1x8xf32> to vector<25x8xf32>
      %372 = arith.addf %370, %371 : vector<25x8xf32>
      %cst_125 = arith.constant dense<0xFF800000> : vector<25xf32>
      %373 = vector.multi_reduction <maximumf>, %372, %cst_125 [1] : vector<25x8xf32> to vector<25xf32>
      %374 = vector.shape_cast %373 : vector<25xf32> to vector<25x1xf32>
      %375 = vector.broadcast %374 : vector<25x1xf32> to vector<25x8xf32>
      %376 = arith.subf %372, %375 : vector<25x8xf32>
      %377 = math.exp %376 : vector<25x8xf32>
      %cst_126 = arith.constant dense<0.000000e+00> : vector<25xf32>
      %378 = vector.multi_reduction <add>, %377, %cst_126 [1] : vector<25x8xf32> to vector<25xf32>
      %379 = vector.shape_cast %378 : vector<25xf32> to vector<25x1xf32>
      %380 = vector.broadcast %379 : vector<25x1xf32> to vector<25x8xf32>
      %381 = arith.divf %377, %380 : vector<25x8xf32>
      %382 = arith.subf %381, %48 : vector<25x8xf32>
      %cst_127 = arith.constant 4.000000e-02 : f32
      %383 = vector.broadcast %cst_127 : f32 to vector<25x8xf32>
      %384 = arith.mulf %382, %383 : vector<25x8xf32>
      %cst_128 = arith.constant 9.900000e-01 : f32
      %385 = vector.broadcast %cst_128 : f32 to vector<25x8xf32>
      %386 = arith.mulf %385, %358 : vector<25x8xf32>
      %cst_129 = arith.constant dense<0.000000e+00> : vector<25x8xf32>
      %387 = tpu.matmul %37, %384, %cst_129 {dimension_numbers = #tpu.dot_dimension_numbers<[1], [0], [0], [1], [0, 0, 1, 1], [], []>} : vector<25x25xf32>, vector<25x8xf32>, vector<25x8xf32> -> vector<25x8xf32>
      %cst_130 = arith.constant 1.000000e+00 : f32
      %388 = vector.broadcast %cst_130 : f32 to vector<25x8xf32>
      %389 = arith.mulf %388, %387 : vector<25x8xf32>
      %390 = arith.subf %386, %389 : vector<25x8xf32>
      %cst_131 = arith.constant 9.900000e-01 : f32
      %391 = vector.broadcast %cst_131 : f32 to vector<1x8xf32>
      %392 = arith.mulf %391, %365 : vector<1x8xf32>
      %cst_132 = arith.constant dense<0.000000e+00> : vector<8xf32>
      %393 = vector.multi_reduction <add>, %384, %cst_132 [0] : vector<25x8xf32> to vector<8xf32>
      %394 = vector.shape_cast %393 : vector<8xf32> to vector<1x8xf32>
      %cst_133 = arith.constant 1.000000e+00 : f32
      %395 = vector.broadcast %cst_133 : f32 to vector<1x8xf32>
      %396 = arith.mulf %395, %394 : vector<1x8xf32>
      %397 = arith.subf %392, %396 : vector<1x8xf32>
      %cst_134 = arith.constant 9.900000e-01 : f32
      %398 = vector.broadcast %cst_134 : f32 to vector<25x8xf32>
      %399 = arith.mulf %398, %368 : vector<25x8xf32>
      %400 = arith.addf %399, %384 : vector<25x8xf32>
      scf.yield %390, %397, %400 : vector<25x8xf32>, vector<1x8xf32>, vector<25x8xf32>
    }
    %cst_27 = arith.constant 0.366032332 : f32
    %59 = vector.broadcast %cst_27 : f32 to vector<15x8xf32>
    %60 = arith.mulf %59, %41 : vector<15x8xf32>
    %cst_28 = arith.constant dense<0.000000e+00> : vector<15x8xf32>
    %61 = tpu.matmul %38, %58#2, %cst_28 {dimension_numbers = #tpu.dot_dimension_numbers<[1], [0], [0], [1], [0, 0, 1, 1], [], []>} : vector<15x25xf32>, vector<25x8xf32>, vector<15x8xf32> -> vector<15x8xf32>
    %cst_29 = arith.constant 1.000000e+00 : f32
    %62 = vector.broadcast %cst_29 : f32 to vector<15x8xf32>
    %63 = arith.mulf %62, %61 : vector<15x8xf32>
    %64 = arith.subf %60, %63 : vector<15x8xf32>
    %65 = vector.broadcast %58#1 : vector<1x8xf32> to vector<15x8xf32>
    %66 = arith.addf %64, %65 : vector<15x8xf32>
    %67 = vector.broadcast %54 : vector<1x8xf32> to vector<15x8xf32>
    %68 = arith.addf %66, %67 : vector<15x8xf32>
    %cst_30 = arith.constant dense<0xFF800000> : vector<15xf32>
    %69 = vector.multi_reduction <maximumf>, %68, %cst_30 [1] : vector<15x8xf32> to vector<15xf32>
    %70 = vector.shape_cast %69 : vector<15xf32> to vector<15x1xf32>
    %71 = vector.broadcast %70 : vector<15x1xf32> to vector<15x8xf32>
    %72 = arith.subf %68, %71 : vector<15x8xf32>
    %73 = math.exp %72 : vector<15x8xf32>
    %cst_31 = arith.constant dense<0.000000e+00> : vector<15xf32>
    %74 = vector.multi_reduction <add>, %73, %cst_31 [1] : vector<15x8xf32> to vector<15xf32>
    %75 = vector.shape_cast %74 : vector<15xf32> to vector<15x1xf32>
    %76 = vector.broadcast %75 : vector<15x1xf32> to vector<15x8xf32>
    %77 = arith.divf %73, %76 : vector<15x8xf32>
    %c0_32 = arith.constant 0 : index
    %c0_33 = arith.constant 0 : index
    %c0_34 = arith.constant 0 : index
    %78 = vector.load %arg6[%c0_32, %c0_33, %c0_34] : memref<1x15x8xf32, #tpu.memory_space<vmem>>, vector<1x15x8xf32>
    %79 = vector.shape_cast %78 : vector<1x15x8xf32> to vector<15x8xf32>
    %80 = vector.shape_cast %77 : vector<15x8xf32> to vector<1x15x8xf32>
    tpu.vector_store %arg6[%c0_32, %c0_33, %c0_34], %80 {strides = array<i32>} : memref<1x15x8xf32, #tpu.memory_space<vmem>>, vector<1x15x8xf32>,
    return
  }
  func.func @transform_0(%arg0: i32) -> (i32, i32, i32) {
    %c0_i32 = arith.constant 0 : i32
    %c0_i32_0 = arith.constant 0 : i32
    %c0_i32_1 = arith.constant 0 : i32
    return %arg0, %c0_i32, %c0_i32_0 : i32, i32, i32
  }
  func.func @transform_1(%arg0: i32) -> (i32, i32, i32) {
    %c0_i32 = arith.constant 0 : i32
    %c0_i32_0 = arith.constant 0 : i32
    %c0_i32_1 = arith.constant 0 : i32
    return %arg0, %c0_i32, %c0_i32_0 : i32, i32, i32
  }
  func.func @transform_2(%arg0: i32) -> (i32, i32, i32) {
    %c0_i32 = arith.constant 0 : i32
    %c0_i32_0 = arith.constant 0 : i32
    %c0_i32_1 = arith.constant 0 : i32
    return %arg0, %c0_i32, %c0_i32_0 : i32, i32, i32
  }
  func.func @transform_3(%arg0: i32) -> (i32, i32) {
    %c0_i32 = arith.constant 0 : i32
    %c0_i32_0 = arith.constant 0 : i32
    %c0_i32_1 = arith.constant 0 : i32
    return %c0_i32, %c0_i32_0 : i32, i32
  }
  func.func @transform_4(%arg0: i32) -> (i32, i32) {
    %c0_i32 = arith.constant 0 : i32
    %c0_i32_0 = arith.constant 0 : i32
    %c0_i32_1 = arith.constant 0 : i32
    return %c0_i32, %c0_i32_0 : i32, i32
  }
  func.func @transform_5(%arg0: i32) -> (i32, i32, i32) {
    %c0_i32 = arith.constant 0 : i32
    %c0_i32_0 = arith.constant 0 : i32
    %c0_i32_1 = arith.constant 0 : i32
    return %arg0, %c0_i32, %c0_i32_0 : i32, i32, i32
  }
}

</mosaic_0001>

<bundles_post_ra>
// kernel: tpu_custom_call.1
= control target key start
LH: loop header
LB: loop body
LE: loop exit
PB: predicated region body
PF: predicated region fallthrough
CT: control target
= control target key end

     0   :  { %v20_v0 = vlaneseq  ;;  %v3496_v6 = vmov -1e+30   ;;  %v3497_v15 = vmov 0.0   ;;  %s5245_s5 = inlined_call_operand.vmem [shape: f32[1,15,8], index: 5, kind: output, shape index: {}]   ;;  %s5246_s0 = inlined_call_operand.vmem [shape: f32[1,25,512], index: 0, kind: input, shape index: {}]   ;;  %s5247_s1 = inlined_call_operand.vmem [shape: f32[1,15,512], index: 1, kind: input, shape index: {}]   ;;  %s5248_s3 = inlined_call_operand.vmem [shape: f32[128,8], index: 3, kind: input, shape index: {}]   ;;  %s5249_s2 = inlined_call_operand.vmem [shape: s32[1,25,1], index: 2, kind: input, shape index: {}]   ;;  %s5250_s4 = inlined_call_operand.vmem [shape: f32[1,8], index: 4, kind: input, shape index: {}]  }
   0x2   :  { %v3529_v1 = vshrl.u32 %v20_v0, 7  ;;  %v3531_v2 = vand.u32 127, %v20_v0 }
   0x4   :  { %5262 = vst [vmem:[#allocation2_spill] sm:$0xff] %v3531_v2  ;;  %v68_v3 = vadd.s32 376, %v3529_v1  ;;  %v3535_v4 = vmul.u32 16, %v3531_v2  ;;  %v152_v5 = vadd.s32 1, %v3531_v2  ;;  %vm1044_vm0 = vcmp.lt.s32.totalorder %v3531_v2, 5 }
   0x5   :  { %v3539_v7 = vsel %vm1044_vm0, 0.0, %v3496_v6  ;;  %v67_v8 = vadd.s32 368, %v3529_v1  ;;  %v84_v9 = vadd.s32 504, %v3529_v1  ;;  %v36_v10 = vadd.s32 120, %v3529_v1 }
   0x6   :  { %5263 = vst [vmem:[#allocation3_spill] sm:$0xff] %v3539_v7  ;;  %vm135_vm1 = vcmp.ge.s32.totalorder %v68_v3, %v3535_v4  ;;  %v3545_v11 = vmul.u32 16, %v152_v5  ;;  %v52_v12 = vadd.s32 248, %v3529_v1  ;;  %v66_v13 = vadd.s32 360, %v3529_v1 }
   0x7   :  { %vm134_vm2 = vcmp.ge.s32.totalorder %v67_v8, %v3535_v4  ;;  %vm151_vm3 = vcmp.ge.s32.totalorder %v84_v9, %v3535_v4  ;;  %vm103_vm4 = vcmp.ge.s32.totalorder %v36_v10, %v3535_v4  ;;  %v83_v14 = vadd.s32 496, %v3529_v1 }
   0x8   :  { %vm201_vm5 = vcmp.lt.s32.totalorder %v68_v3, %v3545_v11  ;;  %vm200_vm6 = vcmp.lt.s32.totalorder %v67_v8, %v3545_v11  ;;  %vm217_vm7 = vcmp.lt.s32.totalorder %v84_v9, %v3545_v11  ;;  %vm169_vm8 = vcmp.lt.s32.totalorder %v36_v10, %v3545_v11 }
   0x9   :  { %vm265_vm9 = vmand %vm135_vm1, %vm201_vm5  ;;  %vm119_vm10 = vcmp.ge.s32.totalorder %v52_v12, %v3535_v4  ;;  %vm185_vm11 = vcmp.lt.s32.totalorder %v52_v12, %v3545_v11  ;;  %vm133_vm12 = vcmp.ge.s32.totalorder %v66_v13, %v3535_v4  ;;  %vm199_vm13 = vcmp.lt.s32.totalorder %v66_v13, %v3545_v11 }
   0xa   :  { %v3036_v16 = vsel %vm265_vm9, 1.0, %v3497_v15  ;;  %vm264_vm14 = vmand %vm134_vm2, %vm200_vm6  ;;  %vm150_vm15 = vcmp.ge.s32.totalorder %v83_v14, %v3535_v4  ;;  %vm216_vm0 = vcmp.lt.s32.totalorder %v83_v14, %v3545_v11  ;;  %v35_v17 = vadd.s32 112, %v3529_v1 }
   0xb   :  { %v3567_v18 = vmul.f32 0.0625, %v3036_v16  ;;  %v3035_v19 = vsel %vm264_vm14, 1.0, %v3497_v15  ;;  %vm281_vm1 = vmand %vm151_vm3, %vm217_vm7  ;;  %v51_v20 = vadd.s32 240, %v3529_v1  ;;  %v65_v21 = vadd.s32 352, %v3529_v1 }
   0xc   :  { %v3576_v22 = vmul.f32 0.0625, %v3035_v19  ;;  %v3052_v23 = vsel %vm281_vm1, 1.0, %v3497_v15  ;;  %vm233_vm2 = vmand %vm103_vm4, %vm169_vm8  ;;  %vm102_vm5 = vcmp.ge.s32.totalorder %v35_v17, %v3535_v4  ;;  %vm168_vm6 = vcmp.lt.s32.totalorder %v35_v17, %v3545_v11 }
   0xd   :  { %548 = vmatpush.msra.mxu2 %v3567_v18  ;;  %v3586_v24 = vmul.f32 0.0625, %v3052_v23  ;;  %v3004_v25 = vsel %vm233_vm2, 1.0, %v3497_v15  ;;  %vm249_vm3 = vmand %vm119_vm10, %vm185_vm11  ;;  %vm118_vm7 = vcmp.ge.s32.totalorder %v51_v20, %v3535_v4  ;;  %vm184_vm9 = vcmp.lt.s32.totalorder %v51_v20, %v3545_v11 }
   0xe   :  { %v3595_v26 = vmul.f32 0.0625, %v3004_v25  ;;  %v3020_v27 = vsel %vm249_vm3, 1.0, %v3497_v15  ;;  %vm263_vm4 = vmand %vm133_vm12, %vm199_vm13  ;;  %vm132_vm8 = vcmp.ge.s32.totalorder %v65_v21, %v3535_v4  ;;  %vm198_vm14 = vcmp.lt.s32.totalorder %v65_v21, %v3545_v11 }
   0xf   :  { %549 = vmatpush.msra.mxu2 %v3576_v22  ;;  %577 = vmatpush.msra.mxu3 %v3586_v24  ;;  %v3606_v28 = vmul.f32 0.0625, %v3020_v27  ;;  %v3034_v29 = vsel %vm263_vm4, 1.0, %v3497_v15  ;;  %vm280_vm10 = vmand %vm150_vm15, %vm216_vm0  ;;  %v82_v30 = vadd.s32 488, %v3529_v1  ;;  %v34_v31 = vadd.s32 104, %v3529_v1 }
  0x10   :  { %490 = vmatpush.msra.mxu0 %v3595_v26  ;;  %v3616_v32 = vmul.f32 0.0625, %v3034_v29  ;;  %v3051_v33 = vsel %vm280_vm10, 1.0, %v3497_v15  ;;  %vm232_vm11 = vmand %vm102_vm5, %vm168_vm6  ;;  %v50_v34 = vadd.s32 232, %v3529_v1  ;;  %v64_v35 = vadd.s32 344, %v3529_v1 }
  0x11   :  { %519 = vmatpush.msra.mxu1 %v3606_v28  ;;  %v3626_v36 = vmul.f32 0.0625, %v3051_v33  ;;  %v3003_v37 = vsel %vm232_vm11, 1.0, %v3497_v15  ;;  %vm248_vm12 = vmand %vm118_vm7, %vm184_vm9  ;;  %vm149_vm13 = vcmp.ge.s32.totalorder %v82_v30, %v3535_v4  ;;  %vm215_vm15 = vcmp.lt.s32.totalorder %v82_v30, %v3545_v11 }
  0x12   :  { %550 = vmatpush.msra.mxu2 %v3616_v32  ;;  %v3636_v38 = vmul.f32 0.0625, %v3003_v37  ;;  %v3019_v39 = vsel %vm248_vm12, 1.0, %v3497_v15  ;;  %vm262_vm0 = vmand %vm132_vm8, %vm198_vm14  ;;  %vm101_vm1 = vcmp.ge.s32.totalorder %v34_v31, %v3535_v4  ;;  %vm167_vm2 = vcmp.lt.s32.totalorder %v34_v31, %v3545_v11 }
  0x13   :  { %578 = vmatpush.msra.mxu3 %v3626_v36  ;;  %v3646_v40 = vmul.f32 0.0625, %v3019_v39  ;;  %v3033_v41 = vsel %vm262_vm0, 1.0, %v3497_v15  ;;  %vm279_vm5 = vmand %vm149_vm13, %vm215_vm15  ;;  %vm117_vm6 = vcmp.ge.s32.totalorder %v50_v34, %v3535_v4  ;;  %vm183_vm3 = vcmp.lt.s32.totalorder %v50_v34, %v3545_v11 }
  0x14   :  { %491 = vmatpush.msra.mxu0 %v3636_v38  ;;  %v3652_v42 = vmul.f32 0.0625, %v3033_v41  ;;  %v3050_v43 = vsel %vm279_vm5, 1.0, %v3497_v15  ;;  %vm231_vm7 = vmand %vm101_vm1, %vm167_vm2  ;;  %vm131_vm9 = vcmp.ge.s32.totalorder %v64_v35, %v3535_v4  ;;  %vm197_vm4 = vcmp.lt.s32.totalorder %v64_v35, %v3545_v11 }
  0x15   :  { %520 = vmatpush.msra.mxu1 %v3646_v40  ;;  %v3658_v44 = vmul.f32 0.0625, %v3050_v43  ;;  %v3002_v45 = vsel %vm231_vm7, 1.0, %v3497_v15  ;;  %vm247_vm8 = vmand %vm117_vm6, %vm183_vm3  ;;  %v81_v46 = vadd.s32 480, %v3529_v1  ;;  %v33_v47 = vadd.s32 96, %v3529_v1 }
  0x16   :  { %551 = vmatpush.msra.mxu2 %v3652_v42  ;;  %v3664_v48 = vmul.f32 0.0625, %v3002_v45  ;;  %v3018_v49 = vsel %vm247_vm8, 1.0, %v3497_v15  ;;  %vm261_vm14 = vmand %vm131_vm9, %vm197_vm4  ;;  %v49_v50 = vadd.s32 224, %v3529_v1  ;;  %v63_v51 = vadd.s32 336, %v3529_v1 }
  0x17   :  { %579 = vmatpush.msra.mxu3 %v3658_v44  ;;  %v3670_v52 = vmul.f32 0.0625, %v3018_v49  ;;  %v3032_v53 = vsel %vm261_vm14, 1.0, %v3497_v15  ;;  %vm148_vm10 = vcmp.ge.s32.totalorder %v81_v46, %v3535_v4  ;;  %vm214_vm11 = vcmp.lt.s32.totalorder %v81_v46, %v3545_v11 }
  0x18   :  { %492 = vmatpush.msra.mxu0 %v3664_v48  ;;  %v3676_v54 = vmul.f32 0.0625, %v3032_v53  ;;  %vm278_vm12 = vmand %vm148_vm10, %vm214_vm11  ;;  %vm100_vm13 = vcmp.ge.s32.totalorder %v33_v47, %v3535_v4  ;;  %vm166_vm15 = vcmp.lt.s32.totalorder %v33_v47, %v3545_v11  ;;  %vm116_vm0 = vcmp.ge.s32.totalorder %v49_v50, %v3535_v4 }
  0x19   :  { %521 = vmatpush.msra.mxu1 %v3670_v52  ;;  %v3049_v55 = vsel %vm278_vm12, 1.0, %v3497_v15  ;;  %vm230_vm1 = vmand %vm100_vm13, %vm166_vm15  ;;  %vm182_vm2 = vcmp.lt.s32.totalorder %v49_v50, %v3545_v11  ;;  %vm130_vm5 = vcmp.ge.s32.totalorder %v63_v51, %v3535_v4  ;;  %vm196_vm6 = vcmp.lt.s32.totalorder %v63_v51, %v3545_v11 }
  0x1a   :  { %552 = vmatpush.msra.mxu2 %v3676_v54  ;;  %v3687_v56 = vmul.f32 0.0625, %v3049_v55  ;;  %v3001_v57 = vsel %vm230_vm1, 1.0, %v3497_v15  ;;  %vm246_vm3 = vmand %vm116_vm0, %vm182_vm2  ;;  %v80_v58 = vadd.s32 472, %v3529_v1  ;;  %v32_v59 = vadd.s32 88, %v3529_v1 }
  0x1b   :  { %v3692_v60 = vmul.f32 0.0625, %v3001_v57  ;;  %v3017_v61 = vsel %vm246_vm3, 1.0, %v3497_v15  ;;  %vm260_vm7 = vmand %vm130_vm5, %vm196_vm6  ;;  %v48_v62 = vadd.s32 216, %v3529_v1  ;;  %v62_v63 = vadd.s32 328, %v3529_v1 }
  0x1c   :  { %580 = vmatpush.msra.mxu3 %v3687_v56  ;;  %v3698_v0 = vmul.f32 0.0625, %v3017_v61  ;;  %v3031_v3 = vsel %vm260_vm7, 1.0, %v3497_v15  ;;  %vm147_vm9 = vcmp.ge.s32.totalorder %v80_v58, %v3535_v4  ;;  %vm213_vm4 = vcmp.lt.s32.totalorder %v80_v58, %v3545_v11 }
  0x1d   :  { %493 = vmatpush.msra.mxu0 %v3692_v60  ;;  %v3704_v5 = vmul.f32 0.0625, %v3031_v3  ;;  %vm277_vm8 = vmand %vm147_vm9, %vm213_vm4  ;;  %vm99_vm14 = vcmp.ge.s32.totalorder %v32_v59, %v3535_v4  ;;  %vm165_vm10 = vcmp.lt.s32.totalorder %v32_v59, %v3545_v11  ;;  %vm115_vm11 = vcmp.ge.s32.totalorder %v48_v62, %v3535_v4 }
  0x1e   :  { %522 = vmatpush.msra.mxu1 %v3698_v0  ;;  %v3048_v6 = vsel %vm277_vm8, 1.0, %v3497_v15  ;;  %vm229_vm12 = vmand %vm99_vm14, %vm165_vm10  ;;  %vm181_vm13 = vcmp.lt.s32.totalorder %v48_v62, %v3545_v11  ;;  %vm129_vm15 = vcmp.ge.s32.totalorder %v62_v63, %v3535_v4  ;;  %vm195_vm0 = vcmp.lt.s32.totalorder %v62_v63, %v3545_v11 }
  0x1f   :  { %553 = vmatpush.msra.mxu2 %v3704_v5  ;;  %v3715_v8 = vmul.f32 0.0625, %v3048_v6  ;;  %v3000_v9 = vsel %vm229_vm12, 1.0, %v3497_v15  ;;  %vm245_vm1 = vmand %vm115_vm11, %vm181_vm13  ;;  %v79_v10 = vadd.s32 464, %v3529_v1  ;;  %v31_v12 = vadd.s32 80, %v3529_v1 }
  0x20   :  { %v3720_v13 = vmul.f32 0.0625, %v3000_v9  ;;  %v3016_v14 = vsel %vm245_vm1, 1.0, %v3497_v15  ;;  %vm259_vm2 = vmand %vm129_vm15, %vm195_vm0  ;;  %v47_v16 = vadd.s32 208, %v3529_v1  ;;  %v61_v17 = vadd.s32 320, %v3529_v1 }
  0x21   :  { %581 = vmatpush.msra.mxu3 %v3715_v8  ;;  %v3726_v19 = vmul.f32 0.0625, %v3016_v14  ;;  %v3030_v20 = vsel %vm259_vm2, 1.0, %v3497_v15  ;;  %vm146_vm5 = vcmp.ge.s32.totalorder %v79_v10, %v3535_v4  ;;  %vm212_vm6 = vcmp.lt.s32.totalorder %v79_v10, %v3545_v11 }
  0x22   :  { %494 = vmatpush.msra.mxu0 %v3720_v13  ;;  %v3732_v21 = vmul.f32 0.0625, %v3030_v20  ;;  %vm276_vm3 = vmand %vm146_vm5, %vm212_vm6  ;;  %vm98_vm7 = vcmp.ge.s32.totalorder %v31_v12, %v3535_v4  ;;  %vm164_vm9 = vcmp.lt.s32.totalorder %v31_v12, %v3545_v11  ;;  %vm114_vm4 = vcmp.ge.s32.totalorder %v47_v16, %v3535_v4 }
  0x23   :  { %523 = vmatpush.msra.mxu1 %v3726_v19  ;;  %v3047_v23 = vsel %vm276_vm3, 1.0, %v3497_v15  ;;  %vm228_vm8 = vmand %vm98_vm7, %vm164_vm9  ;;  %vm180_vm14 = vcmp.lt.s32.totalorder %v47_v16, %v3545_v11  ;;  %vm128_vm10 = vcmp.ge.s32.totalorder %v61_v17, %v3535_v4  ;;  %vm194_vm11 = vcmp.lt.s32.totalorder %v61_v17, %v3545_v11 }
  0x24   :  { %554 = vmatpush.msra.mxu2 %v3732_v21  ;;  %v3743_v25 = vmul.f32 0.0625, %v3047_v23  ;;  %v2999_v27 = vsel %vm228_vm8, 1.0, %v3497_v15  ;;  %vm244_vm12 = vmand %vm114_vm4, %vm180_vm14  ;;  %v78_v29 = vadd.s32 456, %v3529_v1  ;;  %v30_v30 = vadd.s32 72, %v3529_v1 }
  0x25   :  { %v3748_v31 = vmul.f32 0.0625, %v2999_v27  ;;  %v3015_v33 = vsel %vm244_vm12, 1.0, %v3497_v15  ;;  %vm258_vm13 = vmand %vm128_vm10, %vm194_vm11  ;;  %v46_v34 = vadd.s32 200, %v3529_v1  ;;  %v60_v35 = vadd.s32 312, %v3529_v1 }
  0x26   :  { %582 = vmatpush.msra.mxu3 %v3743_v25  ;;  %v3754_v37 = vmul.f32 0.0625, %v3015_v33  ;;  %v3029_v39 = vsel %vm258_vm13, 1.0, %v3497_v15  ;;  %vm145_vm15 = vcmp.ge.s32.totalorder %v78_v29, %v3535_v4  ;;  %vm211_vm0 = vcmp.lt.s32.totalorder %v78_v29, %v3545_v11 }
  0x27   :  { %495 = vmatpush.msra.mxu0 %v3748_v31  ;;  %v3760_v41 = vmul.f32 0.0625, %v3029_v39  ;;  %vm275_vm1 = vmand %vm145_vm15, %vm211_vm0  ;;  %vm97_vm2 = vcmp.ge.s32.totalorder %v30_v30, %v3535_v4  ;;  %vm163_vm5 = vcmp.lt.s32.totalorder %v30_v30, %v3545_v11  ;;  %vm113_vm6 = vcmp.ge.s32.totalorder %v46_v34, %v3535_v4 }
  0x28   :  { %524 = vmatpush.msra.mxu1 %v3754_v37  ;;  %v3046_v43 = vsel %vm275_vm1, 1.0, %v3497_v15  ;;  %vm227_vm3 = vmand %vm97_vm2, %vm163_vm5  ;;  %vm179_vm7 = vcmp.lt.s32.totalorder %v46_v34, %v3545_v11  ;;  %vm127_vm9 = vcmp.ge.s32.totalorder %v60_v35, %v3535_v4  ;;  %vm193_vm4 = vcmp.lt.s32.totalorder %v60_v35, %v3545_v11 }
  0x29   :  { %555 = vmatpush.msra.mxu2 %v3760_v41  ;;  %v3771_v45 = vmul.f32 0.0625, %v3046_v43  ;;  %v2998_v46 = vsel %vm227_vm3, 1.0, %v3497_v15  ;;  %vm243_vm8 = vmand %vm113_vm6, %vm179_vm7  ;;  %v77_v47 = vadd.s32 448, %v3529_v1  ;;  %v29_v49 = vadd.s32 64, %v3529_v1 }
  0x2a   :  { %v3776_v50 = vmul.f32 0.0625, %v2998_v46  ;;  %v3014_v51 = vsel %vm243_vm8, 1.0, %v3497_v15  ;;  %vm257_vm14 = vmand %vm127_vm9, %vm193_vm4  ;;  %v45_v53 = vadd.s32 192, %v3529_v1  ;;  %v59_v55 = vadd.s32 304, %v3529_v1 }
  0x2b   :  { %583 = vmatpush.msra.mxu3 %v3771_v45  ;;  %v3782_v57 = vmul.f32 0.0625, %v3014_v51  ;;  %v3028_v58 = vsel %vm257_vm14, 1.0, %v3497_v15  ;;  %vm144_vm10 = vcmp.ge.s32.totalorder %v77_v47, %v3535_v4  ;;  %vm210_vm11 = vcmp.lt.s32.totalorder %v77_v47, %v3545_v11 }
  0x2c   :  { %496 = vmatpush.msra.mxu0 %v3776_v50  ;;  %v3788_v59 = vmul.f32 0.0625, %v3028_v58  ;;  %vm274_vm12 = vmand %vm144_vm10, %vm210_vm11  ;;  %vm96_vm13 = vcmp.ge.s32.totalorder %v29_v49, %v3535_v4  ;;  %vm162_vm15 = vcmp.lt.s32.totalorder %v29_v49, %v3545_v11  ;;  %vm112_vm0 = vcmp.ge.s32.totalorder %v45_v53, %v3535_v4 }
  0x2d   :  { %525 = vmatpush.msra.mxu1 %v3782_v57  ;;  %v3045_v61 = vsel %vm274_vm12, 1.0, %v3497_v15  ;;  %vm226_vm1 = vmand %vm96_vm13, %vm162_vm15  ;;  %vm178_vm2 = vcmp.lt.s32.totalorder %v45_v53, %v3545_v11  ;;  %vm126_vm5 = vcmp.ge.s32.totalorder %v59_v55, %v3535_v4  ;;  %vm192_vm6 = vcmp.lt.s32.totalorder %v59_v55, %v3545_v11 }
  0x2e   :  { %556 = vmatpush.msra.mxu2 %v3788_v59  ;;  %v3799_v62 = vmul.f32 0.0625, %v3045_v61  ;;  %v2997_v63 = vsel %vm226_vm1, 1.0, %v3497_v15  ;;  %vm242_vm3 = vmand %vm112_vm0, %vm178_vm2  ;;  %v76_v3 = vadd.s32 440, %v3529_v1  ;;  %v28_v6 = vadd.s32 56, %v3529_v1 }
  0x2f   :  { %v3804_v9 = vmul.f32 0.0625, %v2997_v63  ;;  %v3013_v10 = vsel %vm242_vm3, 1.0, %v3497_v15  ;;  %vm256_vm7 = vmand %vm126_vm5, %vm192_vm6  ;;  %v44_v12 = vadd.s32 184, %v3529_v1  ;;  %v58_v14 = vadd.s32 296, %v3529_v1 }
  0x30   :  { %584 = vmatpush.msra.mxu3 %v3799_v62  ;;  %v3810_v16 = vmul.f32 0.0625, %v3013_v10  ;;  %v3027_v17 = vsel %vm256_vm7, 1.0, %v3497_v15  ;;  %vm143_vm9 = vcmp.ge.s32.totalorder %v76_v3, %v3535_v4  ;;  %vm209_vm4 = vcmp.lt.s32.totalorder %v76_v3, %v3545_v11 }
  0x31   :  { %497 = vmatpush.msra.mxu0 %v3804_v9  ;;  %v3816_v20 = vmul.f32 0.0625, %v3027_v17  ;;  %vm273_vm8 = vmand %vm143_vm9, %vm209_vm4  ;;  %vm95_vm14 = vcmp.ge.s32.totalorder %v28_v6, %v3535_v4  ;;  %vm161_vm10 = vcmp.lt.s32.totalorder %v28_v6, %v3545_v11  ;;  %vm111_vm11 = vcmp.ge.s32.totalorder %v44_v12, %v3535_v4 }
  0x32   :  { %526 = vmatpush.msra.mxu1 %v3810_v16  ;;  %v3044_v23 = vsel %vm273_vm8, 1.0, %v3497_v15  ;;  %vm225_vm12 = vmand %vm95_vm14, %vm161_vm10  ;;  %vm177_vm13 = vcmp.lt.s32.totalorder %v44_v12, %v3545_v11  ;;  %vm125_vm15 = vcmp.ge.s32.totalorder %v58_v14, %v3535_v4  ;;  %vm191_vm0 = vcmp.lt.s32.totalorder %v58_v14, %v3545_v11 }
  0x33   :  { %557 = vmatpush.msra.mxu2 %v3816_v20  ;;  %v3827_v27 = vmul.f32 0.0625, %v3044_v23  ;;  %v2996_v29 = vsel %vm225_vm12, 1.0, %v3497_v15  ;;  %vm241_vm1 = vmand %vm111_vm11, %vm177_vm13  ;;  %v75_v30 = vadd.s32 432, %v3529_v1  ;;  %v27_v33 = vadd.s32 48, %v3529_v1 }
  0x34   :  { %v3832_v34 = vmul.f32 0.0625, %v2996_v29  ;;  %v3012_v35 = vsel %vm241_vm1, 1.0, %v3497_v15  ;;  %vm255_vm2 = vmand %vm125_vm15, %vm191_vm0  ;;  %v43_v39 = vadd.s32 176, %v3529_v1  ;;  %v57_v43 = vadd.s32 288, %v3529_v1 }
  0x35   :  { %585 = vmatpush.msra.mxu3 %v3827_v27  ;;  %v3838_v46 = vmul.f32 0.0625, %v3012_v35  ;;  %v3026_v47 = vsel %vm255_vm2, 1.0, %v3497_v15  ;;  %vm142_vm5 = vcmp.ge.s32.totalorder %v75_v30, %v3535_v4  ;;  %vm208_vm6 = vcmp.lt.s32.totalorder %v75_v30, %v3545_v11 }
  0x36   :  { %498 = vmatpush.msra.mxu0 %v3832_v34  ;;  %v3844_v49 = vmul.f32 0.0625, %v3026_v47  ;;  %vm272_vm3 = vmand %vm142_vm5, %vm208_vm6  ;;  %vm94_vm7 = vcmp.ge.s32.totalorder %v27_v33, %v3535_v4  ;;  %vm160_vm9 = vcmp.lt.s32.totalorder %v27_v33, %v3545_v11  ;;  %vm110_vm4 = vcmp.ge.s32.totalorder %v43_v39, %v3535_v4 }
  0x37   :  { %527 = vmatpush.msra.mxu1 %v3838_v46  ;;  %v3043_v51 = vsel %vm272_vm3, 1.0, %v3497_v15  ;;  %vm224_vm8 = vmand %vm94_vm7, %vm160_vm9  ;;  %vm176_vm14 = vcmp.lt.s32.totalorder %v43_v39, %v3545_v11  ;;  %vm124_vm10 = vcmp.ge.s32.totalorder %v57_v43, %v3535_v4  ;;  %vm190_vm11 = vcmp.lt.s32.totalorder %v57_v43, %v3545_v11 }
  0x38   :  { %558 = vmatpush.msra.mxu2 %v3844_v49  ;;  %v3855_v53 = vmul.f32 0.0625, %v3043_v51  ;;  %v2995_v55 = vsel %vm224_vm8, 1.0, %v3497_v15  ;;  %vm240_vm12 = vmand %vm110_vm4, %vm176_vm14  ;;  %v74_v58 = vadd.s32 424, %v3529_v1  ;;  %v26_v61 = vadd.s32 40, %v3529_v1 }
  0x39   :  { %v3860_v63 = vmul.f32 0.0625, %v2995_v55  ;;  %v3011_v3 = vsel %vm240_vm12, 1.0, %v3497_v15  ;;  %vm254_vm13 = vmand %vm124_vm10, %vm190_vm11  ;;  %v42_v6 = vadd.s32 168, %v3529_v1  ;;  %v56_v10 = vadd.s32 280, %v3529_v1 }
  0x3a   :  { %586 = vmatpush.msra.mxu3 %v3855_v53  ;;  %v3866_v12 = vmul.f32 0.0625, %v3011_v3  ;;  %v3025_v14 = vsel %vm254_vm13, 1.0, %v3497_v15  ;;  %vm141_vm15 = vcmp.ge.s32.totalorder %v74_v58, %v3535_v4  ;;  %vm207_vm0 = vcmp.lt.s32.totalorder %v74_v58, %v3545_v11 }
  0x3b   :  { %499 = vmatpush.msra.mxu0 %v3860_v63  ;;  %v3872_v17 = vmul.f32 0.0625, %v3025_v14  ;;  %vm271_vm1 = vmand %vm141_vm15, %vm207_vm0  ;;  %vm93_vm2 = vcmp.ge.s32.totalorder %v26_v61, %v3535_v4  ;;  %vm159_vm5 = vcmp.lt.s32.totalorder %v26_v61, %v3545_v11  ;;  %vm109_vm6 = vcmp.ge.s32.totalorder %v42_v6, %v3535_v4 }
  0x3c   :  { %528 = vmatpush.msra.mxu1 %v3866_v12  ;;  %v3042_v23 = vsel %vm271_vm1, 1.0, %v3497_v15  ;;  %vm223_vm3 = vmand %vm93_vm2, %vm159_vm5  ;;  %vm175_vm7 = vcmp.lt.s32.totalorder %v42_v6, %v3545_v11  ;;  %vm123_vm9 = vcmp.ge.s32.totalorder %v56_v10, %v3535_v4  ;;  %vm189_vm4 = vcmp.lt.s32.totalorder %v56_v10, %v3545_v11 }
  0x3d   :  { %559 = vmatpush.msra.mxu2 %v3872_v17  ;;  %v3883_v29 = vmul.f32 0.0625, %v3042_v23  ;;  %v2994_v30 = vsel %vm223_vm3, 1.0, %v3497_v15  ;;  %vm239_vm8 = vmand %vm109_vm6, %vm175_vm7  ;;  %v73_v33 = vadd.s32 416, %v3529_v1  ;;  %v25_v35 = vadd.s32 32, %v3529_v1 }
  0x3e   :  { %v3888_v39 = vmul.f32 0.0625, %v2994_v30  ;;  %v3010_v43 = vsel %vm239_vm8, 1.0, %v3497_v15  ;;  %vm253_vm14 = vmand %vm123_vm9, %vm189_vm4  ;;  %v41_v47 = vadd.s32 160, %v3529_v1  ;;  %v55_v51 = vadd.s32 272, %v3529_v1 }
  0x3f   :  { %587 = vmatpush.msra.mxu3 %v3883_v29  ;;  %v3894_v55 = vmul.f32 0.0625, %v3010_v43  ;;  %v3024_v58 = vsel %vm253_vm14, 1.0, %v3497_v15  ;;  %vm140_vm10 = vcmp.ge.s32.totalorder %v73_v33, %v3535_v4  ;;  %vm206_vm11 = vcmp.lt.s32.totalorder %v73_v33, %v3545_v11 }
  0x40   :  { %500 = vmatpush.msra.mxu0 %v3888_v39  ;;  %v3900_v61 = vmul.f32 0.0625, %v3024_v58  ;;  %vm270_vm12 = vmand %vm140_vm10, %vm206_vm11  ;;  %vm92_vm13 = vcmp.ge.s32.totalorder %v25_v35, %v3535_v4  ;;  %vm158_vm15 = vcmp.lt.s32.totalorder %v25_v35, %v3545_v11  ;;  %vm108_vm0 = vcmp.ge.s32.totalorder %v41_v47, %v3535_v4 }
  0x41   :  { %529 = vmatpush.msra.mxu1 %v3894_v55  ;;  %v3041_v3 = vsel %vm270_vm12, 1.0, %v3497_v15  ;;  %vm222_vm1 = vmand %vm92_vm13, %vm158_vm15  ;;  %vm174_vm2 = vcmp.lt.s32.totalorder %v41_v47, %v3545_v11  ;;  %vm122_vm5 = vcmp.ge.s32.totalorder %v55_v51, %v3535_v4  ;;  %vm188_vm6 = vcmp.lt.s32.totalorder %v55_v51, %v3545_v11 }
  0x42   :  { %560 = vmatpush.msra.mxu2 %v3900_v61  ;;  %v3911_v6 = vmul.f32 0.0625, %v3041_v3  ;;  %v2993_v10 = vsel %vm222_vm1, 1.0, %v3497_v15  ;;  %vm238_vm3 = vmand %vm108_vm0, %vm174_vm2  ;;  %v72_v14 = vadd.s32 408, %v3529_v1  ;;  %v24_v23 = vadd.s32 24, %v3529_v1 }
  0x43   :  { %v3916_v30 = vmul.f32 0.0625, %v2993_v10  ;;  %v3009_v33 = vsel %vm238_vm3, 1.0, %v3497_v15  ;;  %vm252_vm7 = vmand %vm122_vm5, %vm188_vm6  ;;  %v40_v35 = vadd.s32 152, %v3529_v1  ;;  %v54_v43 = vadd.s32 264, %v3529_v1 }
  0x44   :  { %588 = vmatpush.msra.mxu3 %v3911_v6  ;;  %v3922_v47 = vmul.f32 0.0625, %v3009_v33  ;;  %v3023_v51 = vsel %vm252_vm7, 1.0, %v3497_v15  ;;  %vm139_vm9 = vcmp.ge.s32.totalorder %v72_v14, %v3535_v4  ;;  %vm205_vm4 = vcmp.lt.s32.totalorder %v72_v14, %v3545_v11 }
  0x45   :  { %501 = vmatpush.msra.mxu0 %v3916_v30  ;;  %v3928_v58 = vmul.f32 0.0625, %v3023_v51  ;;  %vm269_vm8 = vmand %vm139_vm9, %vm205_vm4  ;;  %vm91_vm14 = vcmp.ge.s32.totalorder %v24_v23, %v3535_v4  ;;  %vm157_vm10 = vcmp.lt.s32.totalorder %v24_v23, %v3545_v11  ;;  %vm107_vm11 = vcmp.ge.s32.totalorder %v40_v35, %v3535_v4 }
  0x46   :  { %530 = vmatpush.msra.mxu1 %v3922_v47  ;;  %v3040_v3 = vsel %vm269_vm8, 1.0, %v3497_v15  ;;  %vm221_vm12 = vmand %vm91_vm14, %vm157_vm10  ;;  %vm173_vm13 = vcmp.lt.s32.totalorder %v40_v35, %v3545_v11  ;;  %vm121_vm15 = vcmp.ge.s32.totalorder %v54_v43, %v3535_v4  ;;  %vm187_vm0 = vcmp.lt.s32.totalorder %v54_v43, %v3545_v11 }
  0x47   :  { %5264 = vst [vmem:[#allocation4_spill] sm:$0xff] %v3928_v58  ;;  %561 = vmatpush.msra.mxu2 %v3928_v58  ;;  %v3939_v10 = vmul.f32 0.0625, %v3040_v3  ;;  %v2992_v14 = vsel %vm221_vm12, 1.0, %v3497_v15  ;;  %vm237_vm1 = vmand %vm107_vm11, %vm173_vm13  ;;  %v71_v23 = vadd.s32 400, %v3529_v1  ;;  %v23_v33 = vadd.s32 16, %v3529_v1  ;;  %v476_v58 = vld [vmem:[%s5246_s0 + $0x10] sm:$0xff] }
  0x48   :  { %v3944_v51 = vmul.f32 0.0625, %v2992_v14  ;;  %v3008_v7 = vsel %vm237_vm1, 1.0, %v3497_v15  ;;  %vm251_vm2 = vmand %vm121_vm15, %vm187_vm0  ;;  %v39_v35 = vadd.s32 144, %v3529_v1  ;;  %v53_v43 = vadd.s32 256, %v3529_v1 }
  0x49   :  { %5265 = vst [vmem:[#allocation5_spill] sm:$0xff] %v3939_v10  ;;  %589 = vmatpush.msra.mxu3 %v3939_v10  ;;  %v3950_v3 = vmul.f32 0.0625, %v3008_v7  ;;  %v3022_v2 = vsel %vm251_vm2, 1.0, %v3497_v15  ;;  %vm138_vm5 = vcmp.ge.s32.totalorder %v71_v23, %v3535_v4  ;;  %vm204_vm6 = vcmp.lt.s32.totalorder %v71_v23, %v3545_v11 }
  0x4a   :  { %5266 = vst [vmem:[#allocation6_spill] sm:$0xff] %v3944_v51  ;;  %502 = vmatpush.msra.mxu0 %v3944_v51  ;;  %v3956_v14 = vmul.f32 0.0625, %v3022_v2  ;;  %vm268_vm3 = vmand %vm138_vm5, %vm204_vm6  ;;  %vm90_vm7 = vcmp.ge.s32.totalorder %v23_v33, %v3535_v4  ;;  %vm156_vm9 = vcmp.lt.s32.totalorder %v23_v33, %v3545_v11  ;;  %vm106_vm4 = vcmp.ge.s32.totalorder %v39_v35, %v3535_v4 }
  0x4b   :  { %5267 = vst [vmem:[#allocation7_spill] sm:$0xff] %v3950_v3  ;;  %531 = vmatpush.msra.mxu1 %v3950_v3  ;;  %v3039_v7 = vsel %vm268_vm3, 1.0, %v3497_v15  ;;  %vm220_vm8 = vmand %vm90_vm7, %vm156_vm9  ;;  %vm172_vm14 = vcmp.lt.s32.totalorder %v39_v35, %v3545_v11  ;;  %vm120_vm10 = vcmp.ge.s32.totalorder %v53_v43, %v3535_v4  ;;  %vm186_vm11 = vcmp.lt.s32.totalorder %v53_v43, %v3545_v11 }
  0x4c   :  { %5268 = vst [vmem:[#allocation8_spill] sm:$0xff] %v3956_v14  ;;  %562 = vmatpush.msra.mxu2 %v3956_v14  ;;  %v3967_v2 = vmul.f32 0.0625, %v3039_v7  ;;  %v2991_v23 = vsel %vm220_vm8, 1.0, %v3497_v15  ;;  %vm236_vm12 = vmand %vm106_vm4, %vm172_vm14  ;;  %v70_v33 = vadd.s32 392, %v3529_v1  ;;  %v22_v3 = vadd.s32 8, %v3529_v1 }
  0x4d   :  { %v3972_v51 = vmul.f32 0.0625, %v2991_v23  ;;  %v3007_v10 = vsel %vm236_vm12, 1.0, %v3497_v15  ;;  %vm250_vm13 = vmand %vm120_vm10, %vm186_vm11  ;;  %v38_v35 = vadd.s32 136, %v3529_v1  ;;  %v69_v43 = vadd.s32 384, %v3529_v1 }
  0x4e   :  { %590 = vmatpush.msra.mxu3 %v3967_v2  ;;  %v3978_v7 = vmul.f32 0.0625, %v3007_v10  ;;  %v3021_v14 = vsel %vm250_vm13, 1.0, %v3497_v15  ;;  %vm137_vm15 = vcmp.ge.s32.totalorder %v70_v33, %v3535_v4  ;;  %vm203_vm0 = vcmp.lt.s32.totalorder %v70_v33, %v3545_v11 }
  0x4f   :  { %503 = vmatpush.msra.mxu0 %v3972_v51  ;;  %v3984_v23 = vmul.f32 0.0625, %v3021_v14  ;;  %vm267_vm1 = vmand %vm137_vm15, %vm203_vm0  ;;  %vm89_vm2 = vcmp.ge.s32.totalorder %v22_v3, %v3535_v4  ;;  %vm155_vm5 = vcmp.lt.s32.totalorder %v22_v3, %v3545_v11  ;;  %vm105_vm6 = vcmp.ge.s32.totalorder %v38_v35, %v3535_v4 }
  0x50   :  { %5269 = vst [vmem:[#allocation9_spill] sm:$0xff] %v3978_v7  ;;  %532 = vmatpush.msra.mxu1 %v3978_v7  ;;  %v3038_v10 = vsel %vm267_vm1, 1.0, %v3497_v15  ;;  %vm219_vm3 = vmand %vm89_vm2, %vm155_vm5  ;;  %vm171_vm7 = vcmp.lt.s32.totalorder %v38_v35, %v3545_v11  ;;  %vm136_vm9 = vcmp.ge.s32.totalorder %v69_v43, %v3535_v4  ;;  %vm202_vm4 = vcmp.lt.s32.totalorder %v69_v43, %v3545_v11 }
  0x51   :  { %5270 = vst [vmem:[#allocation10_spill] sm:$0xff] %v3984_v23  ;;  %563 = vmatpush.msra.mxu2 %v3984_v23  ;;  %v3998_v14 = vmul.f32 0.0625, %v3038_v10  ;;  %v2990_v33 = vsel %vm219_vm3, 1.0, %v3497_v15  ;;  %vm235_vm8 = vmand %vm105_vm6, %vm171_vm7  ;;  %vm88_vm14 = vcmp.ge.s32.totalorder %v3529_v1, %v3535_v4  ;;  %vm154_vm10 = vcmp.lt.s32.totalorder %v3529_v1, %v3545_v11 }
  0x52   :  { %564 = vmatmul.f32.vlgmr.msra.gmra.mxu2 %v476_v58  ;;  %v4005_v3 = vmul.f32 0.0625, %v2990_v33  ;;  %v3006_v35 = vsel %vm235_vm8, 1.0, %v3497_v15  ;;  %vm266_vm11 = vmand %vm136_vm9, %vm202_vm4  ;;  %v37_v43 = vadd.s32 128, %v3529_v1  ;;  %v477_v58 = vld [vmem:[%s5246_s0 + $0x18] sm:$0xff]  ;;  %vm616_vm1 = vcmask 1040384  }
  0x53   :  { %591 = vmatpush.msra.mxu3 %v3998_v14  ;;  %v4010_v10 = vmul.f32 0.0625, %v3006_v35  ;;  %v3037_v23 = vsel %vm266_vm11, 1.0, %v3497_v15  ;;  %786 = vmatpush.msrb.mxu2 %v3567_v18  ;;  %vm218_vm12 = vmand %vm88_vm14, %vm154_vm10  ;;  %v474_v18 = vld [vmem:[%s5246_s0] sm:$0xff]  ;;  %vm836_vm2 = vcmask 1046528  }
  0x54   :  { %504 = vmatpush.msra.mxu0 %v4005_v3  ;;  %v4015_v7 = vmul.f32 0.0625, %v3037_v23  ;;  %v2989_v33 = vsel %vm218_vm12, 1.0, %v3497_v15  ;;  %vm104_vm13 = vcmp.ge.s32.totalorder %v37_v43, %v3535_v4  ;;  %vm170_vm15 = vcmp.lt.s32.totalorder %v37_v43, %v3545_v11  ;;  %v475_v11 = vld [vmem:[%s5246_s0 + $0x8] sm:$0xff] }
  0x55   :  { %533 = vmatpush.msra.mxu1 %v4010_v10  ;;  %v4024_v1 = vmul.f32 0.0625, %v2989_v33  ;;  %vm234_vm0 = vmand %vm104_vm13, %vm170_vm15  ;;  %787 = vmatpush.msrb.mxu2 %v3576_v22  ;;  %v480_v22 = vld [vmem:[%s5246_s0 + $0x30] sm:$0xff] }
  0x56   :  { %592 = vmatpush.msra.mxu3 %v4015_v7  ;;  %v3005_v23 = vsel %vm234_vm0, 1.0, %v3497_v15 }
  0x57   :  { %593 = vmatmul.f32.vlgmr.msra.gmra.mxu3 %v477_v58  ;;  %505 = vmatpush.msra.mxu0 %v4024_v1  ;;  %v4033_v4 = vmul.f32 0.0625, %v3005_v23 }
  0x58   :  { %809 = vmatpush.msrb.mxu3 %v3586_v24  ;;  %506 = vmatmul.f32.vlgmr.msra.gmra.mxu0 %v474_v18  ;;  %v481_v24 = vld [vmem:[%s5246_s0 + $0x38] sm:$0xff] }
  0x59   :  { %534 = vmatpush.msra.mxu1 %v4033_v4  ;;  %740 = vmatpush.msrb.mxu0 %v3595_v26  ;;  %v478_v26 = vld [vmem:[%s5246_s0 + $0x20] sm:$0xff] }
  0x5a   :  { %535 = vmatmul.f32.vlgmr.msra.gmra.mxu1 %v475_v11  ;;  %788 = vmatpush.msrb.mxu2 %v3616_v32  ;;  %v484_v32 = vld [vmem:[%s5246_s0 + $0x50] sm:$0xff] }
  0x5b   :  { %763 = vmatpush.msrb.mxu1 %v3606_v28  ;;  %810 = vmatpush.msrb.mxu3 %v3626_v36  ;;  %v479_v28 = vld [vmem:[%s5246_s0 + $0x28] sm:$0xff]  ;;  %v485_v36 = vld [vmem:[%s5246_s0 + $0x58] sm:$0xff] }
  0x5c   :  { %741 = vmatpush.msrb.mxu0 %v3636_v38  ;;  %789 = vmatpush.msrb.mxu2 %v3652_v42  ;;  %v482_v38 = vld [vmem:[%s5246_s0 + $0x40] sm:$0xff]  ;;  %v488_v42 = vld [vmem:[%s5246_s0 + $0x70] sm:$0x1] }
  0x5d   :  { %764 = vmatpush.msrb.mxu1 %v3646_v40  ;;  %811 = vmatpush.msrb.mxu3 %v3658_v44  ;;  %v483_v40 = vld [vmem:[%s5246_s0 + $0x48] sm:$0xff]  ;;  %v489_v44 = vld [vmem:[%s5246_s0 + $0x78] sm:$0x1] }
  0x5e   :  { %567 = vmatmul.f32.gmra.mxu2 %v480_v22  ;;  %742 = vmatpush.msrb.mxu0 %v3664_v48  ;;  %v486_v48 = vld [vmem:[%s5246_s0 + $0x60] sm:$0x1] }
  0x5f   :  { %765 = vmatpush.msrb.mxu1 %v3670_v52  ;;  %790 = vmatpush.msrb.mxu2 %v3676_v54  ;;  %v487_v52 = vld [vmem:[%s5246_s0 + $0x68] sm:$0x1]  ;;  %v5271_v54 = vld [vmem:[#allocation4_spill] sm:$0xff] }
  0x60   :  { %812 = vmatpush.msrb.mxu3 %v3687_v56  ;;  %743 = vmatpush.msrb.mxu0 %v3692_v60  ;;  %v5272_v56 = vld [vmem:[#allocation5_spill] sm:$0xff]  ;;  %v5273_v60 = vld [vmem:[#allocation6_spill] sm:$0xff] }
  0x61   :  { %596 = vmatmul.f32.gmra.mxu3 %v481_v24  ;;  %766 = vmatpush.msrb.mxu1 %v3698_v0  ;;  %v5274_v0 = vld [vmem:[#allocation7_spill] sm:$0xff] }
  0x62   :  { %791 = vmatpush.msrb.mxu2 %v3704_v5  ;;  %813 = vmatpush.msrb.mxu3 %v3715_v8  ;;  %v5275_v5 = vld [vmem:[#allocation8_spill] sm:$0xff] }
  0x63   :  { %509 = vmatmul.f32.gmra.mxu0 %v478_v26  ;;  %538 = vmatmul.f32.gmra.mxu1 %v479_v28  ;;  %v734_v8 = vld [vmem:[%s5247_s1 + $0x10] sm:$0xff] }
  0x64   :  { %744 = vmatpush.msrb.mxu0 %v3720_v13  ;;  %767 = vmatpush.msrb.mxu1 %v3726_v19  ;;  %v5276_v13 = vld [vmem:[#allocation9_spill] sm:$0xff]  ;;  %v5277_v19 = vld [vmem:[#allocation10_spill] sm:$0xff] }
  0x65   :  { %792 = vmatpush.msrb.mxu2 %v3732_v21  ;;  %814 = vmatpush.msrb.mxu3 %v3743_v25  ;;  %v735_v21 = vld [vmem:[%s5247_s1 + $0x18] sm:$0xff]  ;;  %v732_v25 = vld [vmem:[%s5247_s1] sm:$0xff] }
  0x66   :  { %745 = vmatpush.msrb.mxu0 %v3748_v31  ;;  %768 = vmatpush.msrb.mxu1 %v3754_v37  ;;  %v733_v31 = vld [vmem:[%s5247_s1 + $0x8] sm:$0xff]  ;;  %v738_v37 = vld [vmem:[%s5247_s1 + $0x30] sm:$0x7f] }
  0x67   :  { %793 = vmatpush.msrb.mxu2 %v3760_v41  ;;  %815 = vmatpush.msrb.mxu3 %v3771_v45  ;;  %v739_v41 = vld [vmem:[%s5247_s1 + $0x38] sm:$0x7f]  ;;  %v736_v45 = vld [vmem:[%s5247_s1 + $0x20] sm:$0x7f] }
  0x68   :  { %570 = vmatmul.f32.gmra.mxu2 %v484_v32  ;;  %746 = vmatpush.msrb.mxu0 %v3776_v50  ;;  %v737_v50 = vld [vmem:[%s5247_s1 + $0x28] sm:$0x7f] }
  0x69   :  { %769 = vmatpush.msrb.mxu1 %v3782_v57  ;;  %794 = vmatpush.msrb.mxu2 %v3788_v59 }
  0x6a   :  { %816 = vmatpush.msrb.mxu3 %v3799_v62  ;;  %747 = vmatpush.msrb.mxu0 %v3804_v9 }
  0x6b   :  { %599 = vmatmul.f32.gmra.mxu3 %v485_v36  ;;  %770 = vmatpush.msrb.mxu1 %v3810_v16 }
  0x6c   :  { %795 = vmatpush.msrb.mxu2 %v3816_v20  ;;  %817 = vmatpush.msrb.mxu3 %v3827_v27 }
  0x6d   :  { %512 = vmatmul.f32.gmra.mxu0 %v482_v38  ;;  %541 = vmatmul.f32.gmra.mxu1 %v483_v40 }
  0x6e   :  { %748 = vmatpush.msrb.mxu0 %v3832_v34  ;;  %771 = vmatpush.msrb.mxu1 %v3838_v46 }
  0x6f   :  { %796 = vmatpush.msrb.mxu2 %v3844_v49  ;;  %818 = vmatpush.msrb.mxu3 %v3855_v53 }
  0x70   :  { %749 = vmatpush.msrb.mxu0 %v3860_v63  ;;  %772 = vmatpush.msrb.mxu1 %v3866_v12 }
  0x71   :  { %797 = vmatpush.msrb.mxu2 %v3872_v17  ;;  %819 = vmatpush.msrb.mxu3 %v3883_v29 }
  0x72   :  { %573 = vmatmul.f32.gmra.mxu2 %v488_v42  ;;  %750 = vmatpush.msrb.mxu0 %v3888_v39 }
  0x73   :  { %773 = vmatpush.msrb.mxu1 %v3894_v55  ;;  %798 = vmatpush.msrb.mxu2 %v3900_v61 }
  0x74   :  { %820 = vmatpush.msrb.mxu3 %v3911_v6  ;;  %751 = vmatpush.msrb.mxu0 %v3916_v30 }
  0x75   :  { %602 = vmatmul.f32.gmra.mxu3 %v489_v44  ;;  %774 = vmatpush.msrb.mxu1 %v3922_v47 }
  0x76   :  { %799 = vmatpush.msrb.mxu2 %v5271_v54  ;;  %821 = vmatpush.msrb.mxu3 %v5272_v56 }
  0x77   :  { %515 = vmatmul.f32.gmra.mxu0 %v486_v48  ;;  %544 = vmatmul.f32.gmra.mxu1 %v487_v52 }
  0x78   :  { %752 = vmatpush.msrb.mxu0 %v5273_v60  ;;  %775 = vmatpush.msrb.mxu1 %v5274_v0  ;;  %v4189_v60 = vld [vmem:[%s5248_s3 + $0x78] sm:$0xff]  ;;  %v4196_v0 = vld [vmem:[%s5248_s3 + $0x70] sm:$0xff] }
  0x79   :  { %800 = vmatpush.msrb.mxu2 %v5275_v5  ;;  %822 = vmatpush.msrb.mxu3 %v3967_v2  ;;  %v4203_v5 = vld [vmem:[%s5248_s3 + $0x68] sm:$0xff] }
  0x7a   :  { %753 = vmatpush.msrb.mxu0 %v3972_v51  ;;  %776 = vmatpush.msrb.mxu1 %v5276_v13  ;;  %v4217_v13 = vld [vmem:[%s5248_s3 + $0x58] sm:$0xff] }
  0x7b   :  { %801 = vmatpush.msrb.mxu2 %v5277_v19  ;;  %823 = vmatpush.msrb.mxu3 %v3998_v14  ;;  %v4224_v19 = vld [vmem:[%s5248_s3 + $0x50] sm:$0xff] }
  0x7c   :  { %802 = vmatmul.f32.vlgmr.msrb.gmra.mxu2 %v734_v8  ;;  %754 = vmatpush.msrb.mxu0 %v4005_v3  ;;  %v4210_v8 = vld [vmem:[%s5248_s3 + $0x60] sm:$0xff] }
  0x7d   :  { %777 = vmatpush.msrb.mxu1 %v4010_v10  ;;  %824 = vmatpush.msrb.mxu3 %v4015_v7 }
  0x7e   :  { %825 = vmatmul.f32.vlgmr.msrb.gmra.mxu3 %v735_v21  ;;  %755 = vmatpush.msrb.mxu0 %v4024_v1  ;;  %v4231_v21 = vld [vmem:[%s5248_s3 + $0x48] sm:$0xff] }
  0x7f   :  { %778 = vmatpush.msrb.mxu1 %v4033_v4  ;;  %756 = vmatmul.f32.vlgmr.msrb.gmra.mxu0 %v732_v25  ;;  %v4238_v25 = vld [vmem:[%s5248_s3 + $0x40] sm:$0xff] }
  0x80   :  { %779 = vmatmul.f32.vlgmr.msrb.gmra.mxu1 %v733_v31  ;;  %3110 = vmatpush.msra.mxu2 %v4189_v60 }
  0x81   :  { %993 = vmatpush.msra.mxu3 %v4189_v60 }
  0x82   :  { %3111 = vmatpush.msra.mxu2 %v4196_v0 }
  0x83   :  { %994 = vmatpush.msra.mxu3 %v4196_v0 }
  0x84   :  { %805 = vmatmul.f32.gmra.mxu2 %v738_v37  ;;  %v4245_v37 = vld [vmem:[%s5248_s3 + $0x38] sm:$0xff] }
  0x85   :  { %3112 = vmatpush.msra.mxu2 %v4203_v5  ;;  %995 = vmatpush.msra.mxu3 %v4203_v5 }
  0x86   :  { %828 = vmatmul.f32.gmra.mxu3 %v739_v41  ;;  %v4252_v41 = vld [vmem:[%s5248_s3 + $0x30] sm:$0xff] }
  0x87   :  { %759 = vmatmul.f32.gmra.mxu0 %v736_v45  ;;  %3113 = vmatpush.msra.mxu2 %v4210_v8  ;;  %v4259_v45 = vld [vmem:[%s5248_s3 + $0x28] sm:$0xff] }
  0x88   :  { %782 = vmatmul.f32.gmra.mxu1 %v737_v50  ;;  %996 = vmatpush.msra.mxu3 %v4210_v8 }
  0x89   :  { %3114 = vmatpush.msra.mxu2 %v4217_v13 }
  0x8a   :  { %997 = vmatpush.msra.mxu3 %v4217_v13 }
  0x8b   :  { %3115 = vmatpush.msra.mxu2 %v4224_v19 }
  0x8c   :  { %998 = vmatpush.msra.mxu3 %v4224_v19 }
  0x8d   :  { %3116 = vmatpush.msra.mxu2 %v4231_v21 }
  0x8e   :  { %999 = vmatpush.msra.mxu3 %v4231_v21 }
  0x8f   :  { %3117 = vmatpush.msra.mxu2 %v4238_v25 }
  0x90   :  { %1000 = vmatpush.msra.mxu3 %v4238_v25 }
  0x91   :  { %3118 = vmatpush.msra.mxu2 %v4245_v37 }
  0x92   :  { %1001 = vmatpush.msra.mxu3 %v4245_v37 }
  0x93   :  { %3119 = vmatpush.msra.mxu2 %v4252_v41 }
  0x94   :  { %1002 = vmatpush.msra.mxu3 %v4252_v41 }
  0x95   :  { %3120 = vmatpush.msra.mxu2 %v4259_v45 }
  0x96   :  { %1003 = vmatpush.msra.mxu3 %v4259_v45 }
  0xd5   :  { %v507_v57 = vpop.f32.mrf.mxu0  ;;  %v565_v62 = vpop.f32.mrf.mxu2 }
  0xd7   :  { %v536_v59 = vpop.f32.mrf.mxu1 }
  0xd8   :  { %v537_v46 = vadd.f32 %v536_v59, %v507_v57  ;;  %v4266_v57 = vld [vmem:[%s5248_s3 + $0x20] sm:$0xff] }
  0xd9   :  { %3121 = vmatpush.msra.mxu2 %v4266_v57  ;;  %1004 = vmatpush.msra.mxu3 %v4266_v57 }
  0xda   :  { %v594_v9 = vpop.f32.mrf.mxu3  ;;  %v566_v12 = vadd.f32 %v565_v62, %v537_v46 }
  0xdc   :  { %v4165_v55 = vadd.f32 %v594_v9, %v566_v12  ;;  %v4276_v9 = vld [vmem:[%s5248_s3 + $0x18] sm:$0xff] }
  0xdd   :  { %3122 = vmatpush.msra.mxu2 %v4276_v9  ;;  %1005 = vmatpush.msra.mxu3 %v4276_v9 }
  0xde   :  { %v606_v30 = vmul.f32 %v4165_v55, %v4165_v55 }
  0xe0   :  { %v510_v16 = vpop.f32.mrf.mxu0  ;;  %v539_v20 = vpop.f32.mrf.mxu1 }
  0xe1   :  { %v540_v27 = vadd.f32 %v539_v20, %v510_v16  ;;  %v568_v34 = vpop.f32.mrf.mxu2  ;;  %v4283_v20 = vld [vmem:[%s5248_s3 + $0x10] sm:$0xff] }
  0xe2   :  { %3123 = vmatpush.msra.mxu2 %v4283_v20  ;;  %1006 = vmatpush.msra.mxu3 %v4283_v20 }
  0xe3   :  { %v569_v49 = vadd.f32 %v568_v34, %v540_v27  ;;  %v4290_v34 = vld [vmem:[%s5248_s3 + $0x8] sm:$0xff] }
  0xe4   :  { %v597_v53 = vpop.f32.mrf.mxu3  ;;  %3124 = vmatpush.msra.mxu2 %v4290_v34  ;;  %1007 = vmatpush.msra.mxu3 %v4290_v34 }
  0xe5   :  { %v4161_v63 = vadd.f32 %v597_v53, %v569_v49  ;;  %v4297_v53 = vld [vmem:[%s5248_s3] sm:$0xff] }
  0xe6   :  { %3125 = vmatpush.msra.mxu2 %v4297_v53  ;;  %1008 = vmatpush.msra.mxu3 %v4297_v53 }
  0xe7   :  { %v607_v17 = vmul.f32 %v4161_v63, %v4161_v63 }
  0xe9   :  { %612 = vadd.xlane.f32.xlu1 %v607_v17 }
  0xea   :  { %v513_v29 = vpop.f32.mrf.mxu0  ;;  %v542_v39 = vpop.f32.mrf.mxu1 }
  0xeb   :  { %v571_v61 = vpop.f32.mrf.mxu2  ;;  %v543_v3 = vadd.f32 %v542_v39, %v513_v29 }
  0xed   :  { %v572_v58 = vadd.f32 %v571_v61, %v543_v3 }
  0xee   :  { %v600_v6 = vpop.f32.mrf.mxu3 }
  0xef   :  { %v4174_v11 = vadd.f32 %v600_v6, %v572_v58 }
  0xf1   :  { %610 = vadd.xlane.f32.xlu1 %v606_v30  ;;  %v608_v36 = vmul.f32 %v4174_v11, %v4174_v11 }
  0xf4   :  { %v516_v47 = vpop.f32.mrf.mxu0  ;;  %v545_v51 = vpop.f32.mrf.mxu1 }
  0xf5   :  { %v546_v2 = vadd.f32 %v545_v51, %v516_v47  ;;  %v574_v7 = vpop.f32.mrf.mxu2 }
  0xf7   :  { %v575_v14 = vadd.f32 %v574_v7, %v546_v2 }
  0xf8   :  { %v603_v35 = vpop.f32.mrf.mxu3 }
  0xf9   :  { %v4169_v43 = vadd.f32 %v603_v35, %v575_v14 }
  0xfb   :  { %v609_v10 = vmul.f32 %v4169_v43, %v4169_v43 }
  0xfc   :  { %v757_v33 = vpop.f32.mrf.mxu0 }
  0xfd   :  { %v780_v1 = vpop.f32.mrf.mxu1  ;;  %v617_v18 = vsel %vm616_vm1, %v609_v10, 0.0 }
  0xfe   :  { %v781_v23 = vadd.f32 %v780_v1, %v757_v33  ;;  %618 = vadd.xlane.f32.xlu0 %v617_v18 }
  0xff   :  { %v803_v4 = vpop.f32.mrf.mxu2 }
 0x100   :  { %v804_v22 = vadd.f32 %v803_v4, %v781_v23 }
 0x101   :  { %v826_v24 = vpop.f32.mrf.mxu3 }
 0x102   :  { %v4176_v26 = vadd.f32 %v826_v24, %v804_v22 }
 0x104   :  { %v760_v28 = vpop.f32.mrf.mxu0  ;;  %v832_v32 = vmul.f32 %v4176_v26, %v4176_v26 }
 0x105   :  { %v783_v38 = vpop.f32.mrf.mxu1 }
 0x106   :  { %v784_v40 = vadd.f32 %v783_v38, %v760_v28  ;;  %834 = vadd.xlane.f32.xlu2 %v832_v32  ;;  %614 = vadd.xlane.f32.xlu0 %v608_v36 }
 0x107   :  { %v806_v42 = vpop.f32.mrf.mxu2 }
 0x108   :  { %v807_v44 = vadd.f32 %v806_v42, %v784_v40 }
 0x109   :  { %v829_v48 = vpop.f32.mrf.mxu3 }
 0x10a   :  { %v4182_v52 = vadd.f32 %v829_v48, %v807_v44 }
 0x10c   :  { %v833_v54 = vmul.f32 %v4182_v52, %v4182_v52 }
 0x10e   :  { %v837_v56 = vsel %vm836_vm2, %v833_v54, 0.0 }
 0x10f   :  { %838 = vadd.xlane.f32.xlu2 %v837_v56 }
 0x15c   :  { %v613_v31 = vpop.xlane.xlu1 %612 }
 0x15d   :  { %3224 = vrsqrt.f32 %v613_v31  ;;  %vm639_vm5 = vcmp.eq.f32.partialorder %v613_v31, inf  ;;  %v642_v61 = vand.u32 2147483648, %v613_v31  ;;  %vm641_vm6 = vcmp.eq.f32.partialorder %v613_v31, 0.0 }
 0x163   :  { %v3225_v50 = vpop.eup %3224 }
 0x164   :  { %v633_v59 = vmul.f32 %v3225_v50, %v613_v31  ;;  %v4268_v62 = vpop.xlane.xlu1 %610 }
 0x165   :  { %3226 = vrsqrt.f32 %v4268_v62  ;;  %vm627_vm3 = vcmp.eq.f32.partialorder %v4268_v62, inf  ;;  %vm629_vm7 = vcmp.eq.f32.partialorder %v4268_v62, 0.0  ;;  %v630_v44 = vand.u32 2147483648, %v4268_v62 }
 0x166   :  { %v634_v16 = vmul.f32 %v3225_v50, %v633_v59 }
 0x168   :  { %v635_v27 = vmul.f32 0.5, %v634_v16 }
 0x16a   :  { %v636_v46 = vsub.f32 1.5, %v635_v27 }
 0x16b   :  { %v3227_v49 = vpop.eup %3226 }
 0x16c   :  { %v637_v12 = vmul.f32 %v3225_v50, %v636_v46  ;;  %v621_v17 = vmul.f32 %v3227_v49, %v4268_v62 }
 0x16e   :  { %v638_v29 = vmul.f32 %v637_v12, %v613_v31  ;;  %v622_v39 = vmul.f32 %v3227_v49, %v621_v17 }
 0x170   :  { %v640_v6 = vsel %vm639_vm5, %v613_v31, %v638_v29  ;;  %v623_v30 = vmul.f32 0.5, %v622_v39 }
 0x171   :  { %v643_v47 = vsel %vm641_vm6, %v642_v61, %v640_v6  ;;  %v619_v51 = vpop.xlane.xlu0 %618 }
 0x172   :  { %v669_v2 = vmax.f32 %v643_v47, 1e-12  ;;  %3228 = vrsqrt.f32 %v619_v51  ;;  %v624_v7 = vsub.f32 1.5, %v623_v30  ;;  %vm663_vm4 = vcmp.eq.f32.partialorder %v619_v51, inf }
 0x173   :  { %vm665_vm11 = vcmp.eq.f32.partialorder %v619_v51, 0.0 }
 0x174   :  { %3230 = vrcp.f32 %v669_v2  ;;  %v625_v3 = vmul.f32 %v3227_v49, %v624_v7  ;;  %v698_v24 = vand.u32 2147483648, %v669_v2  ;;  %v696_v40 = vand.u32 2147483647, %v669_v2 }
 0x175   :  { %vm692_vm8 = vweird.f32 %v669_v2  ;;  %v666_v49 = vand.u32 2147483648, %v619_v51 }
 0x176   :  { %v626_v18 = vmul.f32 %v625_v3, %v4268_v62  ;;  %v699_v59 = vor.u32 1.1754944e-38, %v698_v24  ;;  %vm697_vm10 = vcmp.eq.f32.partialorder %v696_v40, 8.507059e+37 }
 0x178   :  { %v3229_v14 = vpop.eup %3228  ;;  %v628_v36 = vsel %vm627_vm3, %v4268_v62, %v626_v18 }
 0x179   :  { %v657_v35 = vmul.f32 %v3229_v14, %v619_v51  ;;  %v4302_v10 = vpop.xlane.xlu2 %834  ;;  %v4304_v58 = vpop.xlane.xlu0 %614  ;;  %v631_v16 = vsel %vm629_vm7, %v630_v44, %v628_v36 }
 0x17a   :  { %v3231_v33 = vpop.eup %3230  ;;  %3232 = vrsqrt.f32 %v4302_v10  ;;  %v4322_v6 = vmax.f32 %v631_v16, 1e-12  ;;  %vm847_vm12 = vcmp.eq.f32.partialorder %v4302_v10, inf  ;;  %vm849_vm13 = vcmp.eq.f32.partialorder %v4302_v10, 0.0 }
 0x17b   :  { %v658_v1 = vmul.f32 %v3229_v14, %v657_v35  ;;  %3234 = vrsqrt.f32 %v4304_v58  ;;  %v688_v23 = vmul.f32 %v3231_v33, %v669_v2  ;;  %vm693_vm9 = vweird.f32 %v3231_v33 }
 0x17c   :  { %vm694_vm14 = vmor %vm692_vm8, %vm693_vm9  ;;  %vm651_vm15 = vcmp.eq.f32.partialorder %v4304_v58, inf  ;;  %vm653_vm0 = vcmp.eq.f32.partialorder %v4304_v58, 0.0 }
 0x17d   :  { %v659_v4 = vmul.f32 0.5, %v658_v1  ;;  %v689_v22 = vsub.f32 1.0, %v688_v23 }
 0x17f   :  { %v660_v28 = vsub.f32 1.5, %v659_v4  ;;  %v690_v38 = vmul.f32 %v3231_v33, %v689_v22  ;;  %v654_v22 = vand.u32 2147483648, %v4304_v58 }
 0x180   :  { %v3233_v32 = vpop.eup %3232 }
 0x181   :  { %v3235_v42 = vpop.eup %3234  ;;  %v661_v48 = vmul.f32 %v3229_v14, %v660_v28  ;;  %v841_v54 = vmul.f32 %v3233_v32, %v4302_v10  ;;  %v691_v50 = vadd.f32 %v3231_v33, %v690_v38 }
 0x182   :  { %v645_v56 = vmul.f32 %v3235_v42, %v4304_v58  ;;  %v4315_v31 = vpop.xlane.xlu2 %838 }
 0x183   :  { %v662_v27 = vmul.f32 %v661_v48, %v619_v51  ;;  %v842_v46 = vmul.f32 %v3233_v32, %v841_v54  ;;  %3236 = vrsqrt.f32 %v4315_v31  ;;  %v695_v17 = vsel %vm694_vm14, %v3231_v33, %v691_v50 }
 0x184   :  { %v646_v12 = vmul.f32 %v3235_v42, %v645_v56  ;;  %v700_v61 = vsel %vm697_vm10, %v699_v59, %v695_v17  ;;  %vm859_vm2 = vcmp.eq.f32.partialorder %v4315_v31, inf  ;;  %vm861_vm5 = vcmp.eq.f32.partialorder %v4315_v31, 0.0 }
 0x185   :  { %v664_v29 = vsel %vm663_vm4, %v619_v51, %v662_v27  ;;  %v843_v39 = vmul.f32 0.5, %v842_v46  ;;  %v4325_v47 = vmul.f32 %v700_v61, %v4161_v63  ;;  %v850_v51 = vand.u32 2147483648, %v4302_v10 }
 0x186   :  { %v667_v30 = vsel %vm665_vm11, %v666_v49, %v664_v29  ;;  %v647_v62 = vmul.f32 0.5, %v646_v12  ;;  %v862_v50 = vand.u32 2147483648, %v4315_v31 }
 0x187   :  { %v671_v2 = vmax.f32 %v667_v30, 1e-12  ;;  %v844_v7 = vsub.f32 1.5, %v843_v39  ;;  %983 = vmatmul.f32.vlgmr.msra.gmra.mxu2 %v4325_v47 }
 0x188   :  { %v648_v14 = vsub.f32 1.5, %v647_v62 }
 0x189   :  { %v3237_v3 = vpop.eup %3236  ;;  %3238 = vrcp.f32 %v671_v2  ;;  %v845_v35 = vmul.f32 %v3233_v32, %v844_v7  ;;  %v726_v46 = vand.u32 2147483647, %v671_v2  ;;  %vm722_vm3 = vweird.f32 %v671_v2 }
 0x18a   :  { %3240 = vrcp.f32 %v4322_v6  ;;  %v649_v33 = vmul.f32 %v3235_v42, %v648_v14  ;;  %v853_v1 = vmul.f32 %v3237_v3, %v4315_v31 }
 0x18b   :  { %v846_v63 = vmul.f32 %v845_v35, %v4302_v10  ;;  %vm727_vm9 = vcmp.eq.f32.partialorder %v726_v46, 8.507059e+37 }
 0x18c   :  { %v650_v18 = vmul.f32 %v649_v33, %v4304_v58  ;;  %v854_v23 = vmul.f32 %v3237_v3, %v853_v1 }
 0x18d   :  { %v848_v4 = vsel %vm847_vm12, %v4302_v10, %v846_v63 }
 0x18e   :  { %v851_v24 = vsel %vm849_vm13, %v850_v51, %v848_v4  ;;  %v652_v28 = vsel %vm651_vm15, %v4304_v58, %v650_v18  ;;  %v855_v32 = vmul.f32 0.5, %v854_v23  ;;  %v728_v58 = vand.u32 2147483648, %v671_v2 }
 0x18f   :  { %v3239_v36 = vpop.eup %3238  ;;  %v864_v38 = vmax.f32 %v851_v24, 1e-12  ;;  %v655_v40 = vsel %vm653_vm0, %v654_v22, %v652_v28 }
 0x190   :  { %v4340_v42 = vpop.eup %3240  ;;  %v670_v44 = vmax.f32 %v655_v40, 1e-12  ;;  %v856_v48 = vsub.f32 1.5, %v855_v32  ;;  %v718_v54 = vmul.f32 %v3239_v36, %v671_v2  ;;  %vm723_vm6 = vweird.f32 %v3239_v36 }
 0x191   :  { %3242 = vrcp.f32 %v864_v38  ;;  %v673_v59 = vmul.f32 %v4340_v42, %v4322_v6  ;;  %vm724_vm7 = vmor %vm722_vm3, %vm723_vm6  ;;  %v729_v39 = vor.u32 1.1754944e-38, %v728_v58  ;;  %v875_v18 = vand.u32 2147483647, %v864_v38 }
 0x192   :  { %3244 = vrcp.f32 %v670_v44  ;;  %v857_v10 = vmul.f32 %v3237_v3, %v856_v48  ;;  %v719_v56 = vsub.f32 1.0, %v718_v54  ;;  %v713_v23 = vand.u32 2147483648, %v670_v44 }
 0x193   :  { %v674_v61 = vsub.f32 1.0, %v673_v59  ;;  %v711_v22 = vand.u32 2147483647, %v670_v44  ;;  %vm871_vm14 = vweird.f32 %v864_v38  ;;  %vm707_vm11 = vweird.f32 %v670_v44 }
 0x194   :  { %v858_v16 = vmul.f32 %v857_v10, %v4315_v31  ;;  %v720_v27 = vmul.f32 %v3239_v36, %v719_v56  ;;  %vm678_vm12 = vweird.f32 %v4340_v42  ;;  %vm876_vm13 = vcmp.eq.f32.partialorder %v875_v18, 8.507059e+37 }
 0x195   :  { %v675_v1 = vmul.f32 %v4340_v42, %v674_v61  ;;  %v714_v40 = vor.u32 1.1754944e-38, %v713_v23  ;;  %vm712_vm0 = vcmp.eq.f32.partialorder %v711_v22, 8.507059e+37  ;;  %v683_v58 = vand.u32 2147483648, %v4322_v6 }
 0x196   :  { %v860_v49 = vsel %vm859_vm2, %v4315_v31, %v858_v16  ;;  %v721_v12 = vadd.f32 %v3239_v36, %v720_v27  ;;  %v877_v31 = vand.u32 2147483648, %v864_v38  ;;  %vm677_vm2 = vweird.f32 %v4322_v6 }
 0x197   :  { %v3243_v17 = vpop.eup %3242  ;;  %v863_v29 = vsel %vm861_vm5, %v862_v50, %v860_v49  ;;  %v676_v48 = vadd.f32 %v4340_v42, %v675_v1  ;;  %v681_v59 = vand.u32 2147483647, %v4322_v6  ;;  %vm679_vm5 = vmor %vm677_vm2, %vm678_vm12  ;;  %v4448_v1 = vmov 0.0  }
 0x198   :  { %v3245_v30 = vpop.eup %3244  ;;  %v725_v62 = vsel %vm724_vm7, %v3239_v36, %v721_v12  ;;  %v867_v7 = vmul.f32 %v3243_v17, %v864_v38  ;;  %v4349_v14 = vmax.f32 %v863_v29, 1e-12  ;;  %vm872_vm4 = vweird.f32 %v3243_v17 }
 0x199   :  { %v730_v3 = vsel %vm727_vm9, %v729_v39, %v725_v62  ;;  %v703_v35 = vmul.f32 %v3245_v30, %v670_v44  ;;  %vm708_vm8 = vweird.f32 %v3245_v30  ;;  %vm873_vm10 = vmor %vm871_vm14, %vm872_vm4  ;;  %v878_v24 = vor.u32 1.1754944e-38, %v877_v31  ;;  %v1017_v62 = vld [vmem:[%s5249_s2 + $0x8] sm:$0xff] }
 0x19a   :  { %v4352_v51 = vmul.f32 %v730_v3, %v4169_v43  ;;  %v868_v33 = vsub.f32 1.0, %v867_v7  ;;  %3246 = vrcp.f32 %v4349_v14  ;;  %vm709_vm15 = vmor %vm707_vm11, %vm708_vm8  ;;  %v892_v27 = vand.u32 2147483648, %v4349_v14  ;;  %v1016_v7 = vld [vmem:[%s5249_s2] sm:$0xff] }
 0x19b   :  { %v704_v2 = vsub.f32 1.0, %v703_v35  ;;  %v890_v49 = vand.u32 2147483647, %v4349_v14  ;;  %vm682_vm3 = vcmp.eq.f32.partialorder %v681_v59, 8.507059e+37  ;;  %vm886_vm7 = vweird.f32 %v4349_v14 }
 0x19c   :  { %908 = vmatpush.xpose.msra.mxu0 %v4352_v51  ;;  %937 = vmatpush.xpose.msra.mxu1 %v4352_v51  ;;  %v869_v63 = vmul.f32 %v3243_v17, %v868_v33  ;;  %v4442_v33 = vmov 0.0   ;;  %v4444_v31 = vmov 0.0  }
 0x19d   :  { %v705_v4 = vmul.f32 %v3245_v30, %v704_v2  ;;  %vm891_vm4 = vcmp.eq.f32.partialorder %v890_v49, 8.507059e+37  ;;  %v4446_v2 = vmov 0.0  }
 0x19e   :  { %v870_v43 = vadd.f32 %v3243_v17, %v869_v63 }
 0x19f   :  { %v706_v28 = vadd.f32 %v3245_v30, %v705_v4 }
 0x1a0   :  { %v3247_v32 = vpop.eup %3246  ;;  %v874_v36 = vsel %vm873_vm10, %v3243_v17, %v870_v43  ;;  %v893_v17 = vor.u32 1.1754944e-38, %v892_v27 }
 0x1a1   :  { %v879_v54 = vsel %vm876_vm13, %v878_v24, %v874_v36  ;;  %v710_v10 = vsel %vm709_vm15, %v3245_v30, %v706_v28  ;;  %v882_v56 = vmul.f32 %v3247_v32, %v4349_v14  ;;  %vm887_vm6 = vweird.f32 %v3247_v32 }
 0x1a2   :  { %v880_v38 = vmul.f32 %v879_v54, %v4176_v26  ;;  %v715_v50 = vsel %vm712_vm0, %v714_v40, %v710_v10  ;;  %v680_v26 = vsel %vm679_vm5, %v4340_v42, %v676_v48  ;;  %vm888_vm9 = vmor %vm886_vm7, %vm887_vm6  ;;  %v3498_v30 = vmov 0  }
 0x1a3   :  { %v716_v44 = vmul.f32 %v715_v50, %v4174_v11  ;;  %v883_v16 = vsub.f32 1.0, %v882_v56  ;;  %v684_v11 = vor.u32 1.1754944e-38, %v683_v58  ;;  %3222 = vset.pattern.permute.xlu1 %v3498_v30  ;;  %3221 = vset.pattern.permute.xlu0 %v3498_v30 }
 0x1a4   :  { %1009 = vmatmul.f32.vlgmr.msra.gmra.mxu3 %v880_v38  ;;  %1024 = vperm.xlu1 %3222, %v1017_v62  }
 0x1a5   :  { %909 = vmatpush.xpose.msra.mxu0 %v716_v44  ;;  %938 = vmatpush.xpose.msra.mxu1 %v716_v44  ;;  %v884_v46 = vmul.f32 %v3247_v32, %v883_v16  ;;  %v685_v6 = vsel %vm682_vm3, %v684_v11, %v680_v26 }
 0x1a6   :  { %986 = vmatmul.f32.gmra.mxu2 %v716_v44  ;;  %v686_v39 = vmul.f32 %v685_v6, %v4165_v55  ;;  %v1018_v55 = vld [vmem:[%s5249_s2 + $0x10] sm:$0xff]  ;;  %1021 = vperm.xlu0 %3221, %v1016_v7  }
 0x1a7   :  { %v885_v12 = vadd.f32 %v3247_v32, %v884_v46  ;;  %3223 = vset.pattern.permute.xlu2 %v3498_v30 }
 0x1a8   :  { %1027 = vperm.xlu2 %3223, %v1018_v55  }
 0x1a9   :  { %910 = vmatpush.xpose.msra.mxu0 %v4325_v47  ;;  %939 = vmatpush.xpose.msra.mxu1 %v4325_v47  ;;  %v889_v29 = vsel %vm888_vm9, %v3247_v32, %v885_v12 }
 0x1aa   :  { %v894_v42 = vsel %vm891_vm4, %v893_v17, %v889_v29 }
 0x1ab   :  { %v895_v61 = vmul.f32 %v894_v42, %v4182_v52  ;;  %v1019_v52 = vld [vmem:[%s5249_s2 + $0x18] sm:$0x1] }
 0x1ad   :  { %911 = vmatpush.xpose.msra.mxu0 %v686_v39  ;;  %940 = vmatpush.xpose.msra.mxu1 %v686_v39 }
 0x1ae   :  { %989 = vmatmul.f32.gmra.mxu2 %v4352_v51  ;;  %1012 = vmatmul.f32.gmra.mxu3 %v895_v61 }
 0x1b0   :  { %912 = vmatmul.f32.vlgmr.msra.gmra.mxu0 %v686_v39  ;;  %941 = vmatmul.f32.vlgmr.msra.gmra.mxu1 %v880_v38 }
 0x1b1   :  { %964 = vmatpush.msrb.mxu1 %v4189_v60  ;;  %1030 = vperm.xlu2 %3223, %v1019_v52  }
 0x1b3   :  { %965 = vmatpush.msrb.mxu1 %v4196_v0 }
 0x1b5   :  { %966 = vmatpush.msrb.mxu1 %v4203_v5  ;;  %v5278_v5 = vld [vmem:[#allocation2_spill] sm:$0xff] }
 0x1b7   :  { %967 = vmatpush.msrb.mxu1 %v4210_v8 }
 0x1b8   :  { %915 = vmatmul.f32.gmra.mxu0 %v4325_v47  ;;  %944 = vmatmul.f32.gmra.mxu1 %v895_v61 }
 0x1b9   :  { %968 = vmatpush.msrb.mxu1 %v4217_v13 }
 0x1bb   :  { %969 = vmatpush.msrb.mxu1 %v4224_v19 }
 0x1bd   :  { %970 = vmatpush.msrb.mxu1 %v4231_v21 }
 0x1bf   :  { %971 = vmatpush.msrb.mxu1 %v4238_v25 }
 0x1c0   :  { %918 = vmatmul.f32.gmra.mxu0 %v716_v44 }
 0x1c1   :  { %972 = vmatpush.msrb.mxu1 %v4245_v37 }
 0x1c3   :  { %973 = vmatpush.msrb.mxu1 %v4252_v41 }
 0x1c5   :  { %974 = vmatpush.msrb.mxu1 %v4259_v45 }
 0x1c7   :  { %975 = vmatpush.msrb.mxu1 %v4266_v57 }
 0x1c8   :  { %921 = vmatmul.f32.gmra.mxu0 %v4352_v51 }
 0x1c9   :  { %976 = vmatpush.msrb.mxu1 %v4276_v9  ;;  %v1046_v9 = vld [vmem:[%s5250_s4] sm:$0x1]   ;;  %s4460_s4 = smov 0  }
 0x1cb   :  { %977 = vmatpush.msrb.mxu1 %v4283_v20 }
 0x1cd   :  { %978 = vmatpush.msrb.mxu1 %v4290_v34 }
 0x1cf   :  { %979 = vmatpush.msrb.mxu1 %v4297_v53 }
 0x1d0   :  { %980 = vmatmul.f32.vlgmr.msrb.gmra.mxu1 %v686_v39 }
 0x202   :  { %v1028_v0 = vpop.permute.xlu2 %1027 }
 0x203   :  { %vm1034_vm8 = vcmp.eq.s32.totalorder %v5278_v5, %v1028_v0 }
 0x204   :  { %v4409_v8 = vsel %vm1034_vm8, 1.0, %v3497_v15 }
 0x20a   :  { %v984_v60 = vpop.f32.mrf.mxu2  }
 0x20b   :  { %v1031_v13 = vpop.permute.xlu2 %1030 }
 0x20c   :  { %vm1035_vm14 = vcmp.eq.s32.totalorder %v5278_v5, %v1031_v13 }
 0x20d   :  { %v4413_v19 = vsel %vm1035_vm14, 1.0, %v3497_v15 }
 0x216   :  { %v1025_v21 = vpop.permute.xlu1 %1024 }
 0x217   :  { %vm1033_vm10 = vcmp.eq.s32.totalorder %v5278_v5, %v1025_v21 }
 0x218   :  { %v1022_v25 = vpop.permute.xlu0 %1021  ;;  %v4420_v41 = vsel %vm1033_vm10, 1.0, %v3497_v15 }
 0x219   :  { %vm1032_vm11 = vcmp.eq.s32.totalorder %v5278_v5, %v1022_v25 }
 0x21a   :  { %v4423_v45 = vsel %vm1032_vm11, 1.0, %v3497_v15 }
 0x227   :  { %v4417_v37 = vpop.f32.mrf.mxu3 }
 0x229   :  { %v987_v57 = vpop.f32.mrf.mxu2  }
 0x22d   :  { %v4428_v20 = vpop.f32.mrf.mxu0  ;;  %v4430_v34 = vpop.f32.mrf.mxu1 }
 0x231   :  { %v990_v53 = vpop.f32.mrf.mxu2   ;;  %v4432_v47 = vpop.f32.mrf.mxu3 }
 0x235   :  { %v4434_v14 = vpop.f32.mrf.mxu0  ;;  %v4436_v3 = vpop.f32.mrf.mxu1 }
 0x23d   :  { %v4438_v35 = vpop.f32.mrf.mxu0 }
 0x245   :  { %v4440_v15 = vpop.f32.mrf.mxu0 }
 0x24d   :  { %v981_v51 = vpop.f32.mrf.mxu1  }
 0x24e LB: > { %v1063_v63 = vperm.slane %v3474_v9, 0  ;;  %vm1083_vm12 = vcmask 57344   ;;  %vm1073_vm13 = vcmask 64512   ;;  %v5279_v4 = vld [vmem:[#allocation3_spill] sm:$0xff]  ;;  %s1052_s4 = sadd.s32 1, %s3494_s4   ;;  %s3494_s4 = sphi %s4460_s4, %s1052_s4   ;;  %v3490_v51 = vphi %v981_v51, %v2830_v51   ;;  %v3486_v60 = vphi %v984_v60, %v2831_v60   ;;  %v3482_v57 = vphi %v987_v57, %v2832_v57   ;;  %v3478_v53 = vphi %v990_v53, %v2833_v53   ;;  %v3474_v9 = vphi %v1046_v9, %v5288_v9   ;;  %v3470_v1 = vphi %v4448_v1, %v5287_v1   ;;  %v3466_v2 = vphi %v4446_v2, %v5286_v2   ;;  %v3462_v31 = vphi %v4444_v31, %v5285_v31   ;;  %v3458_v33 = vphi %v4442_v33, %v5284_v33  }
 0x24f   : > { %p1049_p0 = scmp.ge.s32.totalorder %s1052_s4, 10  }
 0x250   : > { %v1068_v18 = vadd.f32 %v3478_v53, %v1063_v63  ;;  %v1066_v23 = vadd.f32 %v3486_v60, %v1063_v63  ;;  %v1067_v24 = vadd.f32 %v3482_v57, %v1063_v63  ;;  %v1065_v28 = vadd.f32 %v3490_v51, %v1063_v63 }
 0x252   : > { %v1072_v22 = vadd.f32 %v1068_v18, %v5279_v4  ;;  %v1070_v43 = vadd.f32 %v1066_v23, %v5279_v4  ;;  %v1071_v40 = vadd.f32 %v1067_v24, %v5279_v4  ;;  %v1069_v48 = vadd.f32 %v1065_v28, %v5279_v4 }
 0x254   : > { %v1084_v32 = vsel %vm1083_vm12, %v1072_v22, -inf  ;;  %v1077_v36 = vsel %vm1073_vm13, %v1070_v43, -inf  ;;  %v1080_v54 = vsel %vm1073_vm13, %v1071_v40, -inf  ;;  %v1074_v10 = vsel %vm1073_vm13, %v1069_v48, -inf }
 0x255   : > { %1085 = vmax.xlane.f32.xlu0 %v1084_v32  ;;  %1078 = vmax.xlane.f32.xlu1 %v1077_v36 }
 0x25d   : > { %1081 = vmax.xlane.f32.xlu0 %v1080_v54  ;;  %1075 = vmax.xlane.f32.xlu1 %v1074_v10 }
 0x2c8   : > { %v1086_v56 = vpop.xlane.xlu0 %1085  ;;  %v1079_v38 = vpop.xlane.xlu1 %1078 }
 0x2c9   : > { %v1090_v50 = vsub.f32 %v1072_v22, %v1086_v56  ;;  %v1088_v58 = vsub.f32 %v1070_v43, %v1079_v38 }
 0x2cb   : > { %v1097_v44 = vmul.f32 1.442695, %v1090_v50  ;;  %v1093_v59 = vmul.f32 1.442695, %v1088_v58 }
 0x2cd   : > { %3248 = vpow2.f32 %v1097_v44 }
 0x2ce   : > { %3250 = vpow2.f32 %v1093_v59 }
 0x2d0   : > { %v1082_v16 = vpop.xlane.xlu0 %1081  ;;  %v1076_v27 = vpop.xlane.xlu1 %1075 }
 0x2d1   : > { %v1089_v26 = vsub.f32 %v1071_v40, %v1082_v16  ;;  %v1087_v46 = vsub.f32 %v1069_v48, %v1076_v27 }
 0x2d3   : > { %v3249_v49 = vpop.eup %3248  ;;  %v1095_v11 = vmul.f32 1.442695, %v1089_v26  ;;  %v1091_v12 = vmul.f32 1.442695, %v1087_v46 }
 0x2d4   : > { %v4505_v6 = vpop.eup %3250  ;;  %v1108_v17 = vsel %vm1083_vm12, %v3249_v49, 0.0 }
 0x2d5   : > { %3252 = vpow2.f32 %v1095_v11  ;;  %1109 = vadd.xlane.f32.xlu2 %v1108_v17  ;;  %v1102_v29 = vsel %vm1073_vm13, %v4505_v6, 0.0 }
 0x2d6   : > { %3254 = vpow2.f32 %v1091_v12  ;;  %1103 = vadd.xlane.f32.xlu0 %v1102_v29 }
 0x2db   : > { %v4510_v42 = vpop.eup %3252 }
 0x2dc   : > { %v4512_v39 = vpop.eup %3254  ;;  %v1105_v61 = vsel %vm1073_vm13, %v4510_v42, 0.0 }
 0x2dd   : > { %1106 = vadd.xlane.f32.xlu2 %v1105_v61  ;;  %v1099_v30 = vsel %vm1073_vm13, %v4512_v39, 0.0 }
 0x2de   : > { %1100 = vadd.xlane.f32.xlu1 %v1099_v30 }
 0x348   : > { %v1110_v62 = vpop.xlane.xlu2 %1109 }
 0x349   : > { %3256 = vrcp.f32 %v1110_v62  ;;  %v1104_v7 = vpop.xlane.xlu0 %1103  ;;  %v1167_v63 = vand.u32 2147483648, %v1110_v62  ;;  %v1165_v22 = vand.u32 2147483647, %v1110_v62  ;;  %vm1161_vm2 = vweird.f32 %v1110_v62 }
 0x34a   : > { %3258 = vrcp.f32 %v1104_v7  ;;  %v1137_v43 = vand.u32 2147483648, %v1104_v7  ;;  %v1135_v28 = vand.u32 2147483647, %v1104_v7  ;;  %vm1131_vm6 = vweird.f32 %v1104_v7 }
 0x34b   : > { %v1168_v40 = vor.u32 1.1754944e-38, %v1167_v63  ;;  %vm1166_vm3 = vcmp.eq.f32.partialorder %v1165_v22, 8.507059e+37 }
 0x34c   : > { %v1138_v10 = vor.u32 1.1754944e-38, %v1137_v43  ;;  %vm1136_vm9 = vcmp.eq.f32.partialorder %v1135_v28, 8.507059e+37 }
 0x34f   : > { %v3257_v55 = vpop.eup %3256 }
 0x350   : > { %v3259_v52 = vpop.eup %3258  ;;  %v1157_v0 = vmul.f32 %v3257_v55, %v1110_v62  ;;  %v1107_v5 = vpop.xlane.xlu2 %1106  ;;  %vm1162_vm15 = vweird.f32 %v3257_v55 }
 0x351   : > { %v1127_v13 = vmul.f32 %v3259_v52, %v1104_v7  ;;  %3260 = vrcp.f32 %v1107_v5  ;;  %v1101_v21 = vpop.xlane.xlu1 %1100  ;;  %vm1132_vm0 = vweird.f32 %v3259_v52  ;;  %vm1163_vm5 = vmor %vm1161_vm2, %vm1162_vm15  ;;  %v1150_v26 = vand.u32 2147483647, %v1107_v5 }
 0x352   : > { %v1158_v25 = vsub.f32 1.0, %v1157_v0  ;;  %3262 = vrcp.f32 %v1101_v21  ;;  %vm1133_vm7 = vmor %vm1131_vm6, %vm1132_vm0  ;;  %v1152_v46 = vand.u32 2147483648, %v1107_v5  ;;  %v1122_v17 = vand.u32 2147483648, %v1101_v21 }
 0x353   : > { %v1128_v18 = vsub.f32 1.0, %v1127_v13  ;;  %v1120_v30 = vand.u32 2147483647, %v1101_v21  ;;  %vm1146_vm14 = vweird.f32 %v1107_v5  ;;  %vm1116_vm11 = vweird.f32 %v1101_v21 }
 0x354   : > { %v1159_v23 = vmul.f32 %v3257_v55, %v1158_v25  ;;  %vm1151_vm15 = vcmp.eq.f32.partialorder %v1150_v26, 8.507059e+37  ;;  %v1123_v0 = vor.u32 1.1754944e-38, %v1122_v17  ;;  %v1181_v26 = vmul.f32 0.99, %v3482_v57 }
 0x355   : > { %v1129_v24 = vmul.f32 %v3259_v52, %v1128_v18  ;;  %vm1121_vm2 = vcmp.eq.f32.partialorder %v1120_v30, 8.507059e+37  ;;  %v1179_v57 = vmul.f32 0.99, %v3490_v51 }
 0x356   : > { %v1160_v32 = vadd.f32 %v3257_v55, %v1159_v23 }
 0x357   : > { %v3261_v36 = vpop.eup %3260  ;;  %v1130_v48 = vadd.f32 %v3259_v52, %v1129_v24 }
 0x358   : > { %v3263_v54 = vpop.eup %3262  ;;  %v1142_v56 = vmul.f32 %v3261_v36, %v1107_v5  ;;  %v1164_v38 = vsel %vm1163_vm5, %v3257_v55, %v1160_v32  ;;  %vm1147_vm4 = vweird.f32 %v3261_v36  ;;  %vm1183_vm5 = vcmask 203776  }
 0x359   : > { %v1112_v50 = vmul.f32 %v3263_v54, %v1101_v21  ;;  %v1169_v58 = vsel %vm1166_vm3, %v1168_v40, %v1164_v38  ;;  %v1134_v44 = vsel %vm1133_vm7, %v3259_v52, %v1130_v48  ;;  %vm1117_vm8 = vweird.f32 %v3263_v54  ;;  %vm1148_vm10 = vmor %vm1146_vm14, %vm1147_vm4 }
 0x35a   : > { %v1143_v59 = vsub.f32 1.0, %v1142_v56  ;;  %v1170_v16 = vmul.f32 %v3249_v49, %v1169_v58  ;;  %v1139_v27 = vsel %vm1136_vm9, %v1138_v10, %v1134_v44  ;;  %v1153_v49 = vor.u32 1.1754944e-38, %v1152_v46  ;;  %vm1118_vm0 = vmor %vm1116_vm11, %vm1117_vm8 }
 0x35b   : > { %v1113_v11 = vsub.f32 1.0, %v1112_v50  ;;  %v1140_v62 = vmul.f32 %v4505_v6, %v1139_v27  ;;  %v1232_v58 = vmul.f32 0.99, %v3474_v9  ;;  %v1180_v46 = vmul.f32 0.99, %v3486_v60 }
 0x35c   : > { %v1144_v12 = vmul.f32 %v3261_v36, %v1143_v59  ;;  %v1174_v29 = vsub.f32 %v1170_v16, %v4413_v19 }
 0x35d   : > { %v1114_v61 = vmul.f32 %v3263_v54, %v1113_v11  ;;  %v1172_v5 = vsub.f32 %v1140_v62, %v4420_v41 }
 0x35e   : > { %v1145_v7 = vadd.f32 %v3261_v36, %v1144_v12  ;;  %v4520_v55 = vmul.f32 0.04, %v1174_v29 }
 0x35f   : > { %v1115_v52 = vadd.f32 %v3263_v54, %v1114_v61  ;;  %v4530_v22 = vmul.f32 0.04, %v1172_v5 }
 0x360   : > { %3057 = vmatpush.msk.msra.mxu0 %vm616_vm1, %v4520_v55  ;;  %3126 = vmatpush.msk.msra.mxu2 %vm616_vm1, %v4520_v55  ;;  %v1149_v13 = vsel %vm1148_vm10, %v3261_v36, %v1145_v7  ;;  %v1238_v48 = vsel %vm1083_vm12, %v4520_v55, 0.0  ;;  %v1182_v7 = vmul.f32 0.99, %v3478_v53 }
 0x361   : > { %v1154_v6 = vsel %vm1151_vm15, %v1153_v49, %v1149_v13  ;;  %v1119_v25 = vsel %vm1118_vm0, %v3263_v54, %v1115_v52 }
 0x362   : > { %v1155_v63 = vmul.f32 %v4510_v42, %v1154_v6  ;;  %v1124_v18 = vsel %vm1121_vm2, %v1123_v0, %v1119_v25  ;;  %v1234_v42 = vsel %vm1073_vm13, %v4530_v22, 0.0 }
 0x363   : > { %v1125_v21 = vmul.f32 %v4512_v39, %v1124_v18 }
 0x364   : > { %v1173_v23 = vsub.f32 %v1155_v63, %v4409_v8 }
 0x365   : > { %v1171_v43 = vsub.f32 %v1125_v21, %v4423_v45 }
 0x366   : > { %v4533_v24 = vmul.f32 0.04, %v1173_v23 }
 0x367   : > { %v4535_v28 = vmul.f32 0.04, %v1171_v43 }
 0x368   : > { %1212 = vmatpush.msra.mxu0 %v4533_v24  ;;  %3127 = vmatpush.msra.mxu2 %v4533_v24  ;;  %v1236_v36 = vsel %vm1073_vm13, %v4533_v24, 0.0 }
 0x369   : > { %v1233_v39 = vsel %vm1073_vm13, %v4535_v28, 0.0 }
 0x36a   : > { %1213 = vmatpush.msra.mxu0 %v4530_v22  ;;  %3128 = vmatpush.msra.mxu2 %v4530_v22  ;;  %v1235_v32 = vadd.f32 %v1234_v42, %v1233_v39 }
 0x36c   : > { %1214 = vmatpush.msra.mxu0 %v4535_v28  ;;  %v1237_v40 = vadd.f32 %v1236_v36, %v1235_v32  ;;  %3129 = vmatpush.msra.mxu2 %v4535_v28 }
 0x36d   : > { %3058 = vmatmul.msk.f32.vlgmr.msra.gmra.mxu0 %vm1183_vm5, %v4428_v20  ;;  %3060 = vmatmul.msk.f32.vlgmr.msra.gmra.mxu2 %vm1183_vm5, %v4438_v35 }
 0x36e   : > { %v1239_v54 = vadd.f32 %v1238_v48, %v1237_v40 }
 0x370   : > { %v1240_v10 = vrot.slane %v1239_v54, 4 }
 0x372   : > { %v1241_v56 = vadd.f32 %v1240_v10, %v1239_v54 }
 0x374   : > { %v1242_v38 = vrot.slane %v1241_v56, 2 }
 0x375   : > { %3059 = vmatmul.msk.f32.gmra.mxu0 %vm1183_vm5, %v4434_v14  ;;  %3061 = vmatmul.msk.f32.gmra.mxu2 %vm1183_vm5, %v4440_v15 }
 0x376   : > { %v1243_v50 = vadd.f32 %v1242_v38, %v1241_v56 }
 0x378   : > { %v1244_v44 = vrot.slane %v1243_v50, 1 }
 0x37a   : > { %v1245_v59 = vadd.f32 %v1244_v44, %v1243_v50 }
 0x37c   : > { %v4560_v16 = vsub.f32 %v1232_v58, %v1245_v59 }
 0x37e   : > { %v1256_v12 = vperm.slane %v4560_v16, 0 }
 0x3ea   : > { %v1216_v27 = vpop.f32.mrf.mxu0 }
 0x3eb   : > { %v4579_v6 = vsub.f32 %v1179_v57, %v1216_v27 }
 0x3ed   : > { %v1258_v53 = vadd.f32 %v1256_v12, %v4579_v6 }
 0x3ef   : > { %v1262_v63 = vadd.f32 %v1258_v53, %v5279_v4 }
 0x3f0   : > { %v1222_v11 = vpop.f32.mrf.mxu2 }
 0x3f1   : > { %v4565_v17 = vsub.f32 %v1181_v26, %v1222_v11  ;;  %v1266_v18 = vsel %vm1073_vm13, %v1262_v63, -inf }
 0x3f2   : > { %v1219_v29 = vpop.f32.mrf.mxu0 }
 0x3f3   : > { %v1260_v61 = vadd.f32 %v1256_v12, %v4565_v17  ;;  %v4568_v30 = vsub.f32 %v1180_v46, %v1219_v29 }
 0x3f5   : > { %v1259_v9 = vadd.f32 %v1256_v12, %v4568_v30  ;;  %v1264_v62 = vadd.f32 %v1260_v61, %v5279_v4 }
 0x3f7   : > { %v1272_v60 = vsel %vm1073_vm13, %v1264_v62, -inf  ;;  %v1263_v49 = vadd.f32 %v1259_v9, %v5279_v4 }
 0x3f8   : > { %1273 = vmax.xlane.f32.xlu0 %v1272_v60  ;;  %v1225_v52 = vpop.f32.mrf.mxu2 }
 0x3f9   : > { %v4576_v0 = vsub.f32 %v1182_v7, %v1225_v52  ;;  %v1269_v13 = vsel %vm1073_vm13, %v1263_v49, -inf }
 0x3fa   : > { %1270 = vmax.xlane.f32.xlu1 %v1269_v13 }
 0x3fb   : > { %v1261_v5 = vadd.f32 %v1256_v12, %v4576_v0 }
 0x3fd   : > { %v1265_v25 = vadd.f32 %v1261_v5, %v5279_v4 }
 0x3ff   : > { %v1275_v51 = vsel %vm1083_vm12, %v1265_v25, -inf }
 0x400   : > { %1276 = vmax.xlane.f32.xlu2 %v1275_v51 }
 0x408   : > { %1267 = vmax.xlane.f32.xlu2 %v1266_v18 }
 0x46b   : > { %v1274_v21 = vpop.xlane.xlu0 %1273 }
 0x46c   : > { %v1280_v23 = vsub.f32 %v1264_v62, %v1274_v21 }
 0x46d   : > { %v1271_v43 = vpop.xlane.xlu1 %1270 }
 0x46e   : > { %v1286_v42 = vmul.f32 1.442695, %v1280_v23  ;;  %v1279_v39 = vsub.f32 %v1263_v49, %v1271_v43  ;;  %v1249_v43 = vmul.f32 0.99, %v3462_v31 }
 0x470   : > { %3264 = vpow2.f32 %v1286_v42  ;;  %v1284_v32 = vmul.f32 1.442695, %v1279_v39 }
 0x472   : > { %3266 = vpow2.f32 %v1284_v32 }
 0x473   : > { %v1277_v36 = vpop.xlane.xlu2 %1276 }
 0x474   : > { %v1281_v40 = vsub.f32 %v1265_v25, %v1277_v36  ;;  %v1248_v25 = vmul.f32 0.99, %v3466_v2 }
 0x476   : > { %v3265_v48 = vpop.eup %3264  ;;  %v1288_v54 = vmul.f32 1.442695, %v1281_v40  ;;  %v1252_v40 = vadd.f32 %v1248_v25, %v4530_v22 }
 0x477   : > { %v1296_v10 = vsel %vm1073_vm13, %v3265_v48, 0.0 }
 0x478   : > { %v4588_v56 = vpop.eup %3266  ;;  %3268 = vpow2.f32 %v1288_v54  ;;  %1297 = vadd.xlane.f32.xlu1 %v1296_v10 }
 0x479   : > { %v1293_v38 = vsel %vm1073_vm13, %v4588_v56, 0.0 }
 0x47a   : > { %1294 = vadd.xlane.f32.xlu2 %v1293_v38 }
 0x47b   : > { %v1268_v50 = vpop.xlane.xlu2 %1267 }
 0x47c   : > { %v1278_v58 = vsub.f32 %v1262_v63, %v1268_v50 }
 0x47e   : > { %v4592_v44 = vpop.eup %3268  ;;  %v1282_v59 = vmul.f32 1.442695, %v1278_v58 }
 0x47f   : > { %v1299_v27 = vsel %vm1083_vm12, %v4592_v44, 0.0 }
 0x480   : > { %3270 = vpow2.f32 %v1282_v59  ;;  %1300 = vadd.xlane.f32.xlu0 %v1299_v27  ;;  %v1253_v59 = vadd.f32 %v1249_v43, %v4533_v24 }
 0x486   : > { %v4596_v26 = vpop.eup %3270 }
 0x487   : > { %v1290_v46 = vsel %vm1073_vm13, %v4596_v26, 0.0 }
 0x488   : > { %1291 = vadd.xlane.f32.xlu0 %v1290_v46 }
 0x4eb   : > { %v1298_v11 = vpop.xlane.xlu1 %1297 }
 0x4ec   : > { %3272 = vrcp.f32 %v1298_v11  ;;  %v1343_v60 = vand.u32 2147483648, %v1298_v11  ;;  %vm1337_vm3 = vweird.f32 %v1298_v11  ;;  %v1341_v13 = vand.u32 2147483647, %v1298_v11 }
 0x4ed   : > { %v1295_v12 = vpop.xlane.xlu2 %1294 }
 0x4ee   : > { %3274 = vrcp.f32 %v1295_v12  ;;  %v1328_v5 = vand.u32 2147483648, %v1295_v12  ;;  %v1326_v63 = vand.u32 2147483647, %v1295_v12  ;;  %v1344_v23 = vor.u32 1.1754944e-38, %v1343_v60 }
 0x4ef   : > { %vm1322_vm4 = vweird.f32 %v1295_v12  ;;  %vm1342_vm8 = vcmp.eq.f32.partialorder %v1341_v13, 8.507059e+37  ;;  %v1427_v60 = vmul.f32 0.99, %v1253_v59 }
 0x4f0   : > { %v1329_v2 = vor.u32 1.1754944e-38, %v1328_v5  ;;  %vm1327_vm10 = vcmp.eq.f32.partialorder %v1326_v63, 8.507059e+37 }
 0x4f2   : > { %v3273_v29 = vpop.eup %3272 }
 0x4f3   : > { %v1333_v61 = vmul.f32 %v3273_v29, %v1298_v11  ;;  %v1301_v9 = vpop.xlane.xlu0 %1300  ;;  %vm1338_vm6 = vweird.f32 %v3273_v29 }
 0x4f4   : > { %v3275_v62 = vpop.eup %3274  ;;  %3276 = vrcp.f32 %v1301_v9  ;;  %vm4601_vm9 = vmor %vm1337_vm3, %vm1338_vm6  ;;  %v1358_v50 = vand.u32 2147483648, %v1301_v9  ;;  %v1356_v46 = vand.u32 2147483647, %v1301_v9  ;;  %vm1352_vm15 = vweird.f32 %v1301_v9 }
 0x4f5   : > { %v1334_v7 = vsub.f32 1.0, %v1333_v61  ;;  %v1318_v57 = vmul.f32 %v3275_v62, %v1295_v12  ;;  %vm1323_vm7 = vweird.f32 %v3275_v62 }
 0x4f6   : > { %vm1324_vm14 = vmor %vm1322_vm4, %vm1323_vm7  ;;  %vm1357_vm2 = vcmp.eq.f32.partialorder %v1356_v46, 8.507059e+37 }
 0x4f7   : > { %v1335_v49 = vmul.f32 %v3273_v29, %v1334_v7  ;;  %v1319_v52 = vsub.f32 1.0, %v1318_v57  ;;  %v1426_v7 = vmul.f32 0.99, %v1252_v40 }
 0x4f9   : > { %v1336_v53 = vadd.f32 %v3273_v29, %v1335_v49  ;;  %v1320_v51 = vmul.f32 %v3275_v62, %v1319_v52 }
 0x4fa   : > { %v3277_v18 = vpop.eup %3276 }
 0x4fb   : > { %v1321_v42 = vadd.f32 %v3275_v62, %v1320_v51  ;;  %v1348_v39 = vmul.f32 %v3277_v18, %v1301_v9  ;;  %v1292_v32 = vpop.xlane.xlu0 %1291  ;;  %v1340_v36 = vsel %vm4601_vm9, %v3273_v29, %v1336_v53  ;;  %vm1353_vm11 = vweird.f32 %v3277_v18 }
 0x4fc   : > { %3278 = vrcp.f32 %v1292_v32  ;;  %v1345_v10 = vsel %vm1342_vm8, %v1344_v23, %v1340_v36  ;;  %v1250_v29 = vmul.f32 0.99, %v3458_v33  ;;  %vm1354_vm0 = vmor %vm1352_vm15, %vm1353_vm11  ;;  %v1313_v53 = vand.u32 2147483648, %v1292_v32 }
 0x4fd   : > { %v1349_v54 = vsub.f32 1.0, %v1348_v39  ;;  %v1325_v38 = vsel %vm1324_vm14, %v3275_v62, %v1321_v42  ;;  %v1346_v58 = vmul.f32 %v3265_v48, %v1345_v10  ;;  %v1359_v48 = vor.u32 1.1754944e-38, %v1358_v50 }
 0x4fe   : > { %v1330_v31 = vsel %vm1327_vm10, %v1329_v2, %v1325_v38  ;;  %v1254_v9 = vadd.f32 %v1250_v29, %v4520_v55  ;;  %v1311_v63 = vand.u32 2147483647, %v1292_v32  ;;  %v1247_v23 = vmul.f32 0.99, %v3470_v1 }
 0x4ff   : > { %v1350_v27 = vmul.f32 %v3277_v18, %v1349_v54  ;;  %v1331_v11 = vmul.f32 %v4588_v56, %v1330_v31  ;;  %v1364_v12 = vsub.f32 %v1346_v58, %v4409_v8  ;;  %vm1307_vm3 = vweird.f32 %v1292_v32 }
 0x500   : > { %v1428_v42 = vmul.f32 0.99, %v1254_v9  ;;  %v1314_v39 = vor.u32 1.1754944e-38, %v1313_v53  ;;  %vm1312_vm9 = vcmp.eq.f32.partialorder %v1311_v63, 8.507059e+37  ;;  %v1251_v1 = vadd.f32 %v1247_v23, %v4535_v28 }
 0x501   : > { %v1351_v61 = vadd.f32 %v3277_v18, %v1350_v27  ;;  %v1363_v22 = vsub.f32 %v1331_v11, %v4420_v41  ;;  %v1368_v57 = vmul.f32 0.04, %v1364_v12  ;;  %v1373_v63 = vmul.f32 0.99, %v4576_v0 }
 0x502   : > { %v3279_v62 = vpop.eup %3278  ;;  %v1425_v54 = vmul.f32 0.99, %v1251_v1 }
 0x503   : > { %v1303_v24 = vmul.f32 %v3279_v62, %v1292_v32  ;;  %v1355_v49 = vsel %vm1354_vm0, %v3277_v18, %v1351_v61  ;;  %v1367_v52 = vmul.f32 0.04, %v1363_v22  ;;  %v4614_v56 = vadd.f32 %v1427_v60, %v1368_v57 }
 0x504   : > { %v1360_v13 = vsel %vm1357_vm2, %v1359_v48, %v1355_v49  ;;  %vm1308_vm6 = vweird.f32 %v3279_v62  ;;  %v1414_v28 = vsel %vm1073_vm13, %v1368_v57, 0.0  ;;  %v1410_v61 = vmul.f32 0.99, %v4560_v16 }
 0x505   : > { %v1304_v5 = vsub.f32 1.0, %v1303_v24  ;;  %v1361_v33 = vmul.f32 %v4592_v44, %v1360_v13  ;;  %v4618_v25 = vadd.f32 %v1426_v7, %v1367_v52  ;;  %vm1309_vm7 = vmor %vm1307_vm3, %vm1308_vm6  ;;  %v1412_v10 = vsel %vm1073_vm13, %v1367_v52, 0.0 }
 0x506   : > { %v1372_v49 = vmul.f32 0.99, %v4565_v17 }
 0x507   : > { %v1305_v51 = vmul.f32 %v3279_v62, %v1304_v5  ;;  %v1365_v21 = vsub.f32 %v1361_v33, %v4413_v19  ;;  %v1371_v5 = vmul.f32 0.99, %v4568_v30 }
 0x509   : > { %v1306_v18 = vadd.f32 %v3279_v62, %v1305_v51  ;;  %v1369_v43 = vmul.f32 0.04, %v1365_v21 }
 0x50b   : > { %3062 = vmatpush.msk.msra.mxu1 %vm616_vm1, %v1369_v43  ;;  %3130 = vmatpush.msk.msra.mxu3 %vm616_vm1, %v1369_v43  ;;  %v1310_v55 = vsel %vm1309_vm7, %v3279_v62, %v1306_v18  ;;  %v4624_v44 = vadd.f32 %v1428_v42, %v1369_v43  ;;  %v1416_v31 = vsel %vm1083_vm12, %v1369_v43, 0.0  ;;  %v1370_v62 = vmul.f32 0.99, %v4579_v6 }
 0x50c   : > { %v1315_v36 = vsel %vm1312_vm9, %v1314_v39, %v1310_v55 }
 0x50d   : > { %1390 = vmatpush.msra.mxu1 %v1368_v57  ;;  %3131 = vmatpush.msra.mxu3 %v1368_v57  ;;  %v1316_v2 = vmul.f32 %v4596_v26, %v1315_v36 }
 0x50f   : > { %1391 = vmatpush.msra.mxu1 %v1367_v52  ;;  %3132 = vmatpush.msra.mxu3 %v1367_v52  ;;  %v1362_v32 = vsub.f32 %v1316_v2, %v4423_v45 }
 0x511   : > { %v1366_v40 = vmul.f32 0.04, %v1362_v32 }
 0x513   : > { %1392 = vmatpush.msra.mxu1 %v1366_v40  ;;  %v1411_v38 = vsel %vm1073_vm13, %v1366_v40, 0.0  ;;  %3133 = vmatpush.msra.mxu3 %v1366_v40  ;;  %v4631_v50 = vadd.f32 %v1425_v54, %v1366_v40 }
 0x514   : > { %v1413_v58 = vadd.f32 %v1412_v10, %v1411_v38  ;;  %3063 = vmatmul.msk.f32.vlgmr.msra.gmra.mxu1 %vm1183_vm5, %v4428_v20  ;;  %3065 = vmatmul.msk.f32.vlgmr.msra.gmra.mxu3 %vm1183_vm5, %v4438_v35 }
 0x516   : > { %v1415_v26 = vadd.f32 %v1414_v28, %v1413_v58 }
 0x518   : > { %v1417_v59 = vadd.f32 %v1416_v31, %v1415_v26 }
 0x51a   : > { %v1418_v27 = vrot.slane %v1417_v59, 4 }
 0x51c   : > { %3064 = vmatmul.msk.f32.gmra.mxu1 %vm1183_vm5, %v4434_v14  ;;  %3066 = vmatmul.msk.f32.gmra.mxu3 %vm1183_vm5, %v4440_v15  ;;  %v1419_v46 = vadd.f32 %v1418_v27, %v1417_v59 }
 0x51e   : > { %v1420_v11 = vrot.slane %v1419_v46, 2 }
 0x520   : > { %v1421_v12 = vadd.f32 %v1420_v11, %v1419_v46 }
 0x522   : > { %v1422_v29 = vrot.slane %v1421_v12, 1 }
 0x524   : > { %v1423_v22 = vadd.f32 %v1422_v29, %v1421_v12 }
 0x526   : > { %v4644_v7 = vsub.f32 %v1410_v61, %v1423_v22 }
 0x528   : > { %v1434_v60 = vperm.slane %v4644_v7, 0 }
 0x591   : > { %v1394_v48 = vpop.f32.mrf.mxu1 }
 0x592   : > { %v4647_v57 = vsub.f32 %v1370_v62, %v1394_v48 }
 0x594   : > { %v1436_v24 = vadd.f32 %v1434_v60, %v4647_v57 }
 0x596   : > { %v1440_v39 = vadd.f32 %v1436_v24, %v5279_v4 }
 0x597   : > { %v1400_v52 = vpop.f32.mrf.mxu3 }
 0x598   : > { %v4652_v13 = vsub.f32 %v1372_v49, %v1400_v52  ;;  %v1444_v0 = vsel %vm1073_vm13, %v1440_v39, -inf }
 0x599   : > { %v1397_v16 = vpop.f32.mrf.mxu1 }
 0x59a   : > { %v1438_v33 = vadd.f32 %v1434_v60, %v4652_v13  ;;  %v4656_v9 = vsub.f32 %v1371_v5, %v1397_v16 }
 0x59c   : > { %v1437_v6 = vadd.f32 %v1434_v60, %v4656_v9  ;;  %v1442_v53 = vadd.f32 %v1438_v33, %v5279_v4 }
 0x59e   : > { %v1450_v51 = vsel %vm1073_vm13, %v1442_v53, -inf  ;;  %v1441_v17 = vadd.f32 %v1437_v6, %v5279_v4 }
 0x59f   : > { %1451 = vmax.xlane.f32.xlu2 %v1450_v51  ;;  %v1403_v21 = vpop.f32.mrf.mxu3 }
 0x5a0   : > { %v4663_v23 = vsub.f32 %v1373_v63, %v1403_v21  ;;  %v1447_v30 = vsel %vm1073_vm13, %v1441_v17, -inf }
 0x5a1   : > { %1448 = vmax.xlane.f32.xlu0 %v1447_v30 }
 0x5a2   : > { %v1439_v18 = vadd.f32 %v1434_v60, %v4663_v23 }
 0x5a4   : > { %v1443_v43 = vadd.f32 %v1439_v18, %v5279_v4 }
 0x5a6   : > { %v1453_v42 = vsel %vm1083_vm12, %v1443_v43, -inf }
 0x5a7   : > { %1454 = vmax.xlane.f32.xlu1 %v1453_v42 }
 0x5af   : > { %1445 = vmax.xlane.f32.xlu1 %v1444_v0 }
 0x612   : > { %v1452_v55 = vpop.xlane.xlu2 %1451 }
 0x613   : > { %v1458_v36 = vsub.f32 %v1442_v53, %v1452_v55 }
 0x614   : > { %v1449_v2 = vpop.xlane.xlu0 %1448 }
 0x615   : > { %v1464_v1 = vmul.f32 1.442695, %v1458_v36  ;;  %v1457_v32 = vsub.f32 %v1441_v17, %v1449_v2 }
 0x617   : > { %3280 = vpow2.f32 %v1464_v1  ;;  %v1462_v40 = vmul.f32 1.442695, %v1457_v32 }
 0x619   : > { %3282 = vpow2.f32 %v1462_v40 }
 0x61a   : > { %v1455_v54 = vpop.xlane.xlu1 %1454 }
 0x61b   : > { %v1459_v10 = vsub.f32 %v1443_v43, %v1455_v54 }
 0x61d   : > { %v3281_v38 = vpop.eup %3280  ;;  %v1466_v58 = vmul.f32 1.442695, %v1459_v10 }
 0x61e   : > { %v1474_v28 = vsel %vm1073_vm13, %v3281_v38, 0.0 }
 0x61f   : > { %v3283_v26 = vpop.eup %3282  ;;  %3284 = vpow2.f32 %v1466_v58  ;;  %1475 = vadd.xlane.f32.xlu0 %v1474_v28 }
 0x620   : > { %v1471_v31 = vsel %vm1073_vm13, %v3283_v26, 0.0 }
 0x621   : > { %1472 = vadd.xlane.f32.xlu1 %v1471_v31 }
 0x622   : > { %v1446_v59 = vpop.xlane.xlu1 %1445 }
 0x623   : > { %v1456_v27 = vsub.f32 %v1440_v39, %v1446_v59 }
 0x625   : > { %v4673_v46 = vpop.eup %3284  ;;  %v1460_v11 = vmul.f32 1.442695, %v1456_v27  ;;  %v1605_v27 = vmul.f32 0.99, %v4614_v56 }
 0x626   : > { %v1477_v12 = vsel %vm1083_vm12, %v4673_v46, 0.0 }
 0x627   : > { %3286 = vpow2.f32 %v1460_v11  ;;  %1478 = vadd.xlane.f32.xlu2 %v1477_v12 }
 0x62d   : > { %v4677_v29 = vpop.eup %3286 }
 0x62e   : > { %v1468_v61 = vsel %vm1073_vm13, %v4677_v29, 0.0 }
 0x62f   : > { %1469 = vadd.xlane.f32.xlu2 %v1468_v61 }
 0x692   : > { %v1476_v22 = vpop.xlane.xlu0 %1475 }
 0x693   : > { %3288 = vrcp.f32 %v1476_v22  ;;  %v1521_v16 = vand.u32 2147483648, %v1476_v22  ;;  %vm1515_vm8 = vweird.f32 %v1476_v22  ;;  %v1519_v53 = vand.u32 2147483647, %v1476_v22 }
 0x694   : > { %v1473_v62 = vpop.xlane.xlu1 %1472 }
 0x695   : > { %3290 = vrcp.f32 %v1473_v62  ;;  %v1506_v51 = vand.u32 2147483648, %v1473_v62  ;;  %v1504_v17 = vand.u32 2147483647, %v1473_v62  ;;  %v1522_v18 = vor.u32 1.1754944e-38, %v1521_v16 }
 0x696   : > { %vm1500_vm11 = vweird.f32 %v1473_v62  ;;  %vm1520_vm0 = vcmp.eq.f32.partialorder %v1519_v53, 8.507059e+37  ;;  %v1606_v53 = vmul.f32 0.99, %v4624_v44 }
 0x697   : > { %v1507_v55 = vor.u32 1.1754944e-38, %v1506_v51  ;;  %vm1505_vm2 = vcmp.eq.f32.partialorder %v1504_v17, 8.507059e+37 }
 0x699   : > { %v3289_v48 = vpop.eup %3288 }
 0x69a   : > { %v1511_v60 = vmul.f32 %v3289_v48, %v1476_v22  ;;  %v1479_v24 = vpop.xlane.xlu2 %1478  ;;  %vm1516_vm4 = vweird.f32 %v3289_v48 }
 0x69b   : > { %v3291_v49 = vpop.eup %3290  ;;  %3292 = vrcp.f32 %v1479_v24  ;;  %vm1517_vm10 = vmor %vm1515_vm8, %vm1516_vm4  ;;  %v1536_v32 = vand.u32 2147483648, %v1479_v24  ;;  %v1534_v58 = vand.u32 2147483647, %v1479_v24  ;;  %vm1530_vm3 = vweird.f32 %v1479_v24 }
 0x69c   : > { %v1512_v52 = vsub.f32 1.0, %v1511_v60  ;;  %v1496_v5 = vmul.f32 %v3291_v49, %v1473_v62  ;;  %vm1501_vm14 = vweird.f32 %v3291_v49  ;;  %v1604_v62 = vmul.f32 0.99, %v4618_v25 }
 0x69d   : > { %vm1502_vm15 = vmor %vm1500_vm11, %vm1501_vm14  ;;  %v1537_v61 = vor.u32 1.1754944e-38, %v1536_v32  ;;  %vm1535_vm9 = vcmp.eq.f32.partialorder %v1534_v58, 8.507059e+37  ;;  %v1588_v58 = vmul.f32 0.99, %v4644_v7 }
 0x69e   : > { %v1513_v33 = vmul.f32 %v3289_v48, %v1512_v52  ;;  %v1497_v6 = vsub.f32 1.0, %v1496_v5 }
 0x6a0   : > { %v1498_v63 = vmul.f32 %v3291_v49, %v1497_v6  ;;  %v1514_v21 = vadd.f32 %v3289_v48, %v1513_v33 }
 0x6a1   : > { %v3293_v30 = vpop.eup %3292 }
 0x6a2   : > { %v1526_v43 = vmul.f32 %v3293_v30, %v1479_v24  ;;  %v1470_v42 = vpop.xlane.xlu2 %1469  ;;  %v1518_v39 = vsel %vm1517_vm10, %v3289_v48, %v1514_v21  ;;  %v1499_v0 = vadd.f32 %v3291_v49, %v1498_v63  ;;  %vm1531_vm6 = vweird.f32 %v3293_v30 }
 0x6a3   : > { %3294 = vrcp.f32 %v1470_v42  ;;  %v1523_v2 = vsel %vm1520_vm0, %v1522_v18, %v1518_v39  ;;  %vm1532_vm7 = vmor %vm1530_vm3, %vm1531_vm6  ;;  %v1491_v56 = vand.u32 2147483648, %v1470_v42  ;;  %v1489_v33 = vand.u32 2147483647, %v1470_v42 }
 0x6a4   : > { %v1527_v36 = vsub.f32 1.0, %v1526_v43  ;;  %v1503_v1 = vsel %vm1502_vm15, %v3291_v49, %v1499_v0  ;;  %v1524_v40 = vmul.f32 %v3281_v38, %v1523_v2  ;;  %vm1485_vm8 = vweird.f32 %v1470_v42 }
 0x6a5   : > { %v1508_v54 = vsel %vm1505_vm2, %v1507_v55, %v1503_v1  ;;  %v1492_v63 = vor.u32 1.1754944e-38, %v1491_v56  ;;  %vm1490_vm10 = vcmp.eq.f32.partialorder %v1489_v33, 8.507059e+37 }
 0x6a6   : > { %v1528_v10 = vmul.f32 %v3293_v30, %v1527_v36  ;;  %v1509_v28 = vmul.f32 %v3283_v26, %v1508_v54  ;;  %v1542_v31 = vsub.f32 %v1524_v40, %v4409_v8 }
 0x6a8   : > { %v1529_v59 = vadd.f32 %v3293_v30, %v1528_v10  ;;  %v1541_v11 = vsub.f32 %v1509_v28, %v4420_v41  ;;  %v1546_v22 = vmul.f32 0.04, %v1542_v31 }
 0x6a9   : > { %v3295_v12 = vpop.eup %3294 }
 0x6aa   : > { %v1481_v38 = vmul.f32 %v3295_v12, %v1470_v42  ;;  %v1533_v48 = vsel %vm1532_vm7, %v3293_v30, %v1529_v59  ;;  %v1545_v60 = vmul.f32 0.04, %v1541_v11  ;;  %v4685_v26 = vadd.f32 %v1605_v27, %v1546_v22 }
 0x6ab   : > { %v1538_v49 = vsel %vm1535_vm9, %v1537_v61, %v1533_v48  ;;  %vm1486_vm4 = vweird.f32 %v3295_v12  ;;  %v1603_v42 = vmul.f32 0.99, %v4631_v50  ;;  %v1592_v36 = vsel %vm1073_vm13, %v1546_v22, 0.0 }
 0x6ac   : > { %v1482_v52 = vsub.f32 1.0, %v1481_v38  ;;  %v1539_v24 = vmul.f32 %v4673_v46, %v1538_v49  ;;  %v4688_v5 = vadd.f32 %v1604_v62, %v1545_v60  ;;  %vm1487_vm14 = vmor %vm1485_vm8, %vm1486_vm4  ;;  %v1590_v44 = vsel %vm1073_vm13, %v1545_v60, 0.0 }
 0x6ad   : > { %v1548_v59 = vmul.f32 0.99, %v4647_v57  ;;  %v1550_v57 = vmul.f32 0.99, %v4652_v13 }
 0x6ae   : > { %v1483_v16 = vmul.f32 %v3295_v12, %v1482_v52  ;;  %v1543_v6 = vsub.f32 %v1539_v24, %v4413_v19 }
 0x6b0   : > { %v1547_v25 = vmul.f32 0.04, %v1543_v6  ;;  %v1484_v51 = vadd.f32 %v3295_v12, %v1483_v16  ;;  %v1551_v16 = vmul.f32 0.99, %v4663_v23 }
 0x6b2   : > { %3067 = vmatpush.msk.msrb.mxu2 %vm616_vm1, %v1547_v25  ;;  %v4693_v17 = vadd.f32 %v1606_v53, %v1547_v25  ;;  %v1488_v46 = vsel %vm1487_vm14, %v3295_v12, %v1484_v51  ;;  %v1594_v2 = vsel %vm1083_vm12, %v1547_v25, 0.0 }
 0x6b3   : > { %v1493_v21 = vsel %vm1490_vm10, %v1492_v63, %v1488_v46 }
 0x6b4   : > { %1568 = vmatpush.msrb.mxu2 %v1546_v22  ;;  %v1494_v30 = vmul.f32 %v4677_v29, %v1493_v21  ;;  %v1549_v22 = vmul.f32 0.99, %v4656_v9 }
 0x6b6   : > { %1569 = vmatpush.msrb.mxu2 %v1545_v60  ;;  %v1540_v18 = vsub.f32 %v1494_v30, %v4423_v45 }
 0x6b8   : > { %v1544_v43 = vmul.f32 0.04, %v1540_v18 }
 0x6ba   : > { %1570 = vmatpush.msrb.mxu2 %v1544_v43  ;;  %v1589_v39 = vsel %vm1073_vm13, %v1544_v43, 0.0  ;;  %v4700_v0 = vadd.f32 %v1603_v42, %v1544_v43 }
 0x6bb   : > { %v1591_v55 = vadd.f32 %v1590_v44, %v1589_v39  ;;  %3068 = vmatmul.msk.f32.vlgmr.msrb.gmra.mxu2 %vm1183_vm5, %v4428_v20 }
 0x6bd   : > { %v1593_v29 = vadd.f32 %v1592_v36, %v1591_v55 }
 0x6bf   : > { %v1595_v1 = vadd.f32 %v1594_v2, %v1593_v29 }
 0x6c1   : > { %v1596_v32 = vrot.slane %v1595_v1, 4 }
 0x6c3   : > { %v1597_v40 = vadd.f32 %v1596_v32, %v1595_v1  ;;  %3069 = vmatmul.msk.f32.gmra.mxu2 %vm1183_vm5, %v4434_v14 }
 0x6c5   : > { %v1598_v50 = vrot.slane %v1597_v40, 2 }
 0x6c7   : > { %v1599_v54 = vadd.f32 %v1598_v50, %v1597_v40 }
 0x6c9   : > { %v1600_v10 = vrot.slane %v1599_v54, 1 }
 0x6cb   : > { %3070 = vmatmul.msk.f32.gmra.mxu2 %vm1183_vm5, %v4438_v35  ;;  %v1601_v28 = vadd.f32 %v1600_v10, %v1599_v54 }
 0x6cd   : > { %v4711_v31 = vsub.f32 %v1588_v58, %v1601_v28 }
 0x6cf   : > { %v1612_v12 = vperm.slane %v4711_v31, 0 }
 0x6d3   : > { %3071 = vmatmul.msk.f32.gmra.mxu2 %vm1183_vm5, %v4440_v15 }
 0x73e   : > { %v1572_v27 = vpop.f32.mrf.mxu2 }
 0x73f   : > { %v4716_v11 = vsub.f32 %v1548_v59, %v1572_v27 }
 0x741   : > { %v1614_v61 = vadd.f32 %v1612_v12, %v4716_v11 }
 0x743   : > { %v1618_v51 = vadd.f32 %v1614_v61, %v5279_v4 }
 0x745   : > { %v1622_v63 = vsel %vm1073_vm13, %v1618_v51, -inf }
 0x746   : > { %v1575_v62 = vpop.f32.mrf.mxu2 }
 0x747   : > { %v4721_v38 = vsub.f32 %v1549_v22, %v1575_v62 }
 0x749   : > { %v1615_v7 = vadd.f32 %v1612_v12, %v4721_v38 }
 0x74b   : > { %v1619_v48 = vadd.f32 %v1615_v7, %v5279_v4 }
 0x74d   : > { %v1625_v60 = vsel %vm1073_vm13, %v1619_v48, -inf }
 0x74e   : > { %1626 = vmax.xlane.f32.xlu2 %v1625_v60  ;;  %v1578_v49 = vpop.f32.mrf.mxu2 }
 0x74f   : > { %v4727_v52 = vsub.f32 %v1550_v57, %v1578_v49 }
 0x751   : > { %v1616_v24 = vadd.f32 %v1612_v12, %v4727_v52 }
 0x753   : > { %v1620_v56 = vadd.f32 %v1616_v24, %v5279_v4 }
 0x755   : > { %v1628_v9 = vsel %vm1073_vm13, %v1620_v56, -inf }
 0x756   : > { %1629 = vmax.xlane.f32.xlu1 %v1628_v9  ;;  %v1581_v33 = vpop.f32.mrf.mxu2 }
 0x757   : > { %v4733_v6 = vsub.f32 %v1551_v16, %v1581_v33 }
 0x759   : > { %v1617_v25 = vadd.f32 %v1612_v12, %v4733_v6 }
 0x75b   : > { %v1621_v13 = vadd.f32 %v1617_v25, %v5279_v4 }
 0x75d   : > { %v1631_v53 = vsel %vm1083_vm12, %v1621_v13, -inf }
 0x75e   : > { %1632 = vmax.xlane.f32.xlu0 %v1631_v53 }
 0x766   : > { %1623 = vmax.xlane.f32.xlu0 %v1622_v63 }
 0x7c1   : > { %v1627_v46 = vpop.xlane.xlu2 %1626 }
 0x7c2   : > { %v1635_v21 = vsub.f32 %v1619_v48, %v1627_v46 }
 0x7c4   : > { %v1640_v30 = vmul.f32 1.442695, %v1635_v21 }
 0x7c6   : > { %3296 = vpow2.f32 %v1640_v30  ;;  %v1782_v30 = vmul.f32 0.99, %v4688_v5 }
 0x7c9   : > { %v1630_v23 = vpop.xlane.xlu1 %1629 }
 0x7ca   : > { %v1636_v18 = vsub.f32 %v1620_v56, %v1630_v23 }
 0x7cc   : > { %v3297_v43 = vpop.eup %3296  ;;  %v1642_v42 = vmul.f32 1.442695, %v1636_v18 }
 0x7cd   : > { %v1649_v44 = vsel %vm1073_vm13, %v3297_v43, 0.0 }
 0x7ce   : > { %3298 = vpow2.f32 %v1642_v42  ;;  %1650 = vadd.xlane.f32.xlu0 %v1649_v44 }
 0x7d1   : > { %v1633_v39 = vpop.xlane.xlu0 %1632 }
 0x7d2   : > { %v1637_v55 = vsub.f32 %v1621_v13, %v1633_v39 }
 0x7d4   : > { %v3299_v36 = vpop.eup %3298  ;;  %v1644_v29 = vmul.f32 1.442695, %v1637_v55 }
 0x7d5   : > { %v1652_v2 = vsel %vm1073_vm13, %v3299_v36, 0.0 }
 0x7d6   : > { %3300 = vpow2.f32 %v1644_v29  ;;  %1653 = vadd.xlane.f32.xlu2 %v1652_v2 }
 0x7d9   : > { %v1624_v1 = vpop.xlane.xlu0 %1623 }
 0x7da   : > { %v1634_v32 = vsub.f32 %v1618_v51, %v1624_v1 }
 0x7dc   : > { %v4742_v40 = vpop.eup %3300  ;;  %v1638_v50 = vmul.f32 1.442695, %v1634_v32 }
 0x7dd   : > { %v1655_v54 = vsel %vm1083_vm12, %v4742_v40, 0.0 }
 0x7de   : > { %3302 = vpow2.f32 %v1638_v50  ;;  %1656 = vadd.xlane.f32.xlu1 %v1655_v54 }
 0x7e4   : > { %v4746_v10 = vpop.eup %3302 }
 0x7e5   : > { %v1646_v58 = vsel %vm1073_vm13, %v4746_v10, 0.0 }
 0x7e6   : > { %1647 = vadd.xlane.f32.xlu1 %v1646_v58  ;;  %v1783_v58 = vmul.f32 0.99, %v4685_v26  ;;  %v1784_v26 = vmul.f32 0.99, %v4693_v17  ;;  %v1781_v17 = vmul.f32 0.99, %v4700_v0 }
 0x841   : > { %v1651_v28 = vpop.xlane.xlu0 %1650 }
 0x842   : > { %3304 = vrcp.f32 %v1651_v28  ;;  %v1684_v62 = vand.u32 2147483648, %v1651_v28  ;;  %v1682_v7 = vand.u32 2147483647, %v1651_v28  ;;  %vm1678_vm15 = vweird.f32 %v1651_v28 }
 0x844   : > { %v1685_v57 = vor.u32 1.1754944e-38, %v1684_v62  ;;  %vm1683_vm2 = vcmp.eq.f32.partialorder %v1682_v7, 8.507059e+37 }
 0x848   : > { %v3305_v59 = vpop.eup %3304 }
 0x849   : > { %v1674_v27 = vmul.f32 %v3305_v59, %v1651_v28  ;;  %v1654_v12 = vpop.xlane.xlu2 %1653  ;;  %vm1679_vm11 = vweird.f32 %v3305_v59 }
 0x84a   : > { %3306 = vrcp.f32 %v1654_v12  ;;  %vm1680_vm0 = vmor %vm1678_vm15, %vm1679_vm11  ;;  %v1699_v13 = vand.u32 2147483648, %v1654_v12  ;;  %v1697_v53 = vand.u32 2147483647, %v1654_v12  ;;  %vm1693_vm3 = vweird.f32 %v1654_v12 }
 0x84b   : > { %v1675_v61 = vsub.f32 1.0, %v1674_v27 }
 0x84c   : > { %v1700_v23 = vor.u32 1.1754944e-38, %v1699_v13  ;;  %vm1698_vm9 = vcmp.eq.f32.partialorder %v1697_v53, 8.507059e+37 }
 0x84d   : > { %v1676_v22 = vmul.f32 %v3305_v59, %v1675_v61 }
 0x84f   : > { %v1677_v48 = vadd.f32 %v3305_v59, %v1676_v22 }
 0x850   : > { %v3307_v60 = vpop.eup %3306 }
 0x851   : > { %v1689_v49 = vmul.f32 %v3307_v60, %v1654_v12  ;;  %v1657_v24 = vpop.xlane.xlu1 %1656  ;;  %v1681_v56 = vsel %vm1680_vm0, %v3305_v59, %v1677_v48  ;;  %vm1694_vm6 = vweird.f32 %v3307_v60 }
 0x852   : > { %3308 = vrcp.f32 %v1657_v24  ;;  %v1686_v16 = vsel %vm1683_vm2, %v1685_v57, %v1681_v56  ;;  %vm1695_vm7 = vmor %vm1693_vm3, %vm1694_vm6  ;;  %v1714_v29 = vand.u32 2147483648, %v1657_v24  ;;  %v1712_v32 = vand.u32 2147483647, %v1657_v24 }
 0x853   : > { %v1690_v9 = vsub.f32 1.0, %v1689_v49  ;;  %v1687_v33 = vmul.f32 %v3297_v43, %v1686_v16  ;;  %vm1708_vm8 = vweird.f32 %v1657_v24 }
 0x854   : > { %v1715_v28 = vor.u32 1.1754944e-38, %v1714_v29  ;;  %vm1713_vm10 = vcmp.eq.f32.partialorder %v1712_v32, 8.507059e+37 }
 0x855   : > { %v1691_v25 = vmul.f32 %v3307_v60, %v1690_v9  ;;  %v1719_v51 = vsub.f32 %v1687_v33, %v4420_v41 }
 0x857   : > { %v1692_v63 = vadd.f32 %v3307_v60, %v1691_v25  ;;  %v1723_v21 = vmul.f32 0.04, %v1719_v51 }
 0x858   : > { %v3309_v46 = vpop.eup %3308 }
 0x859   : > { %v1704_v18 = vmul.f32 %v3309_v46, %v1657_v24  ;;  %v1648_v42 = vpop.xlane.xlu1 %1647  ;;  %v1696_v44 = vsel %vm1695_vm7, %v3307_v60, %v1692_v63  ;;  %v4752_v55 = vadd.f32 %v1782_v30, %v1723_v21  ;;  %vm1709_vm4 = vweird.f32 %v3309_v46 }
 0x85a   : > { %3310 = vrcp.f32 %v1648_v42  ;;  %v1701_v39 = vsel %vm1698_vm9, %v1700_v23, %v1696_v44  ;;  %vm1710_vm14 = vmor %vm1708_vm8, %vm1709_vm4  ;;  %v1669_v7 = vand.u32 2147483648, %v1648_v42  ;;  %v1667_v60 = vand.u32 2147483647, %v1648_v42 }
 0x85b   : > { %v1705_v43 = vsub.f32 1.0, %v1704_v18  ;;  %v1702_v2 = vmul.f32 %v3299_v36, %v1701_v39  ;;  %vm1663_vm15 = vweird.f32 %v1648_v42  ;;  %v1768_v53 = vsel %vm1073_vm13, %v1723_v21, 0.0 }
 0x85c   : > { %v1670_v56 = vor.u32 1.1754944e-38, %v1669_v7  ;;  %vm1668_vm2 = vcmp.eq.f32.partialorder %v1667_v60, 8.507059e+37  ;;  %v1766_v39 = vmul.f32 0.99, %v4711_v31 }
 0x85d   : > { %v1706_v1 = vmul.f32 %v3309_v46, %v1705_v43  ;;  %v1720_v50 = vsub.f32 %v1702_v2, %v4409_v8 }
 0x85f   : > { %v1707_v54 = vadd.f32 %v3309_v46, %v1706_v1  ;;  %v1724_v59 = vmul.f32 0.04, %v1720_v50  ;;  %v1726_v1 = vmul.f32 0.99, %v4716_v11  ;;  %v1728_v11 = vmul.f32 0.99, %v4727_v52 }
 0x860   : > { %v3311_v5 = vpop.eup %3310 }
 0x861   : > { %v1659_v27 = vmul.f32 %v3311_v5, %v1648_v42  ;;  %v1711_v12 = vsel %vm1710_vm14, %v3309_v46, %v1707_v54  ;;  %v4756_v22 = vadd.f32 %v1783_v58, %v1724_v59  ;;  %vm1664_vm11 = vweird.f32 %v3311_v5 }
 0x862   : > { %v1716_v61 = vsel %vm1713_vm10, %v1715_v28, %v1711_v12  ;;  %vm1665_vm0 = vmor %vm1663_vm15, %vm1664_vm11  ;;  %v1770_v30 = vsel %vm1073_vm13, %v1724_v59, 0.0  ;;  %v1727_v58 = vmul.f32 0.99, %v4721_v38 }
 0x863   : > { %v1660_v36 = vsub.f32 1.0, %v1659_v27  ;;  %v1717_v62 = vmul.f32 %v4742_v40, %v1716_v61 }
 0x865   : > { %v1661_v48 = vmul.f32 %v3311_v5, %v1660_v36  ;;  %v1721_v57 = vsub.f32 %v1717_v62, %v4413_v19 }
 0x867   : > { %v1725_v49 = vmul.f32 0.04, %v1721_v57  ;;  %v1662_v24 = vadd.f32 %v3311_v5, %v1661_v48  ;;  %v1729_v48 = vmul.f32 0.99, %v4733_v6 }
 0x869   : > { %3072 = vmatpush.msk.msrb.mxu3 %vm616_vm1, %v1725_v49  ;;  %v4762_v9 = vadd.f32 %v1784_v26, %v1725_v49  ;;  %v1666_v16 = vsel %vm1665_vm0, %v3311_v5, %v1662_v24  ;;  %v1772_v23 = vsel %vm1083_vm12, %v1725_v49, 0.0 }
 0x86a   : > { %v1671_v40 = vsel %vm1668_vm2, %v1670_v56, %v1666_v16 }
 0x86b   : > { %1746 = vmatpush.msrb.mxu3 %v1724_v59  ;;  %v1672_v33 = vmul.f32 %v4746_v10, %v1671_v40 }
 0x86d   : > { %1747 = vmatpush.msrb.mxu3 %v1723_v21  ;;  %v1718_v25 = vsub.f32 %v1672_v33, %v4423_v45 }
 0x86f   : > { %v1722_v13 = vmul.f32 0.04, %v1718_v25 }
 0x871   : > { %1748 = vmatpush.msrb.mxu3 %v1722_v13  ;;  %v1767_v51 = vsel %vm1073_vm13, %v1722_v13, 0.0  ;;  %v4769_v63 = vadd.f32 %v1781_v17, %v1722_v13 }
 0x872   : > { %v1769_v46 = vadd.f32 %v1768_v53, %v1767_v51  ;;  %3073 = vmatmul.msk.f32.vlgmr.msrb.gmra.mxu3 %vm1183_vm5, %v4428_v20 }
 0x874   : > { %v1771_v10 = vadd.f32 %v1770_v30, %v1769_v46 }
 0x876   : > { %v1773_v18 = vadd.f32 %v1772_v23, %v1771_v10 }
 0x878   : > { %v1774_v42 = vrot.slane %v1773_v18, 4 }
 0x87a   : > { %v1775_v0 = vadd.f32 %v1774_v42, %v1773_v18  ;;  %3074 = vmatmul.msk.f32.gmra.mxu3 %vm1183_vm5, %v4434_v14 }
 0x87c   : > { %v1776_v21 = vrot.slane %v1775_v0, 2 }
 0x87e   : > { %v1777_v44 = vadd.f32 %v1776_v21, %v1775_v0 }
 0x880   : > { %v1778_v43 = vrot.slane %v1777_v44, 1 }
 0x882   : > { %3075 = vmatmul.msk.f32.gmra.mxu3 %vm1183_vm5, %v4438_v35  ;;  %v1779_v29 = vadd.f32 %v1778_v43, %v1777_v44 }
 0x884   : > { %v4780_v2 = vsub.f32 %v1766_v39, %v1779_v29 }
 0x886   : > { %v1790_v54 = vperm.slane %v4780_v2, 0 }
 0x88a   : > { %3076 = vmatmul.msk.f32.gmra.mxu3 %vm1183_vm5, %v4440_v15 }
 0x8f5   : > { %v1750_v32 = vpop.f32.mrf.mxu3 }
 0x8f6   : > { %v4785_v50 = vsub.f32 %v1726_v1, %v1750_v32 }
 0x8f8   : > { %v1792_v5 = vadd.f32 %v1790_v54, %v4785_v50 }
 0x8fa   : > { %v1796_v24 = vadd.f32 %v1792_v5, %v5279_v4 }
 0x8fc   : > { %v1800_v56 = vsel %vm1073_vm13, %v1796_v24, -inf }
 0x8fd   : > { %v1753_v28 = vpop.f32.mrf.mxu3 }
 0x8fe   : > { %v4790_v59 = vsub.f32 %v1727_v58, %v1753_v28 }
 0x900   : > { %v1793_v31 = vadd.f32 %v1790_v54, %v4790_v59 }
 0x902   : > { %v1797_v27 = vadd.f32 %v1793_v31, %v5279_v4 }
 0x904   : > { %v1803_v12 = vsel %vm1073_vm13, %v1797_v27, -inf }
 0x905   : > { %1804 = vmax.xlane.f32.xlu1 %v1803_v12  ;;  %v1756_v61 = vpop.f32.mrf.mxu3 }
 0x906   : > { %v4796_v36 = vsub.f32 %v1728_v11, %v1756_v61 }
 0x908   : > { %v1794_v62 = vadd.f32 %v1790_v54, %v4796_v36 }
 0x90a   : > { %v1798_v7 = vadd.f32 %v1794_v62, %v5279_v4 }
 0x90c   : > { %v1806_v38 = vsel %vm1073_vm13, %v1798_v7, -inf }
 0x90d   : > { %1807 = vmax.xlane.f32.xlu0 %v1806_v38  ;;  %v1759_v60 = vpop.f32.mrf.mxu3 }
 0x90e   : > { %v4802_v57 = vsub.f32 %v1729_v48, %v1759_v60 }
 0x910   : > { %v1795_v26 = vadd.f32 %v1790_v54, %v4802_v57 }
 0x912   : > { %v1799_v52 = vadd.f32 %v1795_v26, %v5279_v4 }
 0x914   : > { %v1809_v49 = vsel %vm1083_vm12, %v1799_v52, -inf }
 0x915   : > { %1810 = vmax.xlane.f32.xlu2 %v1809_v49 }
 0x91d   : > { %1801 = vmax.xlane.f32.xlu2 %v1800_v56 }
 0x978   : > { %v1805_v16 = vpop.xlane.xlu1 %1804 }
 0x979   : > { %v1813_v40 = vsub.f32 %v1797_v27, %v1805_v16 }
 0x97b   : > { %v1818_v33 = vmul.f32 1.442695, %v1813_v40 }
 0x97d   : > { %3312 = vpow2.f32 %v1818_v33  ;;  %v1960_v33 = vmul.f32 0.99, %v4752_v55 }
 0x980   : > { %v1808_v6 = vpop.xlane.xlu0 %1807 }
 0x981   : > { %v1814_v25 = vsub.f32 %v1798_v7, %v1808_v6 }
 0x983   : > { %v3313_v17 = vpop.eup %3312  ;;  %v1820_v13 = vmul.f32 1.442695, %v1814_v25 }
 0x984   : > { %v1827_v53 = vsel %vm1073_vm13, %v3313_v17, 0.0 }
 0x985   : > { %3314 = vpow2.f32 %v1820_v13  ;;  %1828 = vadd.xlane.f32.xlu2 %v1827_v53 }
 0x988   : > { %v1811_v51 = vpop.xlane.xlu2 %1810 }
 0x989   : > { %v1815_v46 = vsub.f32 %v1799_v52, %v1811_v51 }
 0x98b   : > { %v3315_v30 = vpop.eup %3314  ;;  %v1822_v10 = vmul.f32 1.442695, %v1815_v46 }
 0x98c   : > { %v1830_v23 = vsel %vm1073_vm13, %v3315_v30, 0.0 }
 0x98d   : > { %3316 = vpow2.f32 %v1822_v10  ;;  %1831 = vadd.xlane.f32.xlu1 %v1830_v23 }
 0x990   : > { %v1802_v18 = vpop.xlane.xlu2 %1801 }
 0x991   : > { %v1812_v42 = vsub.f32 %v1796_v24, %v1802_v18 }
 0x993   : > { %v4811_v0 = vpop.eup %3316  ;;  %v1816_v21 = vmul.f32 1.442695, %v1812_v42 }
 0x994   : > { %v1833_v44 = vsel %vm1083_vm12, %v4811_v0, 0.0 }
 0x995   : > { %3318 = vpow2.f32 %v1816_v21  ;;  %1834 = vadd.xlane.f32.xlu0 %v1833_v44 }
 0x99b   : > { %v4815_v43 = vpop.eup %3318 }
 0x99c   : > { %v1824_v39 = vsel %vm1073_vm13, %v4815_v43, 0.0 }
 0x99d   : > { %1825 = vadd.xlane.f32.xlu0 %v1824_v39  ;;  %v1961_v39 = vmul.f32 0.99, %v4756_v22  ;;  %v1962_v22 = vmul.f32 0.99, %v4762_v9  ;;  %v1959_v9 = vmul.f32 0.99, %v4769_v63 }
 0x9f8   : > { %v1829_v29 = vpop.xlane.xlu2 %1828 }
 0x9f9   : > { %3320 = vrcp.f32 %v1829_v29  ;;  %v1862_v28 = vand.u32 2147483648, %v1829_v29  ;;  %v1860_v31 = vand.u32 2147483647, %v1829_v29  ;;  %vm1856_vm3 = vweird.f32 %v1829_v29 }
 0x9fb   : > { %v1863_v11 = vor.u32 1.1754944e-38, %v1862_v28  ;;  %vm1861_vm9 = vcmp.eq.f32.partialorder %v1860_v31, 8.507059e+37 }
 0x9ff   : > { %v3321_v1 = vpop.eup %3320 }
 0xa00   : > { %v1852_v32 = vmul.f32 %v3321_v1, %v1829_v29  ;;  %v1832_v54 = vpop.xlane.xlu1 %1831  ;;  %vm1857_vm6 = vweird.f32 %v3321_v1 }
 0xa01   : > { %3322 = vrcp.f32 %v1832_v54  ;;  %vm1858_vm7 = vmor %vm1856_vm3, %vm1857_vm6  ;;  %v1877_v52 = vand.u32 2147483648, %v1832_v54  ;;  %v1875_v49 = vand.u32 2147483647, %v1832_v54  ;;  %vm1871_vm8 = vweird.f32 %v1832_v54 }
 0xa02   : > { %v1853_v5 = vsub.f32 1.0, %v1852_v32 }
 0xa03   : > { %v1878_v6 = vor.u32 1.1754944e-38, %v1877_v52  ;;  %vm1876_vm10 = vcmp.eq.f32.partialorder %v1875_v49, 8.507059e+37 }
 0xa04   : > { %v1854_v58 = vmul.f32 %v3321_v1, %v1853_v5 }
 0xa06   : > { %v1855_v27 = vadd.f32 %v3321_v1, %v1854_v58 }
 0xa07   : > { %v3323_v12 = vpop.eup %3322 }
 0xa08   : > { %v1867_v61 = vmul.f32 %v3323_v12, %v1832_v54  ;;  %v1835_v62 = vpop.xlane.xlu0 %1834  ;;  %v1859_v7 = vsel %vm1858_vm7, %v3321_v1, %v1855_v27  ;;  %vm1872_vm4 = vweird.f32 %v3323_v12 }
 0xa09   : > { %3324 = vrcp.f32 %v1835_v62  ;;  %v1864_v48 = vsel %vm1861_vm9, %v1863_v11, %v1859_v7  ;;  %vm1873_vm14 = vmor %vm1871_vm8, %vm1872_vm4  ;;  %v1892_v10 = vand.u32 2147483648, %v1835_v62  ;;  %v1890_v42 = vand.u32 2147483647, %v1835_v62 }
 0xa0a   : > { %v1868_v38 = vsub.f32 1.0, %v1867_v61  ;;  %v1865_v60 = vmul.f32 %v3313_v17, %v1864_v48  ;;  %vm1886_vm15 = vweird.f32 %v1835_v62 }
 0xa0b   : > { %v1893_v29 = vor.u32 1.1754944e-38, %v1892_v10  ;;  %vm1891_vm2 = vcmp.eq.f32.partialorder %v1890_v42, 8.507059e+37 }
 0xa0c   : > { %v1869_v26 = vmul.f32 %v3323_v12, %v1868_v38  ;;  %v1897_v24 = vsub.f32 %v1865_v60, %v4420_v41 }
 0xa0e   : > { %v1870_v56 = vadd.f32 %v3323_v12, %v1869_v26  ;;  %v1901_v40 = vmul.f32 0.04, %v1897_v24 }
 0xa0f   : > { %v3325_v16 = vpop.eup %3324 }
 0xa10   : > { %v1882_v25 = vmul.f32 %v3325_v16, %v1835_v62  ;;  %v1826_v13 = vpop.xlane.xlu0 %1825  ;;  %v1874_v53 = vsel %vm1873_vm14, %v3323_v12, %v1870_v56  ;;  %v4821_v46 = vadd.f32 %v1960_v33, %v1901_v40  ;;  %vm1887_vm11 = vweird.f32 %v3325_v16 }
 0xa11   : > { %3326 = vrcp.f32 %v1826_v13  ;;  %v1879_v51 = vsel %vm1876_vm10, %v1878_v6, %v1874_v53  ;;  %vm1888_vm0 = vmor %vm1886_vm15, %vm1887_vm11  ;;  %v1847_v31 = vand.u32 2147483648, %v1826_v13  ;;  %v1845_v12 = vand.u32 2147483647, %v1826_v13 }
 0xa12   : > { %v1883_v17 = vsub.f32 1.0, %v1882_v25  ;;  %v1880_v23 = vmul.f32 %v3315_v30, %v1879_v51  ;;  %vm1841_vm3 = vweird.f32 %v1826_v13  ;;  %v1946_v49 = vsel %vm1073_vm13, %v1901_v40, 0.0 }
 0xa13   : > { %v1848_v7 = vor.u32 1.1754944e-38, %v1847_v31  ;;  %vm1846_vm9 = vcmp.eq.f32.partialorder %v1845_v12, 8.507059e+37  ;;  %v1944_v51 = vmul.f32 0.99, %v4780_v2 }
 0xa14   : > { %v1884_v18 = vmul.f32 %v3325_v16, %v1883_v17  ;;  %v1898_v21 = vsub.f32 %v1880_v23, %v4409_v8 }
 0xa16   : > { %v1885_v44 = vadd.f32 %v3325_v16, %v1884_v18  ;;  %v1902_v1 = vmul.f32 0.04, %v1898_v21  ;;  %v1904_v18 = vmul.f32 0.99, %v4785_v50  ;;  %v1906_v50 = vmul.f32 0.99, %v4796_v36 }
 0xa17   : > { %v3327_v55 = vpop.eup %3326 }
 0xa18   : > { %v1837_v32 = vmul.f32 %v3327_v55, %v1826_v13  ;;  %v1889_v54 = vsel %vm1888_vm0, %v3325_v16, %v1885_v44  ;;  %v4825_v58 = vadd.f32 %v1961_v39, %v1902_v1  ;;  %vm1842_vm6 = vweird.f32 %v3327_v55 }
 0xa19   : > { %v1894_v5 = vsel %vm1891_vm2, %v1893_v29, %v1889_v54  ;;  %vm1843_vm7 = vmor %vm1841_vm3, %vm1842_vm6  ;;  %v1948_v33 = vsel %vm1073_vm13, %v1902_v1, 0.0  ;;  %v1905_v39 = vmul.f32 0.99, %v4790_v59 }
 0xa1a   : > { %v1838_v30 = vsub.f32 1.0, %v1837_v32  ;;  %v1895_v28 = vmul.f32 %v4811_v0, %v1894_v5 }
 0xa1c   : > { %v1839_v27 = vmul.f32 %v3327_v55, %v1838_v30  ;;  %v1899_v11 = vsub.f32 %v1895_v28, %v4413_v19 }
 0xa1e   : > { %v1903_v61 = vmul.f32 0.04, %v1899_v11  ;;  %v1840_v62 = vadd.f32 %v3327_v55, %v1839_v27  ;;  %v1907_v27 = vmul.f32 0.99, %v4802_v57 }
 0xa20   : > { %3077 = vmatpush.msk.msrb.mxu0 %vm616_vm1, %v1903_v61  ;;  %v4831_v38 = vadd.f32 %v1962_v22, %v1903_v61  ;;  %v1844_v48 = vsel %vm1843_vm7, %v3327_v55, %v1840_v62  ;;  %v1950_v6 = vsel %vm1083_vm12, %v1903_v61, 0.0 }
 0xa21   : > { %v1849_v0 = vsel %vm1846_vm9, %v1848_v7, %v1844_v48 }
 0xa22   : > { %1924 = vmatpush.msrb.mxu0 %v1902_v1  ;;  %v1850_v60 = vmul.f32 %v4815_v43, %v1849_v0 }
 0xa24   : > { %1925 = vmatpush.msrb.mxu0 %v1901_v40  ;;  %v1896_v26 = vsub.f32 %v1850_v60, %v4423_v45 }
 0xa26   : > { %v1900_v52 = vmul.f32 0.04, %v1896_v26 }
 0xa28   : > { %1926 = vmatpush.msrb.mxu0 %v1900_v52  ;;  %v1945_v24 = vsel %vm1073_vm13, %v1900_v52, 0.0  ;;  %v4838_v56 = vadd.f32 %v1959_v9, %v1900_v52 }
 0xa29   : > { %v1947_v16 = vadd.f32 %v1946_v49, %v1945_v24  ;;  %3078 = vmatmul.msk.f32.vlgmr.msrb.gmra.mxu0 %vm1183_vm5, %v4428_v20 }
 0xa2b   : > { %v1949_v43 = vadd.f32 %v1948_v33, %v1947_v16 }
 0xa2d   : > { %v1951_v25 = vadd.f32 %v1950_v6, %v1949_v43 }
 0xa2f   : > { %v1952_v13 = vrot.slane %v1951_v25, 4 }
 0xa31   : > { %v1953_v63 = vadd.f32 %v1952_v13, %v1951_v25  ;;  %3079 = vmatmul.msk.f32.gmra.mxu0 %vm1183_vm5, %v4434_v14 }
 0xa33   : > { %v1954_v40 = vrot.slane %v1953_v63, 2 }
 0xa35   : > { %v1955_v53 = vadd.f32 %v1954_v40, %v1953_v63 }
 0xa37   : > { %v1956_v17 = vrot.slane %v1955_v53, 1 }
 0xa39   : > { %3080 = vmatmul.msk.f32.gmra.mxu0 %vm1183_vm5, %v4438_v35  ;;  %v1957_v10 = vadd.f32 %v1956_v17, %v1955_v53 }
 0xa3b   : > { %v4849_v23 = vsub.f32 %v1944_v51, %v1957_v10 }
 0xa3d   : > { %v1968_v44 = vperm.slane %v4849_v23, 0 }
 0xa41   : > { %3081 = vmatmul.msk.f32.gmra.mxu0 %vm1183_vm5, %v4440_v15 }
 0xaa6   : > { %v1928_v42 = vpop.f32.mrf.mxu0 }
 0xaa7   : > { %v4854_v21 = vsub.f32 %v1904_v18, %v1928_v42 }
 0xaa9   : > { %v1970_v55 = vadd.f32 %v1968_v44, %v4854_v21 }
 0xaab   : > { %v1974_v62 = vadd.f32 %v1970_v55, %v5279_v4 }
 0xaad   : > { %v1978_v7 = vsel %vm1073_vm13, %v1974_v62, -inf }
 0xaae   : > { %v1931_v29 = vpop.f32.mrf.mxu0 }
 0xaaf   : > { %v4859_v1 = vsub.f32 %v1905_v39, %v1931_v29 }
 0xab1   : > { %v1971_v2 = vadd.f32 %v1968_v44, %v4859_v1 }
 0xab3   : > { %v1975_v32 = vadd.f32 %v1971_v2, %v5279_v4 }
 0xab5   : > { %v1981_v54 = vsel %vm1073_vm13, %v1975_v32, -inf }
 0xab6   : > { %1982 = vmax.xlane.f32.xlu0 %v1981_v54  ;;  %v1934_v5 = vpop.f32.mrf.mxu0 }
 0xab7   : > { %v4865_v30 = vsub.f32 %v1906_v50, %v1934_v5 }
 0xab9   : > { %v1972_v28 = vadd.f32 %v1968_v44, %v4865_v30 }
 0xabb   : > { %v1976_v31 = vadd.f32 %v1972_v28, %v5279_v4 }
 0xabd   : > { %v1984_v59 = vsel %vm1073_vm13, %v1976_v31, -inf }
 0xabe   : > { %1985 = vmax.xlane.f32.xlu2 %v1984_v59  ;;  %v1937_v12 = vpop.f32.mrf.mxu0 }
 0xabf   : > { %v4871_v11 = vsub.f32 %v1907_v27, %v1937_v12 }
 0xac1   : > { %v1973_v22 = vadd.f32 %v1968_v44, %v4871_v11 }
 0xac3   : > { %v1977_v36 = vadd.f32 %v1973_v22, %v5279_v4 }
 0xac5   : > { %v1987_v61 = vsel %vm1083_vm12, %v1977_v36, -inf }
 0xac6   : > { %1988 = vmax.xlane.f32.xlu1 %v1987_v61 }
 0xace   : > { %1979 = vmax.xlane.f32.xlu1 %v1978_v7 }
 0xb29   : > { %v1983_v48 = vpop.xlane.xlu0 %1982 }
 0xb2a   : > { %v1991_v0 = vsub.f32 %v1975_v32, %v1983_v48 }
 0xb2c   : > { %v1996_v60 = vmul.f32 1.442695, %v1991_v0 }
 0xb2e   : > { %3328 = vpow2.f32 %v1996_v60  ;;  %v2138_v60 = vmul.f32 0.99, %v4821_v46 }
 0xb31   : > { %v1986_v57 = vpop.xlane.xlu2 %1985 }
 0xb32   : > { %v1992_v26 = vsub.f32 %v1976_v31, %v1986_v57 }
 0xb34   : > { %v3329_v9 = vpop.eup %3328  ;;  %v1998_v52 = vmul.f32 1.442695, %v1992_v26 }
 0xb35   : > { %v2005_v49 = vsel %vm1073_vm13, %v3329_v9, 0.0 }
 0xb36   : > { %3330 = vpow2.f32 %v1998_v52  ;;  %2006 = vadd.xlane.f32.xlu1 %v2005_v49 }
 0xb39   : > { %v1989_v24 = vpop.xlane.xlu1 %1988 }
 0xb3a   : > { %v1993_v16 = vsub.f32 %v1977_v36, %v1989_v24 }
 0xb3c   : > { %v3331_v33 = vpop.eup %3330  ;;  %v2000_v43 = vmul.f32 1.442695, %v1993_v16 }
 0xb3d   : > { %v2008_v6 = vsel %vm1073_vm13, %v3331_v33, 0.0 }
 0xb3e   : > { %3332 = vpow2.f32 %v2000_v43  ;;  %2009 = vadd.xlane.f32.xlu0 %v2008_v6 }
 0xb41   : > { %v1980_v25 = vpop.xlane.xlu1 %1979 }
 0xb42   : > { %v1990_v13 = vsub.f32 %v1974_v62, %v1980_v25 }
 0xb44   : > { %v4880_v63 = vpop.eup %3332  ;;  %v1994_v40 = vmul.f32 1.442695, %v1990_v13 }
 0xb45   : > { %v2011_v53 = vsel %vm1083_vm12, %v4880_v63, 0.0 }
 0xb46   : > { %3334 = vpow2.f32 %v1994_v40  ;;  %2012 = vadd.xlane.f32.xlu2 %v2011_v53 }
 0xb4c   : > { %v4884_v17 = vpop.eup %3334 }
 0xb4d   : > { %v2002_v51 = vsel %vm1073_vm13, %v4884_v17, 0.0 }
 0xb4e   : > { %2003 = vadd.xlane.f32.xlu2 %v2002_v51  ;;  %v2139_v51 = vmul.f32 0.99, %v4825_v58  ;;  %v2140_v58 = vmul.f32 0.99, %v4831_v38  ;;  %v2137_v38 = vmul.f32 0.99, %v4838_v56 }
 0xba9   : > { %v2007_v10 = vpop.xlane.xlu1 %2006 }
 0xbaa   : > { %3336 = vrcp.f32 %v2007_v10  ;;  %v2040_v29 = vand.u32 2147483648, %v2007_v10  ;;  %v2038_v2 = vand.u32 2147483647, %v2007_v10  ;;  %vm2034_vm8 = vweird.f32 %v2007_v10 }
 0xbac   : > { %v2041_v50 = vor.u32 1.1754944e-38, %v2040_v29  ;;  %vm2039_vm10 = vcmp.eq.f32.partialorder %v2038_v2, 8.507059e+37 }
 0xbb0   : > { %v3337_v18 = vpop.eup %3336 }
 0xbb1   : > { %v2030_v42 = vmul.f32 %v3337_v18, %v2007_v10  ;;  %v2010_v44 = vpop.xlane.xlu0 %2009  ;;  %vm2035_vm4 = vweird.f32 %v3337_v18 }
 0xbb2   : > { %3338 = vrcp.f32 %v2010_v44  ;;  %vm2036_vm14 = vmor %vm2034_vm8, %vm2035_vm4  ;;  %v2055_v36 = vand.u32 2147483648, %v2010_v44  ;;  %v2053_v61 = vand.u32 2147483647, %v2010_v44  ;;  %vm2049_vm15 = vweird.f32 %v2010_v44 }
 0xbb3   : > { %v2031_v55 = vsub.f32 1.0, %v2030_v42 }
 0xbb4   : > { %v2056_v57 = vor.u32 1.1754944e-38, %v2055_v36  ;;  %vm2054_vm2 = vcmp.eq.f32.partialorder %v2053_v61, 8.507059e+37 }
 0xbb5   : > { %v2032_v39 = vmul.f32 %v3337_v18, %v2031_v55 }
 0xbb7   : > { %v2033_v32 = vadd.f32 %v3337_v18, %v2032_v39 }
 0xbb8   : > { %v3339_v54 = vpop.eup %3338 }
 0xbb9   : > { %v2045_v5 = vmul.f32 %v3339_v54, %v2010_v44  ;;  %v2013_v28 = vpop.xlane.xlu2 %2012  ;;  %v2037_v31 = vsel %vm2036_vm14, %v3337_v18, %v2033_v32  ;;  %vm2050_vm11 = vweird.f32 %v3339_v54 }
 0xbba   : > { %3340 = vrcp.f32 %v2013_v28  ;;  %v2042_v27 = vsel %vm2039_vm10, %v2041_v50, %v2037_v31  ;;  %vm2051_vm0 = vmor %vm2049_vm15, %vm2050_vm11  ;;  %v2070_v43 = vand.u32 2147483648, %v2013_v28  ;;  %v2068_v13 = vand.u32 2147483647, %v2013_v28 }
 0xbbb   : > { %v2046_v59 = vsub.f32 1.0, %v2045_v5  ;;  %v2043_v12 = vmul.f32 %v3329_v9, %v2042_v27  ;;  %vm2064_vm3 = vweird.f32 %v2013_v28 }
 0xbbc   : > { %v2071_v10 = vor.u32 1.1754944e-38, %v2070_v43  ;;  %vm2069_vm9 = vcmp.eq.f32.partialorder %v2068_v13, 8.507059e+37 }
 0xbbd   : > { %v2047_v22 = vmul.f32 %v3339_v54, %v2046_v59  ;;  %v2075_v62 = vsub.f32 %v2043_v12, %v4420_v41 }
 0xbbf   : > { %v2048_v7 = vadd.f32 %v3339_v54, %v2047_v22  ;;  %v2079_v0 = vmul.f32 0.04, %v2075_v62 }
 0xbc0   : > { %v3341_v48 = vpop.eup %3340 }
 0xbc1   : > { %v2060_v26 = vmul.f32 %v3341_v48, %v2013_v28  ;;  %v2004_v52 = vpop.xlane.xlu2 %2003  ;;  %v2052_v49 = vsel %vm2051_vm0, %v3339_v54, %v2048_v7  ;;  %v4890_v16 = vadd.f32 %v2138_v60, %v2079_v0  ;;  %vm2065_vm6 = vweird.f32 %v3341_v48 }
 0xbc2   : > { %3342 = vrcp.f32 %v2004_v52  ;;  %v2057_v24 = vsel %vm2054_vm2, %v2056_v57, %v2052_v49  ;;  %vm2066_vm7 = vmor %vm2064_vm3, %vm2065_vm6  ;;  %v2025_v2 = vand.u32 2147483648, %v2004_v52  ;;  %v2023_v54 = vand.u32 2147483647, %v2004_v52 }
 0xbc3   : > { %v2061_v9 = vsub.f32 1.0, %v2060_v26  ;;  %v2058_v6 = vmul.f32 %v3331_v33, %v2057_v24  ;;  %vm2019_vm8 = vweird.f32 %v2004_v52  ;;  %v2124_v61 = vsel %vm1073_vm13, %v2079_v0, 0.0 }
 0xbc4   : > { %v2026_v31 = vor.u32 1.1754944e-38, %v2025_v2  ;;  %vm2024_vm10 = vcmp.eq.f32.partialorder %v2023_v54, 8.507059e+37  ;;  %v2122_v24 = vmul.f32 0.99, %v4849_v23 }
 0xbc5   : > { %v2062_v25 = vmul.f32 %v3341_v48, %v2061_v9  ;;  %v2076_v40 = vsub.f32 %v2058_v6, %v4409_v8 }
 0xbc7   : > { %v2063_v53 = vadd.f32 %v3341_v48, %v2062_v25  ;;  %v2080_v18 = vmul.f32 0.04, %v2076_v40  ;;  %v2082_v25 = vmul.f32 0.99, %v4854_v21  ;;  %v2084_v21 = vmul.f32 0.99, %v4865_v30 }
 0xbc8   : > { %v3343_v46 = vpop.eup %3342 }
 0xbc9   : > { %v2015_v42 = vmul.f32 %v3343_v46, %v2004_v52  ;;  %v2067_v44 = vsel %vm2066_vm7, %v3341_v48, %v2063_v53  ;;  %v4894_v39 = vadd.f32 %v2139_v51, %v2080_v18  ;;  %vm2020_vm4 = vweird.f32 %v3343_v46 }
 0xbca   : > { %v2072_v55 = vsel %vm2069_vm9, %v2071_v10, %v2067_v44  ;;  %vm2021_vm14 = vmor %vm2019_vm8, %vm2020_vm4  ;;  %v2126_v60 = vsel %vm1073_vm13, %v2080_v18, 0.0  ;;  %v2083_v51 = vmul.f32 0.99, %v4859_v1 }
 0xbcb   : > { %v2016_v33 = vsub.f32 1.0, %v2015_v42  ;;  %v2073_v29 = vmul.f32 %v4880_v63, %v2072_v55 }
 0xbcd   : > { %v2017_v32 = vmul.f32 %v3343_v46, %v2016_v33  ;;  %v2077_v50 = vsub.f32 %v2073_v29, %v4413_v19 }
 0xbcf   : > { %v2081_v5 = vmul.f32 0.04, %v2077_v50  ;;  %v2018_v28 = vadd.f32 %v3343_v46, %v2017_v32  ;;  %v2085_v32 = vmul.f32 0.99, %v4871_v11 }
 0xbd1   : > { %3082 = vmatpush.msk.msrb.mxu1 %vm616_vm1, %v2081_v5  ;;  %v4900_v59 = vadd.f32 %v2140_v58, %v2081_v5  ;;  %v2022_v27 = vsel %vm2021_vm14, %v3343_v46, %v2018_v28  ;;  %v2128_v57 = vsel %vm1083_vm12, %v2081_v5, 0.0 }
 0xbd2   : > { %v2027_v63 = vsel %vm2024_vm10, %v2026_v31, %v2022_v27 }
 0xbd3   : > { %2102 = vmatpush.msrb.mxu1 %v2080_v18  ;;  %v2028_v12 = vmul.f32 %v4884_v17, %v2027_v63 }
 0xbd5   : > { %2103 = vmatpush.msrb.mxu1 %v2079_v0  ;;  %v2074_v22 = vsub.f32 %v2028_v12, %v4423_v45 }
 0xbd7   : > { %v2078_v36 = vmul.f32 0.04, %v2074_v22 }
 0xbd9   : > { %2104 = vmatpush.msrb.mxu1 %v2078_v36  ;;  %v2123_v62 = vsel %vm1073_vm13, %v2078_v36, 0.0  ;;  %v4907_v7 = vadd.f32 %v2137_v38, %v2078_v36 }
 0xbda   : > { %v2125_v48 = vadd.f32 %v2124_v61, %v2123_v62  ;;  %3083 = vmatmul.msk.f32.vlgmr.msrb.gmra.mxu1 %vm1183_vm5, %v4428_v20 }
 0xbdc   : > { %v2127_v17 = vadd.f32 %v2126_v60, %v2125_v48 }
 0xbde   : > { %v2129_v26 = vadd.f32 %v2128_v57, %v2127_v17 }
 0xbe0   : > { %v2130_v52 = vrot.slane %v2129_v26, 4 }
 0xbe2   : > { %v2131_v56 = vadd.f32 %v2130_v52, %v2129_v26  ;;  %3084 = vmatmul.msk.f32.gmra.mxu1 %vm1183_vm5, %v4434_v14 }
 0xbe4   : > { %v2132_v0 = vrot.slane %v2131_v56, 2 }
 0xbe6   : > { %v2133_v49 = vadd.f32 %v2132_v0, %v2131_v56 }
 0xbe8   : > { %v2134_v9 = vrot.slane %v2133_v49, 1 }
 0xbea   : > { %3085 = vmatmul.msk.f32.gmra.mxu1 %vm1183_vm5, %v4438_v35  ;;  %v2135_v43 = vadd.f32 %v2134_v9, %v2133_v49 }
 0xbec   : > { %v4918_v6 = vsub.f32 %v2122_v24, %v2135_v43 }
 0xbee   : > { %v2146_v53 = vperm.slane %v4918_v6, 0 }
 0xbf2   : > { %3086 = vmatmul.msk.f32.gmra.mxu1 %vm1183_vm5, %v4440_v15 }
 0xc57   : > { %v2106_v13 = vpop.f32.mrf.mxu1 }
 0xc58   : > { %v4923_v40 = vsub.f32 %v2082_v25, %v2106_v13 }
 0xc5a   : > { %v2148_v46 = vadd.f32 %v2146_v53, %v4923_v40 }
 0xc5c   : > { %v2152_v28 = vadd.f32 %v2148_v46, %v5279_v4 }
 0xc5e   : > { %v2156_v31 = vsel %vm1073_vm13, %v2152_v28, -inf }
 0xc5f   : > { %v2109_v10 = vpop.f32.mrf.mxu1 }
 0xc60   : > { %v4928_v18 = vsub.f32 %v2083_v51, %v2109_v10 }
 0xc62   : > { %v2149_v23 = vadd.f32 %v2146_v53, %v4928_v18 }
 0xc64   : > { %v2153_v42 = vadd.f32 %v2149_v23, %v5279_v4 }
 0xc66   : > { %v2159_v44 = vsel %vm1073_vm13, %v2153_v42, -inf }
 0xc67   : > { %2160 = vmax.xlane.f32.xlu2 %v2159_v44  ;;  %v2112_v55 = vpop.f32.mrf.mxu1 }
 0xc68   : > { %v4934_v33 = vsub.f32 %v2084_v21, %v2112_v55 }
 0xc6a   : > { %v2150_v29 = vadd.f32 %v2146_v53, %v4934_v33 }
 0xc6c   : > { %v2154_v2 = vadd.f32 %v2150_v29, %v5279_v4 }
 0xc6e   : > { %v2162_v1 = vsel %vm1073_vm13, %v2154_v2, -inf }
 0xc6f   : > { %2163 = vmax.xlane.f32.xlu1 %v2162_v1  ;;  %v2115_v54 = vpop.f32.mrf.mxu1 }
 0xc70   : > { %v4940_v50 = vsub.f32 %v2085_v32, %v2115_v54 }
 0xc72   : > { %v2151_v58 = vadd.f32 %v2146_v53, %v4940_v50 }
 0xc74   : > { %v2155_v30 = vadd.f32 %v2151_v58, %v5279_v4 }
 0xc76   : > { %v2165_v5 = vsel %vm1083_vm12, %v2155_v30, -inf }
 0xc77   : > { %2166 = vmax.xlane.f32.xlu0 %v2165_v5 }
 0xc7f   : > { %2157 = vmax.xlane.f32.xlu0 %v2156_v31 }
 0xcda   : > { %v2161_v27 = vpop.xlane.xlu2 %2160 }
 0xcdb   : > { %v2169_v63 = vsub.f32 %v2153_v42, %v2161_v27 }
 0xcdd   : > { %v2174_v12 = vmul.f32 1.442695, %v2169_v63 }
 0xcdf   : > { %3344 = vpow2.f32 %v2174_v12  ;;  %v2316_v12 = vmul.f32 0.99, %v4890_v16 }
 0xce2   : > { %v2164_v11 = vpop.xlane.xlu1 %2163 }
 0xce3   : > { %v2170_v22 = vsub.f32 %v2154_v2, %v2164_v11 }
 0xce5   : > { %v3345_v38 = vpop.eup %3344  ;;  %v2176_v36 = vmul.f32 1.442695, %v2170_v22 }
 0xce6   : > { %v2183_v61 = vsel %vm1073_vm13, %v3345_v38, 0.0 }
 0xce7   : > { %3346 = vpow2.f32 %v2176_v36  ;;  %2184 = vadd.xlane.f32.xlu0 %v2183_v61 }
 0xcea   : > { %v2167_v62 = vpop.xlane.xlu0 %2166 }
 0xceb   : > { %v2171_v48 = vsub.f32 %v2155_v30, %v2167_v62 }
 0xced   : > { %v3347_v60 = vpop.eup %3346  ;;  %v2178_v17 = vmul.f32 1.442695, %v2171_v48 }
 0xcee   : > { %v2186_v57 = vsel %vm1073_vm13, %v3347_v60, 0.0 }
 0xcef   : > { %3348 = vpow2.f32 %v2178_v17  ;;  %2187 = vadd.xlane.f32.xlu2 %v2186_v57 }
 0xcf2   : > { %v2158_v26 = vpop.xlane.xlu0 %2157 }
 0xcf3   : > { %v2168_v52 = vsub.f32 %v2152_v28, %v2158_v26 }
 0xcf5   : > { %v4949_v56 = vpop.eup %3348  ;;  %v2172_v0 = vmul.f32 1.442695, %v2168_v52 }
 0xcf6   : > { %v2189_v49 = vsel %vm1083_vm12, %v4949_v56, 0.0 }
 0xcf7   : > { %3350 = vpow2.f32 %v2172_v0  ;;  %2190 = vadd.xlane.f32.xlu1 %v2189_v49 }
 0xcfd   : > { %v4953_v9 = vpop.eup %3350 }
 0xcfe   : > { %v2180_v24 = vsel %vm1073_vm13, %v4953_v9, 0.0 }
 0xcff   : > { %2181 = vadd.xlane.f32.xlu1 %v2180_v24  ;;  %v2317_v24 = vmul.f32 0.99, %v4894_v39  ;;  %v2318_v39 = vmul.f32 0.99, %v4900_v59  ;;  %v2315_v59 = vmul.f32 0.99, %v4907_v7 }
 0xd5a   : > { %v2185_v43 = vpop.xlane.xlu0 %2184 }
 0xd5b   : > { %3352 = vrcp.f32 %v2185_v43  ;;  %v2218_v10 = vand.u32 2147483648, %v2185_v43  ;;  %v2216_v23 = vand.u32 2147483647, %v2185_v43  ;;  %vm2212_vm15 = vweird.f32 %v2185_v43 }
 0xd5d   : > { %v2219_v21 = vor.u32 1.1754944e-38, %v2218_v10  ;;  %vm2217_vm2 = vcmp.eq.f32.partialorder %v2216_v23, 8.507059e+37 }
 0xd61   : > { %v3353_v25 = vpop.eup %3352 }
 0xd62   : > { %v2208_v13 = vmul.f32 %v3353_v25, %v2185_v43  ;;  %v2188_v53 = vpop.xlane.xlu2 %2187  ;;  %vm2213_vm11 = vweird.f32 %v3353_v25 }
 0xd63   : > { %3354 = vrcp.f32 %v2188_v53  ;;  %vm2214_vm0 = vmor %vm2212_vm15, %vm2213_vm11  ;;  %v2233_v30 = vand.u32 2147483648, %v2188_v53  ;;  %v2231_v5 = vand.u32 2147483647, %v2188_v53  ;;  %vm2227_vm3 = vweird.f32 %v2188_v53 }
 0xd64   : > { %v2209_v46 = vsub.f32 1.0, %v2208_v13 }
 0xd65   : > { %v2234_v11 = vor.u32 1.1754944e-38, %v2233_v30  ;;  %vm2232_vm9 = vcmp.eq.f32.partialorder %v2231_v5, 8.507059e+37 }
 0xd66   : > { %v2210_v51 = vmul.f32 %v3353_v25, %v2209_v46 }
 0xd68   : > { %v2211_v42 = vadd.f32 %v3353_v25, %v2210_v51 }
 0xd69   : > { %v3355_v44 = vpop.eup %3354 }
 0xd6a   : > { %v2223_v55 = vmul.f32 %v3355_v44, %v2188_v53  ;;  %v2191_v29 = vpop.xlane.xlu1 %2190  ;;  %v2215_v2 = vsel %vm2214_vm0, %v3353_v25, %v2211_v42  ;;  %vm2228_vm6 = vweird.f32 %v3355_v44 }
 0xd6b   : > { %3356 = vrcp.f32 %v2191_v29  ;;  %v2220_v32 = vsel %vm2217_vm2, %v2219_v21, %v2215_v2  ;;  %vm2229_vm7 = vmor %vm2227_vm3, %vm2228_vm6  ;;  %v2248_v17 = vand.u32 2147483648, %v2191_v29  ;;  %v2246_v52 = vand.u32 2147483647, %v2191_v29 }
 0xd6c   : > { %v2224_v1 = vsub.f32 1.0, %v2223_v55  ;;  %v2221_v54 = vmul.f32 %v3345_v38, %v2220_v32  ;;  %vm2242_vm8 = vweird.f32 %v2191_v29 }
 0xd6d   : > { %v2249_v43 = vor.u32 1.1754944e-38, %v2248_v17  ;;  %vm2247_vm10 = vcmp.eq.f32.partialorder %v2246_v52, 8.507059e+37 }
 0xd6e   : > { %v2225_v58 = vmul.f32 %v3355_v44, %v2224_v1  ;;  %v2253_v28 = vsub.f32 %v2221_v54, %v4420_v41 }
 0xd70   : > { %v2226_v31 = vadd.f32 %v3355_v44, %v2225_v58  ;;  %v2257_v63 = vmul.f32 0.04, %v2253_v28 }
 0xd71   : > { %v3357_v27 = vpop.eup %3356 }
 0xd72   : > { %v2238_v22 = vmul.f32 %v3357_v27, %v2191_v29  ;;  %v2182_v36 = vpop.xlane.xlu1 %2181  ;;  %v2230_v61 = vsel %vm2229_vm7, %v3355_v44, %v2226_v31  ;;  %v4959_v48 = vadd.f32 %v2316_v12, %v2257_v63  ;;  %vm2243_vm4 = vweird.f32 %v3357_v27 }
 0xd73   : > { %3358 = vrcp.f32 %v2182_v36  ;;  %v2235_v62 = vsel %vm2232_vm9, %v2234_v11, %v2230_v61  ;;  %vm2244_vm14 = vmor %vm2242_vm8, %vm2243_vm4  ;;  %v2203_v23 = vand.u32 2147483648, %v2182_v36  ;;  %v2201_v44 = vand.u32 2147483647, %v2182_v36 }
 0xd74   : > { %v2239_v38 = vsub.f32 1.0, %v2238_v22  ;;  %v2236_v57 = vmul.f32 %v3347_v60, %v2235_v62  ;;  %vm2197_vm15 = vweird.f32 %v2182_v36  ;;  %v2302_v5 = vsel %vm1073_vm13, %v2257_v63, 0.0 }
 0xd75   : > { %v2204_v2 = vor.u32 1.1754944e-38, %v2203_v23  ;;  %vm2202_vm2 = vcmp.eq.f32.partialorder %v2201_v44, 8.507059e+37  ;;  %v2300_v62 = vmul.f32 0.99, %v4918_v6 }
 0xd76   : > { %v2240_v26 = vmul.f32 %v3357_v27, %v2239_v38  ;;  %v2254_v0 = vsub.f32 %v2236_v57, %v4409_v8 }
 0xd78   : > { %v2241_v49 = vadd.f32 %v3357_v27, %v2240_v26  ;;  %v2258_v25 = vmul.f32 0.04, %v2254_v0  ;;  %v2260_v26 = vmul.f32 0.99, %v4923_v40  ;;  %v2262_v40 = vmul.f32 0.99, %v4934_v33 }
 0xd79   : > { %v3359_v16 = vpop.eup %3358 }
 0xd7a   : > { %v2193_v13 = vmul.f32 %v3359_v16, %v2182_v36  ;;  %v2245_v53 = vsel %vm2244_vm14, %v3357_v27, %v2241_v49  ;;  %v4963_v51 = vadd.f32 %v2317_v24, %v2258_v25  ;;  %vm2198_vm11 = vweird.f32 %v3359_v16 }
 0xd7b   : > { %v2250_v46 = vsel %vm2247_vm10, %v2249_v43, %v2245_v53  ;;  %vm2199_vm0 = vmor %vm2197_vm15, %vm2198_vm11  ;;  %v2304_v12 = vsel %vm1073_vm13, %v2258_v25, 0.0  ;;  %v2261_v24 = vmul.f32 0.99, %v4928_v18 }
 0xd7c   : > { %v2194_v60 = vsub.f32 1.0, %v2193_v13  ;;  %v2251_v10 = vmul.f32 %v4949_v56, %v2250_v46 }
 0xd7e   : > { %v2195_v42 = vmul.f32 %v3359_v16, %v2194_v60  ;;  %v2255_v21 = vsub.f32 %v2251_v10, %v4413_v19 }
 0xd80   : > { %v2259_v55 = vmul.f32 0.04, %v2255_v21  ;;  %v2196_v29 = vadd.f32 %v3359_v16, %v2195_v42  ;;  %v2263_v42 = vmul.f32 0.99, %v4940_v50 }
 0xd82   : > { %3087 = vmatpush.msk.msra.mxu2 %vm616_vm1, %v2259_v55  ;;  %v4969_v1 = vadd.f32 %v2318_v39, %v2259_v55  ;;  %v2200_v32 = vsel %vm2199_vm0, %v3359_v16, %v2196_v29  ;;  %v2306_v11 = vsel %vm1083_vm12, %v2259_v55, 0.0 }
 0xd83   : > { %v2205_v56 = vsel %vm2202_vm2, %v2204_v2, %v2200_v32 }
 0xd84   : > { %2280 = vmatpush.msra.mxu2 %v2258_v25  ;;  %v2206_v54 = vmul.f32 %v4953_v9, %v2205_v56 }
 0xd86   : > { %2281 = vmatpush.msra.mxu2 %v2257_v63  ;;  %v2252_v58 = vsub.f32 %v2206_v54, %v4423_v45 }
 0xd88   : > { %v2256_v30 = vmul.f32 0.04, %v2252_v58 }
 0xd8a   : > { %2282 = vmatpush.msra.mxu2 %v2256_v30  ;;  %v2301_v28 = vsel %vm1073_vm13, %v2256_v30, 0.0  ;;  %v4976_v31 = vadd.f32 %v2315_v59, %v2256_v30 }
 0xd8b   : > { %v2303_v27 = vadd.f32 %v2302_v5, %v2301_v28  ;;  %3088 = vmatmul.msk.f32.vlgmr.msra.gmra.mxu2 %vm1183_vm5, %v4428_v20 }
 0xd8d   : > { %v2305_v9 = vadd.f32 %v2304_v12, %v2303_v27 }
 0xd8f   : > { %v2307_v22 = vadd.f32 %v2306_v11, %v2305_v9 }
 0xd91   : > { %v2308_v36 = vrot.slane %v2307_v22, 4 }
 0xd93   : > { %v2309_v7 = vadd.f32 %v2308_v36, %v2307_v22  ;;  %3089 = vmatmul.msk.f32.gmra.mxu2 %vm1183_vm5, %v4434_v14 }
 0xd95   : > { %v2310_v63 = vrot.slane %v2309_v7, 2 }
 0xd97   : > { %v2311_v61 = vadd.f32 %v2310_v63, %v2309_v7 }
 0xd99   : > { %v2312_v38 = vrot.slane %v2311_v61, 1 }
 0xd9b   : > { %3090 = vmatmul.msk.f32.gmra.mxu2 %vm1183_vm5, %v4438_v35  ;;  %v2313_v17 = vadd.f32 %v2312_v38, %v2311_v61 }
 0xd9d   : > { %v4987_v57 = vsub.f32 %v2300_v62, %v2313_v17 }
 0xd9f   : > { %v2324_v49 = vperm.slane %v4987_v57, 0 }
 0xda3   : > { %3091 = vmatmul.msk.f32.gmra.mxu2 %vm1183_vm5, %v4440_v15 }
 0xe0e   : > { %v2284_v52 = vpop.f32.mrf.mxu2 }
 0xe0f   : > { %v4992_v0 = vsub.f32 %v2260_v26, %v2284_v52 }
 0xe11   : > { %v2326_v16 = vadd.f32 %v2324_v49, %v4992_v0 }
 0xe13   : > { %v2330_v29 = vadd.f32 %v2326_v16, %v5279_v4 }
 0xe15   : > { %v2334_v2 = vsel %vm1073_vm13, %v2330_v29, -inf }
 0xe16   : > { %v2287_v43 = vpop.f32.mrf.mxu2 }
 0xe17   : > { %v4997_v25 = vsub.f32 %v2261_v24, %v2287_v43 }
 0xe19   : > { %v2327_v6 = vadd.f32 %v2324_v49, %v4997_v25 }
 0xe1b   : > { %v2331_v13 = vadd.f32 %v2327_v6, %v5279_v4 }
 0xe1d   : > { %v2337_v53 = vsel %vm1073_vm13, %v2331_v13, -inf }
 0xe1e   : > { %2338 = vmax.xlane.f32.xlu1 %v2337_v53  ;;  %v2290_v46 = vpop.f32.mrf.mxu2 }
 0xe1f   : > { %v5003_v60 = vsub.f32 %v2262_v40, %v2290_v46 }
 0xe21   : > { %v2328_v10 = vadd.f32 %v2324_v49, %v5003_v60 }
 0xe23   : > { %v2332_v23 = vadd.f32 %v2328_v10, %v5279_v4 }
 0xe25   : > { %v2340_v18 = vsel %vm1073_vm13, %v2332_v23, -inf }
 0xe26   : > { %2341 = vmax.xlane.f32.xlu0 %v2340_v18  ;;  %v2293_v44 = vpop.f32.mrf.mxu2 }
 0xe27   : > { %v5009_v21 = vsub.f32 %v2263_v42, %v2293_v44 }
 0xe29   : > { %v2329_v39 = vadd.f32 %v2324_v49, %v5009_v21 }
 0xe2b   : > { %v2333_v33 = vadd.f32 %v2329_v39, %v5279_v4 }
 0xe2d   : > { %v2343_v55 = vsel %vm1083_vm12, %v2333_v33, -inf }
 0xe2e   : > { %2344 = vmax.xlane.f32.xlu2 %v2343_v55 }
 0xe36   : > { %2335 = vmax.xlane.f32.xlu2 %v2334_v2 }
 0xe91   : > { %v2339_v32 = vpop.xlane.xlu1 %2338 }
 0xe92   : > { %v2347_v56 = vsub.f32 %v2331_v13, %v2339_v32 }
 0xe94   : > { %v2352_v54 = vmul.f32 1.442695, %v2347_v56 }
 0xe96   : > { %3360 = vpow2.f32 %v2352_v54  ;;  %v2494_v54 = vmul.f32 0.99, %v4959_v48 }
 0xe99   : > { %v2342_v50 = vpop.xlane.xlu0 %2341 }
 0xe9a   : > { %v2348_v58 = vsub.f32 %v2332_v23, %v2342_v50 }
 0xe9c   : > { %v3361_v59 = vpop.eup %3360  ;;  %v2354_v30 = vmul.f32 1.442695, %v2348_v58 }
 0xe9d   : > { %v2361_v5 = vsel %vm1073_vm13, %v3361_v59, 0.0 }
 0xe9e   : > { %3362 = vpow2.f32 %v2354_v30  ;;  %2362 = vadd.xlane.f32.xlu2 %v2361_v5 }
 0xea1   : > { %v2345_v28 = vpop.xlane.xlu2 %2344 }
 0xea2   : > { %v2349_v27 = vsub.f32 %v2333_v33, %v2345_v28 }
 0xea4   : > { %v3363_v12 = vpop.eup %3362  ;;  %v2356_v9 = vmul.f32 1.442695, %v2349_v27 }
 0xea5   : > { %v2364_v11 = vsel %vm1073_vm13, %v3363_v12, 0.0 }
 0xea6   : > { %3364 = vpow2.f32 %v2356_v9  ;;  %2365 = vadd.xlane.f32.xlu1 %v2364_v11 }
 0xea9   : > { %v2336_v22 = vpop.xlane.xlu2 %2335 }
 0xeaa   : > { %v2346_v36 = vsub.f32 %v2330_v29, %v2336_v22 }
 0xeac   : > { %v5018_v7 = vpop.eup %3364  ;;  %v2350_v63 = vmul.f32 1.442695, %v2346_v36 }
 0xead   : > { %v2367_v61 = vsel %vm1083_vm12, %v5018_v7, 0.0 }
 0xeae   : > { %3366 = vpow2.f32 %v2350_v63  ;;  %2368 = vadd.xlane.f32.xlu0 %v2367_v61 }
 0xeb4   : > { %v5022_v38 = vpop.eup %3366 }
 0xeb5   : > { %v2358_v62 = vsel %vm1073_vm13, %v5022_v38, 0.0 }
 0xeb6   : > { %2359 = vadd.xlane.f32.xlu0 %v2358_v62  ;;  %v2495_v62 = vmul.f32 0.99, %v4963_v51  ;;  %v2496_v51 = vmul.f32 0.99, %v4969_v1  ;;  %v2493_v1 = vmul.f32 0.99, %v4976_v31 }
 0xf11   : > { %v2363_v17 = vpop.xlane.xlu2 %2362 }
 0xf12   : > { %3368 = vrcp.f32 %v2363_v17  ;;  %v2396_v43 = vand.u32 2147483648, %v2363_v17  ;;  %v2394_v6 = vand.u32 2147483647, %v2363_v17  ;;  %vm2390_vm3 = vweird.f32 %v2363_v17 }
 0xf14   : > { %v2397_v40 = vor.u32 1.1754944e-38, %v2396_v43  ;;  %vm2395_vm9 = vcmp.eq.f32.partialorder %v2394_v6, 8.507059e+37 }
 0xf18   : > { %v3369_v26 = vpop.eup %3368 }
 0xf19   : > { %v2386_v52 = vmul.f32 %v3369_v26, %v2363_v17  ;;  %v2366_v49 = vpop.xlane.xlu1 %2365  ;;  %vm2391_vm6 = vweird.f32 %v3369_v26 }
 0xf1a   : > { %3370 = vrcp.f32 %v2366_v49  ;;  %vm2392_vm7 = vmor %vm2390_vm3, %vm2391_vm6  ;;  %v2411_v33 = vand.u32 2147483648, %v2366_v49  ;;  %v2409_v55 = vand.u32 2147483647, %v2366_v49  ;;  %vm2405_vm8 = vweird.f32 %v2366_v49 }
 0xf1b   : > { %v2387_v16 = vsub.f32 1.0, %v2386_v52 }
 0xf1c   : > { %v2412_v50 = vor.u32 1.1754944e-38, %v2411_v33  ;;  %vm2410_vm10 = vcmp.eq.f32.partialorder %v2409_v55, 8.507059e+37 }
 0xf1d   : > { %v2388_v24 = vmul.f32 %v3369_v26, %v2387_v16 }
 0xf1f   : > { %v2389_v13 = vadd.f32 %v3369_v26, %v2388_v24 }
 0xf20   : > { %v3371_v53 = vpop.eup %3370 }
 0xf21   : > { %v2401_v46 = vmul.f32 %v3371_v53, %v2366_v49  ;;  %v2369_v10 = vpop.xlane.xlu0 %2368  ;;  %v2393_v23 = vsel %vm2392_vm7, %v3369_v26, %v2389_v13  ;;  %vm2406_vm4 = vweird.f32 %v3371_v53 }
 0xf22   : > { %3372 = vrcp.f32 %v2369_v10  ;;  %v2398_v42 = vsel %vm2395_vm9, %v2397_v40, %v2393_v23  ;;  %vm2407_vm14 = vmor %vm2405_vm8, %vm2406_vm4  ;;  %v2426_v9 = vand.u32 2147483648, %v2369_v10  ;;  %v2424_v36 = vand.u32 2147483647, %v2369_v10 }
 0xf23   : > { %v2402_v18 = vsub.f32 1.0, %v2401_v46  ;;  %v2399_v44 = vmul.f32 %v3361_v59, %v2398_v42  ;;  %vm2420_vm15 = vweird.f32 %v2369_v10 }
 0xf24   : > { %v2427_v17 = vor.u32 1.1754944e-38, %v2426_v9  ;;  %vm2425_vm2 = vcmp.eq.f32.partialorder %v2424_v36, 8.507059e+37 }
 0xf25   : > { %v2403_v39 = vmul.f32 %v3371_v53, %v2402_v18  ;;  %v2431_v29 = vsub.f32 %v2399_v44, %v4420_v41 }
 0xf27   : > { %v2404_v2 = vadd.f32 %v3371_v53, %v2403_v39  ;;  %v2435_v56 = vmul.f32 0.04, %v2431_v29 }
 0xf28   : > { %v3373_v32 = vpop.eup %3372 }
 0xf29   : > { %v2416_v58 = vmul.f32 %v3373_v32, %v2369_v10  ;;  %v2360_v30 = vpop.xlane.xlu0 %2359  ;;  %v2408_v5 = vsel %vm2407_vm14, %v3371_v53, %v2404_v2  ;;  %v5028_v27 = vadd.f32 %v2494_v54, %v2435_v56  ;;  %vm2421_vm11 = vweird.f32 %v3373_v32 }
 0xf2a   : > { %3374 = vrcp.f32 %v2360_v30  ;;  %v2413_v28 = vsel %vm2410_vm10, %v2412_v50, %v2408_v5  ;;  %vm2422_vm0 = vmor %vm2420_vm15, %vm2421_vm11  ;;  %v2381_v6 = vand.u32 2147483648, %v2360_v30  ;;  %v2379_v53 = vand.u32 2147483647, %v2360_v30 }
 0xf2b   : > { %v2417_v59 = vsub.f32 1.0, %v2416_v58  ;;  %v2414_v11 = vmul.f32 %v3363_v12, %v2413_v28  ;;  %vm2375_vm3 = vweird.f32 %v2360_v30  ;;  %v2480_v55 = vsel %vm1073_vm13, %v2435_v56, 0.0 }
 0xf2c   : > { %v2382_v23 = vor.u32 1.1754944e-38, %v2381_v6  ;;  %vm2380_vm9 = vcmp.eq.f32.partialorder %v2379_v53, 8.507059e+37  ;;  %v2478_v28 = vmul.f32 0.99, %v4987_v57 }
 0xf2d   : > { %v2418_v22 = vmul.f32 %v3373_v32, %v2417_v59  ;;  %v2432_v63 = vsub.f32 %v2414_v11, %v4409_v8 }
 0xf2f   : > { %v2419_v61 = vadd.f32 %v3373_v32, %v2418_v22  ;;  %v2436_v26 = vmul.f32 0.04, %v2432_v63  ;;  %v2438_v22 = vmul.f32 0.99, %v4992_v0  ;;  %v2440_v0 = vmul.f32 0.99, %v5003_v60 }
 0xf30   : > { %v3375_v48 = vpop.eup %3374 }
 0xf31   : > { %v2371_v52 = vmul.f32 %v3375_v48, %v2360_v30  ;;  %v2423_v49 = vsel %vm2422_vm0, %v3373_v32, %v2419_v61  ;;  %v5032_v24 = vadd.f32 %v2495_v62, %v2436_v26  ;;  %vm2376_vm6 = vweird.f32 %v3375_v48 }
 0xf32   : > { %v2428_v16 = vsel %vm2425_vm2, %v2427_v17, %v2423_v49  ;;  %vm2377_vm7 = vmor %vm2375_vm3, %vm2376_vm6  ;;  %v2482_v54 = vsel %vm1073_vm13, %v2436_v26, 0.0  ;;  %v2439_v62 = vmul.f32 0.99, %v4997_v25 }
 0xf33   : > { %v2372_v12 = vsub.f32 1.0, %v2371_v52  ;;  %v2429_v43 = vmul.f32 %v5018_v7, %v2428_v16 }
 0xf35   : > { %v2373_v13 = vmul.f32 %v3375_v48, %v2372_v12  ;;  %v2433_v40 = vsub.f32 %v2429_v43, %v4413_v19 }
 0xf37   : > { %v2437_v46 = vmul.f32 0.04, %v2433_v40  ;;  %v2374_v10 = vadd.f32 %v3375_v48, %v2373_v13  ;;  %v2441_v13 = vmul.f32 0.99, %v5009_v21 }
 0xf39   : > { %3092 = vmatpush.msk.msra.mxu3 %vm616_vm1, %v2437_v46  ;;  %v5038_v18 = vadd.f32 %v2496_v51, %v2437_v46  ;;  %v2378_v42 = vsel %vm2377_vm7, %v3375_v48, %v2374_v10  ;;  %v2484_v50 = vsel %vm1083_vm12, %v2437_v46, 0.0 }
 0xf3a   : > { %v2383_v7 = vsel %vm2380_vm9, %v2382_v23, %v2378_v42 }
 0xf3b   : > { %2458 = vmatpush.msra.mxu3 %v2436_v26  ;;  %v2384_v44 = vmul.f32 %v5022_v38, %v2383_v7 }
 0xf3d   : > { %2459 = vmatpush.msra.mxu3 %v2435_v56  ;;  %v2430_v39 = vsub.f32 %v2384_v44, %v4423_v45 }
 0xf3f   : > { %v2434_v33 = vmul.f32 0.04, %v2430_v39 }
 0xf41   : > { %2460 = vmatpush.msra.mxu3 %v2434_v33  ;;  %v2479_v29 = vsel %vm1073_vm13, %v2434_v33, 0.0  ;;  %v5045_v2 = vadd.f32 %v2493_v1, %v2434_v33 }
 0xf42   : > { %v2481_v32 = vadd.f32 %v2480_v55, %v2479_v29  ;;  %3093 = vmatmul.msk.f32.vlgmr.msra.gmra.mxu3 %vm1183_vm5, %v4428_v20 }
 0xf44   : > { %v2483_v38 = vadd.f32 %v2482_v54, %v2481_v32 }
 0xf46   : > { %v2485_v58 = vadd.f32 %v2484_v50, %v2483_v38 }
 0xf48   : > { %v2486_v30 = vrot.slane %v2485_v58, 4 }
 0xf4a   : > { %v2487_v31 = vadd.f32 %v2486_v30, %v2485_v58  ;;  %3094 = vmatmul.msk.f32.gmra.mxu3 %vm1183_vm5, %v4434_v14 }
 0xf4c   : > { %v2488_v56 = vrot.slane %v2487_v31, 2 }
 0xf4e   : > { %v2489_v5 = vadd.f32 %v2488_v56, %v2487_v31 }
 0xf50   : > { %v2490_v59 = vrot.slane %v2489_v5, 1 }
 0xf52   : > { %3095 = vmatmul.msk.f32.gmra.mxu3 %vm1183_vm5, %v4438_v35  ;;  %v2491_v9 = vadd.f32 %v2490_v59, %v2489_v5 }
 0xf54   : > { %v5056_v11 = vsub.f32 %v2478_v28, %v2491_v9 }
 0xf56   : > { %v2502_v61 = vperm.slane %v5056_v11, 0 }
 0xf5a   : > { %3096 = vmatmul.msk.f32.gmra.mxu3 %vm1183_vm5, %v4440_v15 }
 0xfc5   : > { %v2462_v36 = vpop.f32.mrf.mxu3 }
 0xfc6   : > { %v5061_v63 = vsub.f32 %v2438_v22, %v2462_v36 }
 0xfc8   : > { %v2504_v48 = vadd.f32 %v2502_v61, %v5061_v63 }
 0xfca   : > { %v2508_v10 = vadd.f32 %v2504_v48, %v5279_v4 }
 0xfcc   : > { %v2512_v23 = vsel %vm1073_vm13, %v2508_v10, -inf }
 0xfcd   : > { %v2465_v17 = vpop.f32.mrf.mxu3 }
 0xfce   : > { %v5066_v26 = vsub.f32 %v2439_v62, %v2465_v17 }
 0xfd0   : > { %v2505_v57 = vadd.f32 %v2502_v61, %v5066_v26 }
 0xfd2   : > { %v2509_v52 = vadd.f32 %v2505_v57, %v5279_v4 }
 0xfd4   : > { %v2515_v49 = vsel %vm1073_vm13, %v2509_v52, -inf }
 0xfd5   : > { %2516 = vmax.xlane.f32.xlu0 %v2515_v49  ;;  %v2468_v16 = vpop.f32.mrf.mxu3 }
 0xfd6   : > { %v5072_v12 = vsub.f32 %v2440_v0, %v2468_v16 }
 0xfd8   : > { %v2506_v43 = vadd.f32 %v2502_v61, %v5072_v12 }
 0xfda   : > { %v2510_v6 = vadd.f32 %v2506_v43, %v5279_v4 }
 0xfdc   : > { %v2518_v25 = vsel %vm1073_vm13, %v2510_v6, -inf }
 0xfdd   : > { %2519 = vmax.xlane.f32.xlu2 %v2518_v25  ;;  %v2471_v53 = vpop.f32.mrf.mxu3 }
 0xfde   : > { %v5078_v40 = vsub.f32 %v2441_v13, %v2471_v53 }
 0xfe0   : > { %v2507_v51 = vadd.f32 %v2502_v61, %v5078_v40 }
 0xfe2   : > { %v2511_v60 = vadd.f32 %v2507_v51, %v5279_v4 }
 0xfe4   : > { %v2521_v46 = vsel %vm1083_vm12, %v2511_v60, -inf }
 0xfe5   : > { %2522 = vmax.xlane.f32.xlu1 %v2521_v46 }
 0xfed   : > { %2513 = vmax.xlane.f32.xlu1 %v2512_v23 }
0x1048   : > { %v2517_v42 = vpop.xlane.xlu0 %2516 }
0x1049   : > { %v2525_v7 = vsub.f32 %v2509_v52, %v2517_v42 }
0x104b   : > { %v2530_v44 = vmul.f32 1.442695, %v2525_v7 }
0x104d   : > { %3376 = vpow2.f32 %v2530_v44  ;;  %v2672_v44 = vmul.f32 0.99, %v5028_v27 }
0x1050   : > { %v2520_v21 = vpop.xlane.xlu2 %2519 }
0x1051   : > { %v2526_v39 = vsub.f32 %v2510_v6, %v2520_v21 }
0x1053   : > { %v3377_v1 = vpop.eup %3376  ;;  %v2532_v33 = vmul.f32 1.442695, %v2526_v39 }
0x1054   : > { %v2539_v55 = vsel %vm1073_vm13, %v3377_v1, 0.0 }
0x1055   : > { %3378 = vpow2.f32 %v2532_v33  ;;  %2540 = vadd.xlane.f32.xlu1 %v2539_v55 }
0x1058   : > { %v2523_v29 = vpop.xlane.xlu1 %2522 }
0x1059   : > { %v2527_v32 = vsub.f32 %v2511_v60, %v2523_v29 }
0x105b   : > { %v3379_v54 = vpop.eup %3378  ;;  %v2534_v38 = vmul.f32 1.442695, %v2527_v32 }
0x105c   : > { %v2542_v50 = vsel %vm1073_vm13, %v3379_v54, 0.0 }
0x105d   : > { %3380 = vpow2.f32 %v2534_v38  ;;  %2543 = vadd.xlane.f32.xlu0 %v2542_v50 }
0x1060   : > { %v2514_v58 = vpop.xlane.xlu1 %2513 }
0x1061   : > { %v2524_v30 = vsub.f32 %v2508_v10, %v2514_v58 }
0x1063   : > { %v5087_v31 = vpop.eup %3380  ;;  %v2528_v56 = vmul.f32 1.442695, %v2524_v30 }
0x1064   : > { %v2545_v5 = vsel %vm1083_vm12, %v5087_v31, 0.0 }
0x1065   : > { %3382 = vpow2.f32 %v2528_v56  ;;  %2546 = vadd.xlane.f32.xlu2 %v2545_v5 }
0x106b   : > { %v5091_v59 = vpop.eup %3382 }
0x106c   : > { %v2536_v28 = vsel %vm1073_vm13, %v5091_v59, 0.0 }
0x106d   : > { %2537 = vadd.xlane.f32.xlu2 %v2536_v28  ;;  %v2673_v28 = vmul.f32 0.99, %v5032_v24  ;;  %v2674_v24 = vmul.f32 0.99, %v5038_v18  ;;  %v2671_v18 = vmul.f32 0.99, %v5045_v2 }
0x10c8   : > { %v2541_v9 = vpop.xlane.xlu1 %2540 }
0x10c9   : > { %3384 = vrcp.f32 %v2541_v9  ;;  %v2574_v17 = vand.u32 2147483648, %v2541_v9  ;;  %v2572_v57 = vand.u32 2147483647, %v2541_v9  ;;  %vm2568_vm8 = vweird.f32 %v2541_v9 }
0x10cb   : > { %v2575_v0 = vor.u32 1.1754944e-38, %v2574_v17  ;;  %vm2573_vm10 = vcmp.eq.f32.partialorder %v2572_v57, 8.507059e+37 }
0x10cf   : > { %v3385_v22 = vpop.eup %3384 }
0x10d0   : > { %v2564_v36 = vmul.f32 %v3385_v22, %v2541_v9  ;;  %v2544_v61 = vpop.xlane.xlu0 %2543  ;;  %vm2569_vm4 = vweird.f32 %v3385_v22 }
0x10d1   : > { %3386 = vrcp.f32 %v2544_v61  ;;  %vm2570_vm14 = vmor %vm2568_vm8, %vm2569_vm4  ;;  %v2589_v60 = vand.u32 2147483648, %v2544_v61  ;;  %v2587_v46 = vand.u32 2147483647, %v2544_v61  ;;  %vm2583_vm15 = vweird.f32 %v2544_v61 }
0x10d2   : > { %v2565_v48 = vsub.f32 1.0, %v2564_v36 }
0x10d3   : > { %v2590_v21 = vor.u32 1.1754944e-38, %v2589_v60  ;;  %vm2588_vm2 = vcmp.eq.f32.partialorder %v2587_v46, 8.507059e+37 }
0x10d4   : > { %v2566_v62 = vmul.f32 %v3385_v22, %v2565_v48 }
0x10d6   : > { %v2567_v52 = vadd.f32 %v3385_v22, %v2566_v62 }
0x10d7   : > { %v3387_v49 = vpop.eup %3386 }
0x10d8   : > { %v2579_v16 = vmul.f32 %v3387_v49, %v2544_v61  ;;  %v2547_v43 = vpop.xlane.xlu2 %2546  ;;  %v2571_v6 = vsel %vm2570_vm14, %v3385_v22, %v2567_v52  ;;  %vm2584_vm11 = vweird.f32 %v3387_v49 }
0x10d9   : > { %3388 = vrcp.f32 %v2547_v43  ;;  %v2576_v13 = vsel %vm2573_vm10, %v2575_v0, %v2571_v6  ;;  %vm2585_vm0 = vmor %vm2583_vm15, %vm2584_vm11  ;;  %v2604_v38 = vand.u32 2147483648, %v2547_v43  ;;  %v2602_v30 = vand.u32 2147483647, %v2547_v43 }
0x10da   : > { %v2580_v25 = vsub.f32 1.0, %v2579_v16  ;;  %v2577_v53 = vmul.f32 %v3377_v1, %v2576_v13  ;;  %vm2598_vm3 = vweird.f32 %v2547_v43 }
0x10db   : > { %v2605_v9 = vor.u32 1.1754944e-38, %v2604_v38  ;;  %vm2603_vm9 = vcmp.eq.f32.partialorder %v2602_v30, 8.507059e+37 }
0x10dc   : > { %v2581_v51 = vmul.f32 %v3387_v49, %v2580_v25  ;;  %v2609_v10 = vsub.f32 %v2577_v53, %v4420_v41 }
0x10de   : > { %v2582_v23 = vadd.f32 %v3387_v49, %v2581_v51  ;;  %v2613_v7 = vmul.f32 0.04, %v2609_v10 }
0x10df   : > { %v3389_v42 = vpop.eup %3388 }
0x10e0   : > { %v2594_v39 = vmul.f32 %v3389_v42, %v2547_v43  ;;  %v2538_v33 = vpop.xlane.xlu2 %2537  ;;  %v2586_v55 = vsel %vm2585_vm0, %v3387_v49, %v2582_v23  ;;  %v5097_v32 = vadd.f32 %v2672_v44, %v2613_v7  ;;  %vm2599_vm6 = vweird.f32 %v3389_v42 }
0x10e1   : > { %3390 = vrcp.f32 %v2538_v33  ;;  %v2591_v29 = vsel %vm2588_vm2, %v2590_v21, %v2586_v55  ;;  %vm2600_vm7 = vmor %vm2598_vm3, %vm2599_vm6  ;;  %v2559_v57 = vand.u32 2147483648, %v2538_v33  ;;  %v2557_v49 = vand.u32 2147483647, %v2538_v33 }
0x10e2   : > { %v2595_v1 = vsub.f32 1.0, %v2594_v39  ;;  %v2592_v50 = vmul.f32 %v3379_v54, %v2591_v29  ;;  %vm2553_vm8 = vweird.f32 %v2538_v33  ;;  %v2658_v46 = vsel %vm1073_vm13, %v2613_v7, 0.0 }
0x10e3   : > { %v2560_v6 = vor.u32 1.1754944e-38, %v2559_v57  ;;  %vm2558_vm10 = vcmp.eq.f32.partialorder %v2557_v49, 8.507059e+37  ;;  %v2656_v29 = vmul.f32 0.99, %v5056_v11 }
0x10e4   : > { %v2596_v58 = vmul.f32 %v3389_v42, %v2595_v1  ;;  %v2610_v56 = vsub.f32 %v2592_v50, %v4409_v8 }
0x10e6   : > { %v2597_v5 = vadd.f32 %v3389_v42, %v2596_v58  ;;  %v2614_v22 = vmul.f32 0.04, %v2610_v56  ;;  %v2616_v58 = vmul.f32 0.99, %v5061_v63  ;;  %v2618_v63 = vmul.f32 0.99, %v5072_v12 }
0x10e7   : > { %v3391_v27 = vpop.eup %3390 }
0x10e8   : > { %v2549_v36 = vmul.f32 %v3391_v27, %v2538_v33  ;;  %v2601_v61 = vsel %vm2600_vm7, %v3389_v42, %v2597_v5  ;;  %v5101_v62 = vadd.f32 %v2673_v28, %v2614_v22  ;;  %vm2554_vm4 = vweird.f32 %v3391_v27 }
0x10e9   : > { %v2606_v48 = vsel %vm2603_vm9, %v2605_v9, %v2601_v61  ;;  %vm2555_vm14 = vmor %vm2553_vm8, %vm2554_vm4  ;;  %v2660_v44 = vsel %vm1073_vm13, %v2614_v22, 0.0  ;;  %v2617_v28 = vmul.f32 0.99, %v5066_v26 }
0x10ea   : > { %v2550_v54 = vsub.f32 1.0, %v2549_v36  ;;  %v2607_v17 = vmul.f32 %v5087_v31, %v2606_v48 }
0x10ec   : > { %v2551_v52 = vmul.f32 %v3391_v27, %v2550_v54  ;;  %v2611_v0 = vsub.f32 %v2607_v17, %v4413_v19 }
0x10ee   : > { %v2615_v16 = vmul.f32 0.04, %v2611_v0  ;;  %v2552_v43 = vadd.f32 %v3391_v27, %v2551_v52  ;;  %v2619_v52 = vmul.f32 0.99, %v5078_v40 }
0x10f0   : > { %3097 = vmatpush.msk.msra.mxu0 %vm616_vm1, %v2615_v16  ;;  %v5107_v25 = vadd.f32 %v2674_v24, %v2615_v16  ;;  %v2556_v13 = vsel %vm2555_vm14, %v3391_v27, %v2552_v43  ;;  %v2662_v21 = vsel %vm1083_vm12, %v2615_v16, 0.0 }
0x10f1   : > { %v2561_v31 = vsel %vm2558_vm10, %v2560_v6, %v2556_v13 }
0x10f2   : > { %2636 = vmatpush.msra.mxu0 %v2614_v22  ;;  %v2562_v53 = vmul.f32 %v5091_v59, %v2561_v31 }
0x10f4   : > { %2637 = vmatpush.msra.mxu0 %v2613_v7  ;;  %v2608_v51 = vsub.f32 %v2562_v53, %v4423_v45 }
0x10f6   : > { %v2612_v60 = vmul.f32 0.04, %v2608_v51 }
0x10f8   : > { %2638 = vmatpush.msra.mxu0 %v2612_v60  ;;  %v2657_v10 = vsel %vm1073_vm13, %v2612_v60, 0.0  ;;  %v5114_v23 = vadd.f32 %v2671_v18, %v2612_v60 }
0x10f9   : > { %v2659_v42 = vadd.f32 %v2658_v46, %v2657_v10  ;;  %3098 = vmatmul.msk.f32.vlgmr.msra.gmra.mxu0 %vm1183_vm5, %v4428_v20 }
0x10fb   : > { %v2661_v59 = vadd.f32 %v2660_v44, %v2659_v42 }
0x10fd   : > { %v2663_v39 = vadd.f32 %v2662_v21, %v2661_v59 }
0x10ff   : > { %v2664_v33 = vrot.slane %v2663_v39, 4 }
0x1101   : > { %v2665_v2 = vadd.f32 %v2664_v33, %v2663_v39  ;;  %3099 = vmatmul.msk.f32.gmra.mxu0 %vm1183_vm5, %v4434_v14 }
0x1103   : > { %v2666_v7 = vrot.slane %v2665_v2, 2 }
0x1105   : > { %v2667_v55 = vadd.f32 %v2666_v7, %v2665_v2 }
0x1107   : > { %v2668_v1 = vrot.slane %v2667_v55, 1 }
0x1109   : > { %3100 = vmatmul.msk.f32.gmra.mxu0 %vm1183_vm5, %v4438_v35  ;;  %v2669_v38 = vadd.f32 %v2668_v1, %v2667_v55 }
0x110b   : > { %v5125_v50 = vsub.f32 %v2656_v29, %v2669_v38 }
0x110d   : > { %v2680_v5 = vperm.slane %v5125_v50, 0 }
0x1111   : > { %3101 = vmatmul.msk.f32.gmra.mxu0 %vm1183_vm5, %v4440_v15 }
0x1176   : > { %v2640_v30 = vpop.f32.mrf.mxu0 }
0x1177   : > { %v5130_v56 = vsub.f32 %v2616_v58, %v2640_v30 }
0x1179   : > { %v2682_v27 = vadd.f32 %v2680_v5, %v5130_v56 }
0x117b   : > { %v2686_v43 = vadd.f32 %v2682_v27, %v5279_v4 }
0x117d   : > { %v2690_v6 = vsel %vm1073_vm13, %v2686_v43, -inf }
0x117e   : > { %v2643_v9 = vpop.f32.mrf.mxu0 }
0x117f   : > { %v5135_v22 = vsub.f32 %v2617_v28, %v2643_v9 }
0x1181   : > { %v2683_v11 = vadd.f32 %v2680_v5, %v5135_v22 }
0x1183   : > { %v2687_v36 = vadd.f32 %v2683_v11, %v5279_v4 }
0x1185   : > { %v2693_v61 = vsel %vm1073_vm13, %v2687_v36, -inf }
0x1186   : > { %2694 = vmax.xlane.f32.xlu2 %v2693_v61  ;;  %v2646_v48 = vpop.f32.mrf.mxu0 }
0x1187   : > { %v5141_v54 = vsub.f32 %v2618_v63, %v2646_v48 }
0x1189   : > { %v2684_v17 = vadd.f32 %v2680_v5, %v5141_v54 }
0x118b   : > { %v2688_v57 = vadd.f32 %v2684_v17, %v5279_v4 }
0x118d   : > { %v2696_v26 = vsel %vm1073_vm13, %v2688_v57, -inf }
0x118e   : > { %2697 = vmax.xlane.f32.xlu1 %v2696_v26  ;;  %v2649_v49 = vpop.f32.mrf.mxu0 }
0x118f   : > { %v5147_v0 = vsub.f32 %v2619_v52, %v2649_v49 }
0x1191   : > { %v2685_v24 = vadd.f32 %v2680_v5, %v5147_v0 }
0x1193   : > { %v2689_v12 = vadd.f32 %v2685_v24, %v5279_v4 }
0x1195   : > { %v2699_v16 = vsel %vm1083_vm12, %v2689_v12, -inf }
0x1196   : > { %2700 = vmax.xlane.f32.xlu0 %v2699_v16 }
0x119e   : > { %2691 = vmax.xlane.f32.xlu0 %v2690_v6 }
0x11f9   : > { %v2695_v13 = vpop.xlane.xlu2 %2694 }
0x11fa   : > { %v2703_v31 = vsub.f32 %v2687_v36, %v2695_v13 }
0x11fc   : > { %v2708_v53 = vmul.f32 1.442695, %v2703_v31  ;;  %v2850_v31 = vmul.f32 0.99, %v5097_v32 }
0x11fe   : > { %3392 = vpow2.f32 %v2708_v53 }
0x1201   : > { %v2698_v40 = vpop.xlane.xlu1 %2697 }
0x1202   : > { %v2704_v51 = vsub.f32 %v2688_v57, %v2698_v40 }
0x1204   : > { %v3393_v18 = vpop.eup %3392  ;;  %v2710_v60 = vmul.f32 1.442695, %v2704_v51 }
0x1205   : > { %v2717_v46 = vsel %vm1073_vm13, %v3393_v18, 0.0 }
0x1206   : > { %3394 = vpow2.f32 %v2710_v60  ;;  %2718 = vadd.xlane.f32.xlu0 %v2717_v46 }
0x1209   : > { %v2701_v10 = vpop.xlane.xlu0 %2700 }
0x120a   : > { %v2705_v42 = vsub.f32 %v2689_v12, %v2701_v10 }
0x120c   : > { %v3395_v44 = vpop.eup %3394  ;;  %v2712_v59 = vmul.f32 1.442695, %v2705_v42 }
0x120d   : > { %v2720_v4 = vsel %vm1073_vm13, %v3395_v44, 0.0 }
0x120e   : > { %3396 = vpow2.f32 %v2712_v59  ;;  %2721 = vadd.xlane.f32.xlu2 %v2720_v4 }
0x1211   : > { %v2692_v21 = vpop.xlane.xlu0 %2691 }
0x1212   : > { %v2702_v39 = vsub.f32 %v2686_v43, %v2692_v21 }
0x1214   : > { %v5156_v33 = vpop.eup %3396  ;;  %v2706_v2 = vmul.f32 1.442695, %v2702_v39 }
0x1215   : > { %v2723_v7 = vsel %vm1083_vm12, %v5156_v33, 0.0 }
0x1216   : > { %3398 = vpow2.f32 %v2706_v2  ;;  %2724 = vadd.xlane.f32.xlu1 %v2723_v7 }
0x121c   : > { %v5160_v55 = vpop.eup %3398 }
0x121d   : > { %v2714_v1 = vsel %vm1073_vm13, %v5160_v55, 0.0 }
0x121e   : > { %2715 = vadd.xlane.f32.xlu1 %v2714_v1  ;;  %v2851_v1 = vmul.f32 0.99, %v5101_v62  ;;  %v2852_v62 = vmul.f32 0.99, %v5107_v25 }
0x1279   : > { %v2719_v29 = vpop.xlane.xlu0 %2718 }
0x127a   : > { %3400 = vrcp.f32 %v2719_v29  ;;  %v2752_v28 = vand.u32 2147483648, %v2719_v29  ;;  %v2750_v9 = vand.u32 2147483647, %v2719_v29  ;;  %vm2746_vm15 = vweird.f32 %v2719_v29 }
0x127c   : > { %v2753_v61 = vor.u32 1.1754944e-38, %v2752_v28  ;;  %vm2751_vm2 = vcmp.eq.f32.partialorder %v2750_v9, 8.507059e+37 }
0x1280   : > { %v3401_v38 = vpop.eup %3400 }
0x1281   : > { %v2742_v58 = vmul.f32 %v3401_v38, %v2719_v29  ;;  %v2722_v30 = vpop.xlane.xlu2 %2721  ;;  %vm2747_vm11 = vweird.f32 %v3401_v38 }
0x1282   : > { %3402 = vrcp.f32 %v2722_v30  ;;  %vm2748_vm0 = vmor %vm2746_vm15, %vm2747_vm11  ;;  %v2767_v24 = vand.u32 2147483648, %v2722_v30  ;;  %v2765_v12 = vand.u32 2147483647, %v2722_v30  ;;  %vm2761_vm3 = vweird.f32 %v2722_v30 }
0x1283   : > { %v2743_v5 = vsub.f32 1.0, %v2742_v58 }
0x1284   : > { %v2768_v53 = vor.u32 1.1754944e-38, %v2767_v24  ;;  %vm2766_vm9 = vcmp.eq.f32.partialorder %v2765_v12, 8.507059e+37 }
0x1285   : > { %v2744_v27 = vmul.f32 %v3401_v38, %v2743_v5 }
0x1287   : > { %v2745_v11 = vadd.f32 %v3401_v38, %v2744_v27 }
0x1288   : > { %v3403_v36 = vpop.eup %3402 }
0x1289   : > { %v2757_v63 = vmul.f32 %v3403_v36, %v2722_v30  ;;  %v2725_v48 = vpop.xlane.xlu1 %2724  ;;  %v2749_v17 = vsel %vm2748_vm0, %v3401_v38, %v2745_v11  ;;  %vm2762_vm6 = vweird.f32 %v3403_v36 }
0x128a   : > { %3404 = vrcp.f32 %v2725_v48  ;;  %v2754_v26 = vsel %vm2751_vm2, %v2753_v61, %v2749_v17  ;;  %vm2763_vm7 = vmor %vm2761_vm3, %vm2762_vm6  ;;  %v2782_v42 = vand.u32 2147483648, %v2725_v48  ;;  %v2780_v21 = vand.u32 2147483647, %v2725_v48 }
0x128b   : > { %v2758_v57 = vsub.f32 1.0, %v2757_v63  ;;  %v2755_v52 = vmul.f32 %v3393_v18, %v2754_v26  ;;  %vm2776_vm8 = vweird.f32 %v2725_v48 }
0x128c   : > { %v2783_v29 = vor.u32 1.1754944e-38, %v2782_v42  ;;  %vm2781_vm10 = vcmp.eq.f32.partialorder %v2780_v21, 8.507059e+37  ;;  %v2795_v21 = vmul.f32 0.99, %v5135_v22  ;;  %v5289_v22 = vld [vmem:[#allocation3_spill] sm:$0xff] (%p1049_p0) }
0x128d   : > { %v2759_v49 = vmul.f32 %v3403_v36, %v2758_v57  ;;  %v2787_v16 = vsub.f32 %v2755_v52, %v4420_v41 }
0x128f   : > { %v2760_v43 = vadd.f32 %v3403_v36, %v2759_v49  ;;  %v2791_v13 = vmul.f32 0.04, %v2787_v16  ;;  %v2849_v49 = vmul.f32 0.99, %v5114_v23 }
0x1290   : > { %v3405_v6 = vpop.eup %3404 }
0x1291   : > { %v2772_v40 = vmul.f32 %v3405_v6, %v2725_v48  ;;  %v2716_v51 = vpop.xlane.xlu1 %2715  ;;  %v2764_v60 = vsel %vm2763_vm7, %v3403_v36, %v2760_v43  ;;  %v5166_v2 = vadd.f32 %v2850_v31, %v2791_v13   ;;  %vm2777_vm4 = vweird.f32 %v3405_v6 }
0x1292   : > { %3406 = vrcp.f32 %v2716_v51  ;;  %v2769_v46 = vsel %vm2766_vm9, %v2768_v53, %v2764_v60  ;;  %vm2778_vm14 = vmor %vm2776_vm8, %vm2777_vm4  ;;  %v2737_v28 = vand.u32 2147483648, %v2716_v51  ;;  %v2735_v11 = vand.u32 2147483647, %v2716_v51 }
0x1293   : > { %v2773_v18 = vsub.f32 1.0, %v2772_v40  ;;  %v5282_v10 = vmov %v5166_v2  ;;  %v2770_v59 = vmul.f32 %v3395_v44, %v2769_v46  ;;  %vm2731_vm15 = vweird.f32 %v2716_v51 }
0x1294   : > { %v2738_v48 = vor.u32 1.1754944e-38, %v2737_v28  ;;  %vm2736_vm2 = vcmp.eq.f32.partialorder %v2735_v11, 8.507059e+37  ;;  %v2836_v24 = vsel %vm1073_vm13, %v2791_v13, 0.0 }
0x1295   : > { %v2774_v4 = vmul.f32 %v3405_v6, %v2773_v18  ;;  %v2788_v39 = vsub.f32 %v2770_v59, %v4409_v8  ;;  %v2834_v18 = vmul.f32 0.99, %v5125_v50  ;;  %v2794_v59 = vmul.f32 0.99, %v5130_v56 }
0x1296   : > { %v2797_v50 = vmul.f32 0.99, %v5147_v0  ;;  %v2857_v8 = vmul.f32 (%p1049_p0), 0.36603233, %v4417_v37 }
0x1297   : > { %v2775_v7 = vadd.f32 %v3405_v6, %v2774_v4  ;;  %v2792_v38 = vmul.f32 0.04, %v2788_v39 }
0x1298   : > { %v3407_v32 = vpop.eup %3406 }
0x1299   : > { %v2727_v58 = vmul.f32 %v3407_v32, %v2716_v51  ;;  %v2779_v30 = vsel %vm2778_vm14, %v3405_v6, %v2775_v7  ;;  %v5170_v31 = vadd.f32 %v2851_v1, %v2792_v38   ;;  %vm2732_vm11 = vweird.f32 %v3407_v32 }
0x129a   : > { %v2784_v5 = vsel %vm2781_vm10, %v2783_v29, %v2779_v30  ;;  %vm2733_vm0 = vmor %vm2731_vm15, %vm2732_vm11  ;;  %v2838_v6 = vsel %vm1073_vm13, %v2792_v38, 0.0  ;;  %v2796_v7 = vmul.f32 0.99, %v5141_v54 }
0x129b   : > { %v5283_v27 = vmov %v5170_v31  ;;  %v2728_v44 = vsub.f32 1.0, %v2727_v58  ;;  %v2785_v2 = vmul.f32 %v5156_v33, %v2784_v5 }
0x129d   : > { %v2729_v9 = vmul.f32 %v3407_v32, %v2728_v44  ;;  %v2789_v36 = vsub.f32 %v2785_v2, %v4413_v19  ;;  %v5286_v2 = vmov %v5282_v10  ;;  %v2858_v19 = vmul.f32 (%p1049_p0), 0.36603233, %v4432_v47 }
0x129f   : > { %v2730_v61 = vadd.f32 %v3407_v32, %v2729_v9  ;;  %v2793_v63 = vmul.f32 0.04, %v2789_v36 }
0x12a1   : > { %3102 = vmatpush.msk.msra.mxu1 %vm616_vm1, %v2793_v63  ;;  %v2856_v17 = vadd.f32 %v2852_v62, %v2793_v63   ;;  %v2734_v57 = vsel %vm2733_vm0, %v3407_v32, %v2730_v61 }
0x12a2   : > { %v2739_v26 = vsel %vm2736_vm2, %v2738_v48, %v2734_v57 }
0x12a3   : > { %2814 = vmatpush.msra.mxu1 %v2792_v38  ;;  %v2740_v33 = vmul.f32 %v5160_v55, %v2739_v26  ;;  %v2840_v55 = vsel %vm1083_vm12, %v2793_v63, 0.0  ;;  %3107 = vmatpush.msk.msra.mxu0 (%p1049_p0), %vm616_vm1, %v2856_v17 }
0x12a5   : > { %2815 = vmatpush.msra.mxu1 %v2791_v13  ;;  %v2786_v52 = vsub.f32 %v2740_v33, %v4423_v45  ;;  %v5284_v33 = vmov %v2856_v17  ;;  %2882 = vmatpush.msra.mxu0 (%p1049_p0), %v5283_v27 }
0x12a7   : > { %v2790_v25 = vmul.f32 0.04, %v2786_v52  ;;  %2883 = vmatpush.msra.mxu0 (%p1049_p0), %v5282_v10 }
0x12a9   : > { %2816 = vmatpush.msra.mxu1 %v2790_v25  ;;  %v2835_v12 = vsel %vm1073_vm13, %v2790_v25, 0.0  ;;  %v2853_v16 = vadd.f32 %v2849_v49, %v2790_v25  }
0x12aa   : > { %v2837_v43 = vadd.f32 %v2836_v24, %v2835_v12  ;;  %3103 = vmatmul.msk.f32.vlgmr.msra.gmra.mxu1 %vm1183_vm5, %v4428_v20 }
0x12ab   :  { %3134 = vmatpush.msk.msra.mxu1 (%p1049_p0), %vm616_vm1, %v2856_v17  ;;  %2884 = vmatpush.msra.mxu0 (%p1049_p0), %v2853_v16  ;;  %vm2905_vm1 = vcmask (%p1049_p0), 63488  }
0x12ac   : > { %v2839_v31 = vadd.f32 %v2838_v6, %v2837_v43  ;;  %3108 = vmatmul.msk.f32.vlgmr.msra.gmra.mxu0 (%p1049_p0), %vm1183_vm5, %v4430_v34 }
0x12ad   :  { %3135 = vmatpush.msra.mxu1 (%p1049_p0), %v5283_v27 }
0x12ae   : > { %v2841_v53 = vadd.f32 %v2840_v55, %v2839_v31  ;;  %v5285_v31 = vmov %v5283_v27 }
0x12af   :  { %3136 = vmatpush.msra.mxu1 (%p1049_p0), %v5282_v10 }
0x12b0   : > { %v2842_v40 = vrot.slane %v2841_v53, 4 }
0x12b1   :  { %3137 = vmatpush.msra.mxu1 (%p1049_p0), %v2853_v16 }
0x12b2   : > { %v2843_v51 = vadd.f32 %v2842_v40, %v2841_v53  ;;  %3104 = vmatmul.msk.f32.gmra.mxu1 %vm1183_vm5, %v4434_v14 }
0x12b4   : > { %v2844_v23 = vrot.slane %v2843_v51, 2 }
0x12b6   : > { %v2845_v13 = vadd.f32 %v2844_v23, %v2843_v51 }
0x12b8   : > { %v2846_v60 = vrot.slane %v2845_v13, 1 }
0x12ba   : > { %v2847_v46 = vadd.f32 %v2846_v60, %v2845_v13  ;;  %3105 = vmatmul.msk.f32.gmra.mxu1 %vm1183_vm5, %v4438_v35 }
0x12bc   : > { %v2848_v42 = vsub.f32 %v2834_v18, %v2847_v46  }
0x12be   : > { %v5288_v9 = vmov %v2848_v42  ;;  %v2895_v41 = vperm.slane (%p1049_p0), %v2848_v42, 0 }
0x12c2   : > { %3106 = vmatmul.msk.f32.gmra.mxu1 %vm1183_vm5, %v4440_v15 }
0x12ca   :  { %3109 = vmatmul.msk.f32.vlgmr.msra.gmra.mxu1 (%p1049_p0), %vm1183_vm5, %v4436_v3 }
0x1327   : > { %v2818_v4 = vpop.f32.mrf.mxu1 }
0x1328   : > { %v2830_v51 = vsub.f32 %v2794_v59, %v2818_v4  }
0x1329   :  { %v2886_v45 = vpop.f32.mrf.mxu0 (%p1049_p0) }
0x132a   :  { %v2892_v14 = vsub.f32 (%p1049_p0), %v2857_v8, %v2886_v45 }
0x132c   :  { %v2897_v15 = vadd.f32 (%p1049_p0), %v2895_v41, %v2892_v14 }
0x132e   :  { %v2899_v54 = vadd.f32 (%p1049_p0), %v2897_v15, %v5289_v22 }
0x132f   : > { %v2821_v39 = vpop.f32.mrf.mxu1 }
0x1330   : > { %v2831_v60 = vsub.f32 %v2795_v21, %v2821_v39   ;;  %v2902_v0 = vsel (%p1049_p0), %vm1073_vm13, %v2899_v54, -inf }
0x1331   :  { %2903 = vmax.xlane.f32.xlu0 (%p1049_p0), %v2902_v0 }
0x1337   : > { %v2824_v32 = vpop.f32.mrf.mxu1 }
0x1338   : > { %v2832_v57 = vsub.f32 %v2796_v7, %v2824_v32  }
0x133c   :  { %1051 = sbr.rel (!%p1049_p0) target bundleno = 590 (0x24e), region = 47 }
0x133f   : > { %v2827_v1 = vpop.f32.mrf.mxu1 }
0x1340   : > { %v2833_v53 = vsub.f32 %v2797_v50, %v2827_v1   ;;  %v5287_v1 = vmov %v2853_v16 }
0x1347   :  { %v2889_v20 = vpop.f32.mrf.mxu1 }
0x1348   :  { %v2893_v35 = vsub.f32 %v2858_v19, %v2889_v20 }
0x134a   :  { %v2898_v56 = vadd.f32 %v2895_v41, %v2893_v35 }
0x134c   :  { %v2900_v34 = vadd.f32 %v2898_v56, %v5289_v22 }
0x134e   :  { %v2906_v3 = vsel %vm2905_vm1, %v2900_v34, -inf }
0x134f   :  { %2907 = vmax.xlane.f32.xlu0 %v2906_v3 }
0x13a4   :  { %v2904_v37 = vpop.xlane.xlu0 %2903 }
0x13a5   :  { %v2909_v47 = vsub.f32 %v2899_v54, %v2904_v37 }
0x13a7   :  { %v2911_v10 = vmul.f32 1.442695, %v2909_v47 }
0x13a9   :  { %3408 = vpow2.f32 %v2911_v10 }
0x13af   :  { %v3409_v58 = vpop.eup %3408 }
0x13b0   :  { %v2915_v5 = vsel %vm1073_vm13, %v3409_v58, 0.0 }
0x13b1   :  { %2916 = vadd.xlane.f32.xlu1 %v2915_v5 }
0x13c2   :  { %v2908_v29 = vpop.xlane.xlu0 %2907 }
0x13c3   :  { %v2910_v38 = vsub.f32 %v2900_v34, %v2908_v29 }
0x13c5   :  { %v2913_v30 = vmul.f32 1.442695, %v2910_v38 }
0x13c7   :  { %3410 = vpow2.f32 %v2913_v30 }
0x13cd   :  { %v3411_v27 = vpop.eup %3410 }
0x13ce   :  { %v2918_v44 = vsel %vm2905_vm1, %v3411_v27, 0.0 }
0x13cf   :  { %2919 = vadd.xlane.f32.xlu1 %v2918_v44 }
0x1424   :  { %v2917_v2 = vpop.xlane.xlu1 %2916 }
0x1425   :  { %3412 = vrcp.f32 %v2917_v2  ;;  %v2932_v62 = vand.u32 2147483648, %v2917_v2  ;;  %v2930_v63 = vand.u32 2147483647, %v2917_v2  ;;  %vm2926_vm5 = vweird.f32 %v2917_v2 }
0x1427   :  { %v2933_v57 = vor.u32 1.1754944e-38, %v2932_v62  ;;  %vm2931_vm3 = vcmp.eq.f32.partialorder %v2930_v63, 8.507059e+37 }
0x142b   :  { %v3413_v28 = vpop.eup %3412 }
0x142c   :  { %v2922_v9 = vmul.f32 %v3413_v28, %v2917_v2  ;;  %vm2927_vm12 = vweird.f32 %v3413_v28 }
0x142d   :  { %vm2928_vm6 = vmor %vm2926_vm5, %vm2927_vm12 }
0x142e   :  { %v2923_v36 = vsub.f32 1.0, %v2922_v9 }
0x1430   :  { %v2924_v61 = vmul.f32 %v3413_v28, %v2923_v36 }
0x1432   :  { %v2925_v48 = vadd.f32 %v3413_v28, %v2924_v61 }
0x1434   :  { %v2929_v26 = vsel %vm2928_vm6, %v3413_v28, %v2925_v48 }
0x1435   :  { %v2934_v52 = vsel %vm2931_vm3, %v2933_v57, %v2929_v26 }
0x1436   :  { %v2935_v49 = vmul.f32 %v3409_v58, %v2934_v52 }
0x1438   :  { %2951 = vst.msk [vmem:[%s5245_s5] sm:$0xff] %vm1073_vm13, %v2935_v49 }
0x1442   :  { %v2920_v11 = vpop.xlane.xlu1 %2919 }
0x1443   :  { %3414 = vrcp.f32 %v2920_v11  ;;  %v2947_v24 = vand.u32 2147483648, %v2920_v11  ;;  %v2945_v16 = vand.u32 2147483647, %v2920_v11  ;;  %vm2941_vm9 = vweird.f32 %v2920_v11 }
0x1445   :  { %v2948_v6 = vor.u32 1.1754944e-38, %v2947_v24  ;;  %vm2946_vm8 = vcmp.eq.f32.partialorder %v2945_v16, 8.507059e+37 }
0x1449   :  { %v3415_v17 = vpop.eup %3414 }
0x144a   :  { %v2937_v33 = vmul.f32 %v3415_v17, %v2920_v11  ;;  %vm2942_vm7 = vweird.f32 %v3415_v17 }
0x144b   :  { %vm2943_vm4 = vmor %vm2941_vm9, %vm2942_vm7 }
0x144c   :  { %v2938_v25 = vsub.f32 1.0, %v2937_v33 }
0x144e   :  { %v2939_v12 = vmul.f32 %v3415_v17, %v2938_v25 }
0x1450   :  { %v2940_v43 = vadd.f32 %v3415_v17, %v2939_v12 }
0x1452   :  { %v2944_v31 = vsel %vm2943_vm4, %v3415_v17, %v2940_v43 }
0x1453   :  { %v2949_v55 = vsel %vm2946_vm8, %v2948_v6, %v2944_v31 }
0x1454   :  { %v2950_v53 = vmul.f32 %v3411_v27, %v2949_v55 }
0x1456   :  { %2952 = vst.msk [vmem:[%s5245_s5 + $0x8] sm:$0x7f] %vm2905_vm1, %v2950_v53 }

</bundles_post_ra>
